<compile_context>
chip_gen: v7x
topology: tpu7x:2x2x1
jax: 0.10.0
libtpu: 0.0.40
codegen_flags: <defaults>
</compile_context>

<pallas_src>
import jax
import jax.numpy as jnp
from jax.experimental import pallas as pl
from jax.experimental.pallas import tpu as pltpu


# ---------------------------------------------------------------------------
# Fused LeNet-5 kernel: one grid step == one tile of BT images
# ---------------------------------------------------------------------------
def _lenet5_kernel(p_ref, w1_ref, b1_ref, selh1_ref, selw1_ref,
                   w2_ref, b2_ref, selh2_ref, selw2_ref,
                   w3_ref, b3_ref, selo_ref,
                   wf1_ref, bf1_ref, wf2_ref, bf2_ref,
                   o_ref, p1_buf, p2_buf):
    f32 = jnp.float32
    mm = lambda a, b: jnp.dot(a, b, preferred_element_type=f32)
    r1 = p1_buf.shape[0] - 8          # BT*16  (pool1 rows, per-image H 14 -> 16)
    r2 = p2_buf.shape[0] - 8          # BT*8   (pool2 rows, per-image H  5 ->  8)

    # ---- conv1 + ReLU: one whole-tile matmul, M = BT*32, K = 896, N = 224 ---
    # rows = (image, conv row h padded 28->32), lanes = (out col w, out chan c)
    c1 = jnp.maximum(mm(p_ref[...], w1_ref[...]) + b1_ref[...], 0.0)

    # ---- pool1 (2x2/2): H-pair pick via row-selection matmuls + VPU max,
    #      W stride-2 pick via lane-selection matmuls + VPU max ---------------
    hm1 = jnp.maximum(mm(selh1_ref[0], c1), mm(selh1_ref[1], c1))    # (r1, 224)
    p1 = jnp.maximum(mm(hm1, selw1_ref[0]), mm(hm1, selw1_ref[1]))   # (r1, 112)
    p1_buf[0:r1, :] = p1
    # pad rows must stay finite/zero: they get multiplied by 0 in later matmuls
    p1_buf[r1:r1 + 8, :] = jnp.zeros((8, p1_buf.shape[1]), f32)

    # ---- conv2 + ReLU: 5 whole-tile matmuls (one per kernel row dy) ---------
    # lanes of p1 = (in col j, in chan cin); w2[dy] is banded over j -> j_out
    acc2 = jnp.zeros((r1, 160), f32)
    for dy in range(5):
        acc2 = acc2 + mm(p1_buf[dy:dy + r1, :], w2_ref[dy])
    c2 = jnp.maximum(acc2 + b2_ref[...], 0.0)                        # (r1, 160)

    # ---- pool2 --------------------------------------------------------------
    hm2 = jnp.maximum(mm(selh2_ref[0], c2), mm(selh2_ref[1], c2))    # (r2, 160)
    p2 = jnp.maximum(mm(hm2, selw2_ref[0]), mm(hm2, selw2_ref[1]))   # (r2, 80)
    p2_buf[0:r2, :] = p2
    p2_buf[r2:r2 + 8, :] = jnp.zeros((8, p2_buf.shape[1]), f32)

    # ---- conv3 + ReLU: effectively one [BT,400]x[400,128] contraction,
    #      expressed as 5 per-dy matmuls + one row-compaction matmul ----------
    acc3 = jnp.zeros((r2, 128), f32)
    for dy in range(5):
        acc3 = acc3 + mm(p2_buf[dy:dy + r2, :], w3_ref[dy])
    v = jnp.maximum(mm(selo_ref[...], acc3) + b3_ref[...], 0.0)      # (BT, 128)

    # ---- fc1 + ReLU, fc2 (logits, lane-dense [BT, 128]) ---------------------
    h1 = jnp.maximum(mm(v, wf1_ref[...]) + bf1_ref[...], 0.0)
    o_ref[0] = (mm(h1, wf2_ref[...]) + bf2_ref[...]).astype(o_ref.dtype)


# ---------------------------------------------------------------------------
# Batch-tile dependent 0/1 selection matrices (constant-folded under jit)
# ---------------------------------------------------------------------------
def _batch_selectors(bt):
    f32 = jnp.float32
    r1, r2 = 16 * bt, 8 * bt

    def stride2_pair(rows, cols):
        r = jax.lax.broadcasted_iota(jnp.int32, (rows, cols), 0)
        s = jax.lax.broadcasted_iota(jnp.int32, (rows, cols), 1)
        return jnp.stack([(s == 2 * r).astype(f32), (s == 2 * r + 1).astype(f32)])

    selh1 = stride2_pair(r1, 2 * r1)        # (2, BT*16, BT*32)  pool1 H picks
    selh2 = stride2_pair(r2, r1)            # (2, BT*8,  BT*16)  pool2 H picks
    b = jax.lax.broadcasted_iota(jnp.int32, (bt, r2), 0)
    s = jax.lax.broadcasted_iota(jnp.int32, (bt, r2), 1)
    selo = (s == 8 * b).astype(f32)         # (BT, BT*8)  conv3 row compaction
    return selh1, selh2, selo


# ---------------------------------------------------------------------------
# Wrapper: conv1 patch build (tiny XLA fusion) + single fused pallas_call
# ---------------------------------------------------------------------------
def lenet5_forward(packed, img_nchw, block_batch=4):
    B = img_nchw.shape[0]
    BT = min(block_batch, B)
    G = -(-B // BT)                          # grid steps; >= 2 keeps both v7x TCs busy
    Bp = G * BT

    # conv1 im2col: rows = (image, conv row h padded 28->32),
    # lanes = (out col w 0..27, tap dy*5+dx padded 25->32)  ->  (Bp*32, 896)
    x = img_nchw[:, 0].astype(jnp.float32)
    if Bp > B:
        x = jnp.pad(x, ((0, Bp - B), (0, 0), (0, 0)))
    xp = jnp.pad(x, ((0, 0), (2, 2), (2, 2)))                          # (Bp, 32, 32)
    taps = [xp[:, dy:dy + 28, dx:dx + 28] for dy in range(5) for dx in range(5)]
    t = jnp.stack(taps, axis=-1)                                       # (Bp, 28, 28, 25)
    t = jnp.pad(t, ((0, 0), (0, 4), (0, 0), (0, 7)))                   # (Bp, 32, 28, 32)
    patches = t.reshape(Bp * 32, 28 * 32)                              # (Bp*32, 896)

    selh1, selh2, selo = _batch_selectors(BT)
    R1, R2 = 16 * BT, 8 * BT

    def const(arr):                          # resident constant (weights / selectors)
        return pl.BlockSpec(arr.shape, lambda g: (0,) * arr.ndim)

    grid_spec = pltpu.PrefetchScalarGridSpec(
        num_scalar_prefetch=0,
        grid=(G,),
        in_specs=[
            pl.BlockSpec((BT * 32, 896), lambda g: (g, 0)),            # conv1 patches
            const(packed["w1"]), const(packed["b1"]),
            const(selh1), const(packed["selw1"]),
            const(packed["w2"]), const(packed["b2"]),
            const(selh2), const(packed["selw2"]),
            const(packed["w3"]), const(packed["b3"]),
            const(selo),
            const(packed["wf1"]), const(packed["bf1"]),
            const(packed["wf2"]), const(packed["bf2"]),
        ],
        out_specs=pl.BlockSpec((1, BT, 128), lambda g: (g, 0, 0)),
        scratch_shapes=[
            pltpu.VMEM((R1 + 8, 112), jnp.float32),    # pool1 (+ zeroed pad rows)
            pltpu.VMEM((R2 + 8, 80), jnp.float32),     # pool2 (+ zeroed pad rows)
        ],
    )
    out = pl.pallas_call(
        _lenet5_kernel,
        out_shape=jax.ShapeDtypeStruct((G, BT, 128), jnp.float32),
        grid_spec=grid_spec,
        compiler_params=pltpu.CompilerParams(dimension_semantics=("parallel",)),
    )(patches, packed["w1"], packed["b1"], selh1, packed["selw1"],
      packed["w2"], packed["b2"], selh2, packed["selw2"],
      packed["w3"], packed["b3"], selo,
      packed["wf1"], packed["bf1"], packed["wf2"], packed["bf2"])
    return out.reshape(Bp, 128)[:B, :10]                               # 10 logits


# ---------------------------------------------------------------------------
# One-time parameter packing (PyTorch layouts -> kernel layouts, ZERO-padded)
# ---------------------------------------------------------------------------
def pack_params(p):
    """NOTE: the FC path relies on every padded weight AND bias slot being
    exactly zero (ReLU(0)=0 keeps padded channels zero).  Only pad with zeros."""
    f32 = jnp.float32

    # conv1: block-diagonal over the 28 output columns; lanes = (w, cout).
    w1 = jnp.transpose(p["conv1_w"][:, 0], (1, 2, 0)).reshape(25, 6)   # [tap, cout]
    w1 = jnp.pad(w1, ((0, 7), (0, 2))).astype(f32)                     # (32, 8)
    W1 = jnp.kron(jnp.eye(28, dtype=f32), w1)                          # (896, 224)
    b1 = jnp.tile(jnp.pad(p["conv1_b"], (0, 2)), 28).reshape(1, 224).astype(f32)

    # conv2: one banded matrix per kernel row dy; rows=(j_in,cin), cols=(j_out,cout).
    w2 = jnp.transpose(p["conv2_w"], (2, 3, 1, 0))                     # (dy, dx, cin, cout)
    w2 = jnp.pad(w2, ((0, 0), (0, 0), (0, 2), (0, 0))).astype(f32)     # (5, 5, 8, 16)
    jin = jax.lax.broadcasted_iota(jnp.int32, (14, 10), 0)
    jout = jax.lax.broadcasted_iota(jnp.int32, (14, 10), 1)
    W2 = jnp.stack([
        sum(jnp.kron((jin == jout + dx).astype(f32), w2[dy, dx]) for dx in range(5))
        for dy in range(5)])                                           # (5, 112, 160)
    b2 = jnp.tile(p["conv2_b"], 10).reshape(1, 160).astype(f32)

    # conv3: one matrix per kernel row dy; rows = (dx, cin), cols = cout (120 -> 128).
    w3 = jnp.transpose(p["conv3_w"], (2, 3, 1, 0)).reshape(5, 80, 120)
    W3 = jnp.pad(w3, ((0, 0), (0, 0), (0, 8))).astype(f32)             # (5, 80, 128)
    b3 = jnp.pad(p["conv3_b"], (0, 8)).reshape(1, 128).astype(f32)

    # W-direction stride-2 pooling selectors (batch-size independent).
    def lane_pool_sel(nin, nout, chans):
        w = jax.lax.broadcasted_iota(jnp.int32, (nin, nout), 0)
        j = jax.lax.broadcasted_iota(jnp.int32, (nin, nout), 1)
        eye = jnp.eye(chans, dtype=f32)
        return jnp.stack([jnp.kron((w == 2 * j + e).astype(f32), eye) for e in range(2)])

    return {
        "w1": W1, "b1": b1, "w2": W2, "b2": b2, "w3": W3, "b3": b3,
        "selw1": lane_pool_sel(28, 14, 8),                             # (2, 224, 112)
        "selw2": lane_pool_sel(10, 5, 16),                             # (2, 160, 80)
        "wf1": jnp.pad(p["fc1_w"].T, ((0, 8), (0, 44))).astype(f32),   # (128, 128)
        "bf1": jnp.pad(p["fc1_b"], (0, 44)).reshape(1, 128).astype(f32),
        "wf2": jnp.pad(p["fc2_w"].T, ((0, 44), (0, 118))).astype(f32), # (128, 128)
        "bf2": jnp.pad(p["fc2_b"], (0, 118)).reshape(1, 128).astype(f32),
    }


# ---------------------------------------------------------------------------
# Pure-JAX reference (PyTorch semantics) for a numerical self-check
# ---------------------------------------------------------------------------
def lenet5_reference(params, img):
    def conv(x, w, b, pad):
        y = jax.lax.conv_general_dilated(
            x, w, window_strides=(1, 1), padding=[(pad, pad), (pad, pad)],
            dimension_numbers=("NCHW", "OIHW", "NCHW"))
        return y + b[None, :, None, None]

    def pool(x):
        b, c, h, w = x.shape
        return x.reshape(b, c, h // 2, 2, w // 2, 2).max(axis=(3, 5))

    x = pool(jax.nn.relu(conv(img, params["conv1_w"], params["conv1_b"], 2)))
    x = pool(jax.nn.relu(conv(x, params["conv2_w"], params["conv2_b"], 0)))
    x = jax.nn.relu(conv(x, params["conv3_w"], params["conv3_b"], 0))
    x = x.reshape(x.shape[0], -1)
    x = jax.nn.relu(x @ params["fc1_w"].T + params["fc1_b"])
    return x @ params["fc2_w"].T + params["fc2_b"]


def init_params(key):
    """Deterministic synthetic parameters with PyTorch-convention shapes."""
    ks = jax.random.split(key, 10)
    n = lambda k, shape, s: jax.random.normal(k, shape, jnp.float32) * s
    return {
        "conv1_w": n(ks[0], (6, 1, 5, 5), 0.2),
        "conv1_b": n(ks[1], (6,), 0.1),
        "conv2_w": n(ks[2], (16, 6, 5, 5), 0.08),
        "conv2_b": n(ks[3], (16,), 0.1),
        "conv3_w": n(ks[4], (120, 16, 5, 5), 0.05),
        "conv3_b": n(ks[5], (120,), 0.1),
        "fc1_w": n(ks[6], (84, 120), 0.09),
        "fc1_b": n(ks[7], (84,), 0.1),
        "fc2_w": n(ks[8], (10, 84), 0.1),
        "fc2_b": n(ks[9], (10,), 0.1),
    }


if __name__ == "__main__":
    key = jax.random.PRNGKey(0)
    pkey, xkey = jax.random.split(key)
    params = init_params(pkey)
    packed = pack_params(params)          # hoisted: done once, not per forward
    # LeNet-5 requires 28x28 single-channel inputs so conv3 produces 1x1.
    # B=8 with BT=4 -> grid=(2,) "parallel" steps (keeps both v7x TCs busy).
    img = jax.random.normal(xkey, (8, 1, 28, 28), jnp.float32)

    fwd = jax.jit(lenet5_forward)
    logits = jax.block_until_ready(fwd(packed, img))
    assert logits.shape == (8, 10), logits.shape
    assert logits.dtype == jnp.float32

    ref = jax.block_until_ready(jax.jit(lenet5_reference)(params, img))
    assert jnp.allclose(logits, ref, atol=2e-3, rtol=2e-3), (logits, ref)
    print("KERNEL_OK")
</pallas_src>

<mosaic_0001>
module attributes {stable_mosaic.version = 11 : i64} {
  func.func @_lenet5_kernel(%arg0: i32, %arg1: memref<128x896xf32, #tpu.memory_space<vmem>>, %arg2: memref<896x224xf32, #tpu.memory_space<vmem>>, %arg3: memref<1x224xf32, #tpu.memory_space<vmem>>, %arg4: memref<2x64x128xf32, #tpu.memory_space<vmem>>, %arg5: memref<2x224x112xf32, #tpu.memory_space<vmem>>, %arg6: memref<5x112x160xf32, #tpu.memory_space<vmem>>, %arg7: memref<1x160xf32, #tpu.memory_space<vmem>>, %arg8: memref<2x32x64xf32, #tpu.memory_space<vmem>>, %arg9: memref<2x160x80xf32, #tpu.memory_space<vmem>>, %arg10: memref<5x80x128xf32, #tpu.memory_space<vmem>>, %arg11: memref<1x128xf32, #tpu.memory_space<vmem>>, %arg12: memref<4x32xf32, #tpu.memory_space<vmem>>, %arg13: memref<128x128xf32, #tpu.memory_space<vmem>>, %arg14: memref<1x128xf32, #tpu.memory_space<vmem>>, %arg15: memref<128x128xf32, #tpu.memory_space<vmem>>, %arg16: memref<1x128xf32, #tpu.memory_space<vmem>>, %arg17: memref<1x4x128xf32, #tpu.memory_space<vmem>>, %arg18: memref<72x112xf32, #tpu.memory_space<vmem>>, %arg19: memref<40x80xf32, #tpu.memory_space<vmem>>) attributes {dimension_semantics = [#tpu.dimension_semantics<parallel>], iteration_bounds = array<i64: 2>, scalar_prefetch = 0 : i64, scratch_operands = 2 : i64, tpu.core_type = #tpu.core_type<tc>, window_params = [{transform_indices = @transform_0, window_bounds = array<i64: 128, 896>}, {pipeline_mode = #tpu.pipeline_mode<synchronous>, transform_indices = @transform_1, window_bounds = array<i64: 896, 224>}, {pipeline_mode = #tpu.pipeline_mode<synchronous>, transform_indices = @transform_2, window_bounds = array<i64: 1, 224>}, {pipeline_mode = #tpu.pipeline_mode<synchronous>, transform_indices = @transform_3, window_bounds = array<i64: 2, 64, 128>}, {pipeline_mode = #tpu.pipeline_mode<synchronous>, transform_indices = @transform_4, window_bounds = array<i64: 2, 224, 112>}, {pipeline_mode = #tpu.pipeline_mode<synchronous>, transform_indices = @transform_5, window_bounds = array<i64: 5, 112, 160>}, {pipeline_mode = #tpu.pipeline_mode<synchronous>, transform_indices = @transform_6, window_bounds = array<i64: 1, 160>}, {pipeline_mode = #tpu.pipeline_mode<synchronous>, transform_indices = @transform_7, window_bounds = array<i64: 2, 32, 64>}, {pipeline_mode = #tpu.pipeline_mode<synchronous>, transform_indices = @transform_8, window_bounds = array<i64: 2, 160, 80>}, {pipeline_mode = #tpu.pipeline_mode<synchronous>, transform_indices = @transform_9, window_bounds = array<i64: 5, 80, 128>}, {pipeline_mode = #tpu.pipeline_mode<synchronous>, transform_indices = @transform_10, window_bounds = array<i64: 1, 128>}, {pipeline_mode = #tpu.pipeline_mode<synchronous>, transform_indices = @transform_11, window_bounds = array<i64: 4, 32>}, {pipeline_mode = #tpu.pipeline_mode<synchronous>, transform_indices = @transform_12, window_bounds = array<i64: 128, 128>}, {pipeline_mode = #tpu.pipeline_mode<synchronous>, transform_indices = @transform_13, window_bounds = array<i64: 1, 128>}, {pipeline_mode = #tpu.pipeline_mode<synchronous>, transform_indices = @transform_14, window_bounds = array<i64: 128, 128>}, {pipeline_mode = #tpu.pipeline_mode<synchronous>, transform_indices = @transform_15, window_bounds = array<i64: 1, 128>}, {transform_indices = @transform_16, window_bounds = array<i64: 1, 4, 128>}]} {
    %c0 = arith.constant 0 : index
    %c0_0 = arith.constant 0 : index
    %0 = vector.load %arg1[%c0, %c0_0] : memref<128x896xf32, #tpu.memory_space<vmem>>, vector<128x896xf32>
    %c0_1 = arith.constant 0 : index
    %c0_2 = arith.constant 0 : index
    %1 = vector.load %arg2[%c0_1, %c0_2] : memref<896x224xf32, #tpu.memory_space<vmem>>, vector<896x224xf32>
    %cst = arith.constant dense<0.000000e+00> : vector<128x224xf32>
    %2 = tpu.matmul %0, %1, %cst {dimension_numbers = #tpu.dot_dimension_numbers<[1], [0], [0], [1], [0, 0, 1, 1], [], []>} : vector<128x896xf32>, vector<896x224xf32>, vector<128x224xf32> -> vector<128x224xf32>
    %c0_3 = arith.constant 0 : index
    %c0_4 = arith.constant 0 : index
    %3 = vector.load %arg3[%c0_3, %c0_4] : memref<1x224xf32, #tpu.memory_space<vmem>>, vector<1x224xf32>
    %4 = vector.broadcast %3 : vector<1x224xf32> to vector<128x224xf32>
    %5 = arith.addf %2, %4 : vector<128x224xf32>
    %cst_5 = arith.constant 0.000000e+00 : f32
    %6 = vector.broadcast %cst_5 : f32 to vector<128x224xf32>
    %7 = arith.maximumf %5, %6 : vector<128x224xf32>
    %c0_6 = arith.constant 0 : index
    %c0_7 = arith.constant 0 : index
    %c0_8 = arith.constant 0 : index
    %8 = vector.load %arg4[%c0_6, %c0_7, %c0_8] : memref<2x64x128xf32, #tpu.memory_space<vmem>>, vector<1x64x128xf32>
    %9 = vector.shape_cast %8 : vector<1x64x128xf32> to vector<64x128xf32>
    %cst_9 = arith.constant dense<0.000000e+00> : vector<64x224xf32>
    %10 = tpu.matmul %9, %7, %cst_9 {dimension_numbers = #tpu.dot_dimension_numbers<[1], [0], [0], [1], [0, 0, 1, 1], [], []>} : vector<64x128xf32>, vector<128x224xf32>, vector<64x224xf32> -> vector<64x224xf32>
    %c1 = arith.constant 1 : index
    %c0_10 = arith.constant 0 : index
    %c0_11 = arith.constant 0 : index
    %11 = vector.load %arg4[%c1, %c0_10, %c0_11] : memref<2x64x128xf32, #tpu.memory_space<vmem>>, vector<1x64x128xf32>
    %12 = vector.shape_cast %11 : vector<1x64x128xf32> to vector<64x128xf32>
    %cst_12 = arith.constant dense<0.000000e+00> : vector<64x224xf32>
    %13 = tpu.matmul %12, %7, %cst_12 {dimension_numbers = #tpu.dot_dimension_numbers<[1], [0], [0], [1], [0, 0, 1, 1], [], []>} : vector<64x128xf32>, vector<128x224xf32>, vector<64x224xf32> -> vector<64x224xf32>
    %14 = arith.maximumf %10, %13 : vector<64x224xf32>
    %c0_13 = arith.constant 0 : index
    %c0_14 = arith.constant 0 : index
    %c0_15 = arith.constant 0 : index
    %15 = vector.load %arg5[%c0_13, %c0_14, %c0_15] : memref<2x224x112xf32, #tpu.memory_space<vmem>>, vector<1x224x112xf32>
    %16 = vector.shape_cast %15 : vector<1x224x112xf32> to vector<224x112xf32>
    %cst_16 = arith.constant dense<0.000000e+00> : vector<64x112xf32>
    %17 = tpu.matmul %14, %16, %cst_16 {dimension_numbers = #tpu.dot_dimension_numbers<[1], [0], [0], [1], [0, 0, 1, 1], [], []>} : vector<64x224xf32>, vector<224x112xf32>, vector<64x112xf32> -> vector<64x112xf32>
    %c1_17 = arith.constant 1 : index
    %c0_18 = arith.constant 0 : index
    %c0_19 = arith.constant 0 : index
    %18 = vector.load %arg5[%c1_17, %c0_18, %c0_19] : memref<2x224x112xf32, #tpu.memory_space<vmem>>, vector<1x224x112xf32>
    %19 = vector.shape_cast %18 : vector<1x224x112xf32> to vector<224x112xf32>
    %cst_20 = arith.constant dense<0.000000e+00> : vector<64x112xf32>
    %20 = tpu.matmul %14, %19, %cst_20 {dimension_numbers = #tpu.dot_dimension_numbers<[1], [0], [0], [1], [0, 0, 1, 1], [], []>} : vector<64x224xf32>, vector<224x112xf32>, vector<64x112xf32> -> vector<64x112xf32>
    %21 = arith.maximumf %17, %20 : vector<64x112xf32>
    %c0_21 = arith.constant 0 : index
    %c0_22 = arith.constant 0 : index
    %22 = vector.load %arg18[%c0_21, %c0_22] : memref<72x112xf32, #tpu.memory_space<vmem>>, vector<64x112xf32>
    tpu.vector_store %arg18[%c0_21, %c0_22], %21 {strides = array<i32>} : memref<72x112xf32, #tpu.memory_space<vmem>>, vector<64x112xf32>,
    %cst_23 = arith.constant 0.000000e+00 : f32
    %23 = vector.broadcast %cst_23 : f32 to vector<8x112xf32>
    %c64 = arith.constant 64 : index
    %c0_24 = arith.constant 0 : index
    %24 = vector.load %arg18[%c64, %c0_24] : memref<72x112xf32, #tpu.memory_space<vmem>>, vector<8x112xf32>
    tpu.vector_store %arg18[%c64, %c0_24], %23 {strides = array<i32>} : memref<72x112xf32, #tpu.memory_space<vmem>>, vector<8x112xf32>,
    %cst_25 = arith.constant 0.000000e+00 : f32
    %25 = vector.broadcast %cst_25 : f32 to vector<64x160xf32>
    %c0_26 = arith.constant 0 : index
    %c0_27 = arith.constant 0 : index
    %26 = vector.load %arg18[%c0_26, %c0_27] : memref<72x112xf32, #tpu.memory_space<vmem>>, vector<64x112xf32>
    %c0_28 = arith.constant 0 : index
    %c0_29 = arith.constant 0 : index
    %c0_30 = arith.constant 0 : index
    %27 = vector.load %arg6[%c0_28, %c0_29, %c0_30] : memref<5x112x160xf32, #tpu.memory_space<vmem>>, vector<1x112x160xf32>
    %28 = vector.shape_cast %27 : vector<1x112x160xf32> to vector<112x160xf32>
    %cst_31 = arith.constant dense<0.000000e+00> : vector<64x160xf32>
    %29 = tpu.matmul %26, %28, %cst_31 {dimension_numbers = #tpu.dot_dimension_numbers<[1], [0], [0], [1], [0, 0, 1, 1], [], []>} : vector<64x112xf32>, vector<112x160xf32>, vector<64x160xf32> -> vector<64x160xf32>
    %30 = arith.addf %25, %29 : vector<64x160xf32>
    %c1_32 = arith.constant 1 : index
    %c0_33 = arith.constant 0 : index
    %31 = vector.load %arg18[%c1_32, %c0_33] : memref<72x112xf32, #tpu.memory_space<vmem>>, vector<64x112xf32>
    %c1_34 = arith.constant 1 : index
    %c0_35 = arith.constant 0 : index
    %c0_36 = arith.constant 0 : index
    %32 = vector.load %arg6[%c1_34, %c0_35, %c0_36] : memref<5x112x160xf32, #tpu.memory_space<vmem>>, vector<1x112x160xf32>
    %33 = vector.shape_cast %32 : vector<1x112x160xf32> to vector<112x160xf32>
    %cst_37 = arith.constant dense<0.000000e+00> : vector<64x160xf32>
    %34 = tpu.matmul %31, %33, %cst_37 {dimension_numbers = #tpu.dot_dimension_numbers<[1], [0], [0], [1], [0, 0, 1, 1], [], []>} : vector<64x112xf32>, vector<112x160xf32>, vector<64x160xf32> -> vector<64x160xf32>
    %35 = arith.addf %30, %34 : vector<64x160xf32>
    %c2 = arith.constant 2 : index
    %c0_38 = arith.constant 0 : index
    %36 = vector.load %arg18[%c2, %c0_38] : memref<72x112xf32, #tpu.memory_space<vmem>>, vector<64x112xf32>
    %c2_39 = arith.constant 2 : index
    %c0_40 = arith.constant 0 : index
    %c0_41 = arith.constant 0 : index
    %37 = vector.load %arg6[%c2_39, %c0_40, %c0_41] : memref<5x112x160xf32, #tpu.memory_space<vmem>>, vector<1x112x160xf32>
    %38 = vector.shape_cast %37 : vector<1x112x160xf32> to vector<112x160xf32>
    %cst_42 = arith.constant dense<0.000000e+00> : vector<64x160xf32>
    %39 = tpu.matmul %36, %38, %cst_42 {dimension_numbers = #tpu.dot_dimension_numbers<[1], [0], [0], [1], [0, 0, 1, 1], [], []>} : vector<64x112xf32>, vector<112x160xf32>, vector<64x160xf32> -> vector<64x160xf32>
    %40 = arith.addf %35, %39 : vector<64x160xf32>
    %c3 = arith.constant 3 : index
    %c0_43 = arith.constant 0 : index
    %41 = vector.load %arg18[%c3, %c0_43] : memref<72x112xf32, #tpu.memory_space<vmem>>, vector<64x112xf32>
    %c3_44 = arith.constant 3 : index
    %c0_45 = arith.constant 0 : index
    %c0_46 = arith.constant 0 : index
    %42 = vector.load %arg6[%c3_44, %c0_45, %c0_46] : memref<5x112x160xf32, #tpu.memory_space<vmem>>, vector<1x112x160xf32>
    %43 = vector.shape_cast %42 : vector<1x112x160xf32> to vector<112x160xf32>
    %cst_47 = arith.constant dense<0.000000e+00> : vector<64x160xf32>
    %44 = tpu.matmul %41, %43, %cst_47 {dimension_numbers = #tpu.dot_dimension_numbers<[1], [0], [0], [1], [0, 0, 1, 1], [], []>} : vector<64x112xf32>, vector<112x160xf32>, vector<64x160xf32> -> vector<64x160xf32>
    %45 = arith.addf %40, %44 : vector<64x160xf32>
    %c4 = arith.constant 4 : index
    %c0_48 = arith.constant 0 : index
    %46 = vector.load %arg18[%c4, %c0_48] : memref<72x112xf32, #tpu.memory_space<vmem>>, vector<64x112xf32>
    %c4_49 = arith.constant 4 : index
    %c0_50 = arith.constant 0 : index
    %c0_51 = arith.constant 0 : index
    %47 = vector.load %arg6[%c4_49, %c0_50, %c0_51] : memref<5x112x160xf32, #tpu.memory_space<vmem>>, vector<1x112x160xf32>
    %48 = vector.shape_cast %47 : vector<1x112x160xf32> to vector<112x160xf32>
    %cst_52 = arith.constant dense<0.000000e+00> : vector<64x160xf32>
    %49 = tpu.matmul %46, %48, %cst_52 {dimension_numbers = #tpu.dot_dimension_numbers<[1], [0], [0], [1], [0, 0, 1, 1], [], []>} : vector<64x112xf32>, vector<112x160xf32>, vector<64x160xf32> -> vector<64x160xf32>
    %50 = arith.addf %45, %49 : vector<64x160xf32>
    %c0_53 = arith.constant 0 : index
    %c0_54 = arith.constant 0 : index
    %51 = vector.load %arg7[%c0_53, %c0_54] : memref<1x160xf32, #tpu.memory_space<vmem>>, vector<1x160xf32>
    %52 = vector.broadcast %51 : vector<1x160xf32> to vector<64x160xf32>
    %53 = arith.addf %50, %52 : vector<64x160xf32>
    %cst_55 = arith.constant 0.000000e+00 : f32
    %54 = vector.broadcast %cst_55 : f32 to vector<64x160xf32>
    %55 = arith.maximumf %53, %54 : vector<64x160xf32>
    %c0_56 = arith.constant 0 : index
    %c0_57 = arith.constant 0 : index
    %c0_58 = arith.constant 0 : index
    %56 = vector.load %arg8[%c0_56, %c0_57, %c0_58] : memref<2x32x64xf32, #tpu.memory_space<vmem>>, vector<1x32x64xf32>
    %57 = vector.shape_cast %56 : vector<1x32x64xf32> to vector<32x64xf32>
    %cst_59 = arith.constant dense<0.000000e+00> : vector<32x160xf32>
    %58 = tpu.matmul %57, %55, %cst_59 {dimension_numbers = #tpu.dot_dimension_numbers<[1], [0], [0], [1], [0, 0, 1, 1], [], []>} : vector<32x64xf32>, vector<64x160xf32>, vector<32x160xf32> -> vector<32x160xf32>
    %c1_60 = arith.constant 1 : index
    %c0_61 = arith.constant 0 : index
    %c0_62 = arith.constant 0 : index
    %59 = vector.load %arg8[%c1_60, %c0_61, %c0_62] : memref<2x32x64xf32, #tpu.memory_space<vmem>>, vector<1x32x64xf32>
    %60 = vector.shape_cast %59 : vector<1x32x64xf32> to vector<32x64xf32>
    %cst_63 = arith.constant dense<0.000000e+00> : vector<32x160xf32>
    %61 = tpu.matmul %60, %55, %cst_63 {dimension_numbers = #tpu.dot_dimension_numbers<[1], [0], [0], [1], [0, 0, 1, 1], [], []>} : vector<32x64xf32>, vector<64x160xf32>, vector<32x160xf32> -> vector<32x160xf32>
    %62 = arith.maximumf %58, %61 : vector<32x160xf32>
    %c0_64 = arith.constant 0 : index
    %c0_65 = arith.constant 0 : index
    %c0_66 = arith.constant 0 : index
    %63 = vector.load %arg9[%c0_64, %c0_65, %c0_66] : memref<2x160x80xf32, #tpu.memory_space<vmem>>, vector<1x160x80xf32>
    %64 = vector.shape_cast %63 : vector<1x160x80xf32> to vector<160x80xf32>
    %cst_67 = arith.constant dense<0.000000e+00> : vector<32x80xf32>
    %65 = tpu.matmul %62, %64, %cst_67 {dimension_numbers = #tpu.dot_dimension_numbers<[1], [0], [0], [1], [0, 0, 1, 1], [], []>} : vector<32x160xf32>, vector<160x80xf32>, vector<32x80xf32> -> vector<32x80xf32>
    %c1_68 = arith.constant 1 : index
    %c0_69 = arith.constant 0 : index
    %c0_70 = arith.constant 0 : index
    %66 = vector.load %arg9[%c1_68, %c0_69, %c0_70] : memref<2x160x80xf32, #tpu.memory_space<vmem>>, vector<1x160x80xf32>
    %67 = vector.shape_cast %66 : vector<1x160x80xf32> to vector<160x80xf32>
    %cst_71 = arith.constant dense<0.000000e+00> : vector<32x80xf32>
    %68 = tpu.matmul %62, %67, %cst_71 {dimension_numbers = #tpu.dot_dimension_numbers<[1], [0], [0], [1], [0, 0, 1, 1], [], []>} : vector<32x160xf32>, vector<160x80xf32>, vector<32x80xf32> -> vector<32x80xf32>
    %69 = arith.maximumf %65, %68 : vector<32x80xf32>
    %c0_72 = arith.constant 0 : index
    %c0_73 = arith.constant 0 : index
    %70 = vector.load %arg19[%c0_72, %c0_73] : memref<40x80xf32, #tpu.memory_space<vmem>>, vector<32x80xf32>
    tpu.vector_store %arg19[%c0_72, %c0_73], %69 {strides = array<i32>} : memref<40x80xf32, #tpu.memory_space<vmem>>, vector<32x80xf32>,
    %cst_74 = arith.constant 0.000000e+00 : f32
    %71 = vector.broadcast %cst_74 : f32 to vector<8x80xf32>
    %c32 = arith.constant 32 : index
    %c0_75 = arith.constant 0 : index
    %72 = vector.load %arg19[%c32, %c0_75] : memref<40x80xf32, #tpu.memory_space<vmem>>, vector<8x80xf32>
    tpu.vector_store %arg19[%c32, %c0_75], %71 {strides = array<i32>} : memref<40x80xf32, #tpu.memory_space<vmem>>, vector<8x80xf32>,
    %cst_76 = arith.constant 0.000000e+00 : f32
    %73 = vector.broadcast %cst_76 : f32 to vector<32x128xf32>
    %c0_77 = arith.constant 0 : index
    %c0_78 = arith.constant 0 : index
    %74 = vector.load %arg19[%c0_77, %c0_78] : memref<40x80xf32, #tpu.memory_space<vmem>>, vector<32x80xf32>
    %c0_79 = arith.constant 0 : index
    %c0_80 = arith.constant 0 : index
    %c0_81 = arith.constant 0 : index
    %75 = vector.load %arg10[%c0_79, %c0_80, %c0_81] : memref<5x80x128xf32, #tpu.memory_space<vmem>>, vector<1x80x128xf32>
    %76 = vector.shape_cast %75 : vector<1x80x128xf32> to vector<80x128xf32>
    %cst_82 = arith.constant dense<0.000000e+00> : vector<32x128xf32>
    %77 = tpu.matmul %74, %76, %cst_82 {dimension_numbers = #tpu.dot_dimension_numbers<[1], [0], [0], [1], [0, 0, 1, 1], [], []>} : vector<32x80xf32>, vector<80x128xf32>, vector<32x128xf32> -> vector<32x128xf32>
    %78 = arith.addf %73, %77 : vector<32x128xf32>
    %c1_83 = arith.constant 1 : index
    %c0_84 = arith.constant 0 : index
    %79 = vector.load %arg19[%c1_83, %c0_84] : memref<40x80xf32, #tpu.memory_space<vmem>>, vector<32x80xf32>
    %c1_85 = arith.constant 1 : index
    %c0_86 = arith.constant 0 : index
    %c0_87 = arith.constant 0 : index
    %80 = vector.load %arg10[%c1_85, %c0_86, %c0_87] : memref<5x80x128xf32, #tpu.memory_space<vmem>>, vector<1x80x128xf32>
    %81 = vector.shape_cast %80 : vector<1x80x128xf32> to vector<80x128xf32>
    %cst_88 = arith.constant dense<0.000000e+00> : vector<32x128xf32>
    %82 = tpu.matmul %79, %81, %cst_88 {dimension_numbers = #tpu.dot_dimension_numbers<[1], [0], [0], [1], [0, 0, 1, 1], [], []>} : vector<32x80xf32>, vector<80x128xf32>, vector<32x128xf32> -> vector<32x128xf32>
    %83 = arith.addf %78, %82 : vector<32x128xf32>
    %c2_89 = arith.constant 2 : index
    %c0_90 = arith.constant 0 : index
    %84 = vector.load %arg19[%c2_89, %c0_90] : memref<40x80xf32, #tpu.memory_space<vmem>>, vector<32x80xf32>
    %c2_91 = arith.constant 2 : index
    %c0_92 = arith.constant 0 : index
    %c0_93 = arith.constant 0 : index
    %85 = vector.load %arg10[%c2_91, %c0_92, %c0_93] : memref<5x80x128xf32, #tpu.memory_space<vmem>>, vector<1x80x128xf32>
    %86 = vector.shape_cast %85 : vector<1x80x128xf32> to vector<80x128xf32>
    %cst_94 = arith.constant dense<0.000000e+00> : vector<32x128xf32>
    %87 = tpu.matmul %84, %86, %cst_94 {dimension_numbers = #tpu.dot_dimension_numbers<[1], [0], [0], [1], [0, 0, 1, 1], [], []>} : vector<32x80xf32>, vector<80x128xf32>, vector<32x128xf32> -> vector<32x128xf32>
    %88 = arith.addf %83, %87 : vector<32x128xf32>
    %c3_95 = arith.constant 3 : index
    %c0_96 = arith.constant 0 : index
    %89 = vector.load %arg19[%c3_95, %c0_96] : memref<40x80xf32, #tpu.memory_space<vmem>>, vector<32x80xf32>
    %c3_97 = arith.constant 3 : index
    %c0_98 = arith.constant 0 : index
    %c0_99 = arith.constant 0 : index
    %90 = vector.load %arg10[%c3_97, %c0_98, %c0_99] : memref<5x80x128xf32, #tpu.memory_space<vmem>>, vector<1x80x128xf32>
    %91 = vector.shape_cast %90 : vector<1x80x128xf32> to vector<80x128xf32>
    %cst_100 = arith.constant dense<0.000000e+00> : vector<32x128xf32>
    %92 = tpu.matmul %89, %91, %cst_100 {dimension_numbers = #tpu.dot_dimension_numbers<[1], [0], [0], [1], [0, 0, 1, 1], [], []>} : vector<32x80xf32>, vector<80x128xf32>, vector<32x128xf32> -> vector<32x128xf32>
    %93 = arith.addf %88, %92 : vector<32x128xf32>
    %c4_101 = arith.constant 4 : index
    %c0_102 = arith.constant 0 : index
    %94 = vector.load %arg19[%c4_101, %c0_102] : memref<40x80xf32, #tpu.memory_space<vmem>>, vector<32x80xf32>
    %c4_103 = arith.constant 4 : index
    %c0_104 = arith.constant 0 : index
    %c0_105 = arith.constant 0 : index
    %95 = vector.load %arg10[%c4_103, %c0_104, %c0_105] : memref<5x80x128xf32, #tpu.memory_space<vmem>>, vector<1x80x128xf32>
    %96 = vector.shape_cast %95 : vector<1x80x128xf32> to vector<80x128xf32>
    %cst_106 = arith.constant dense<0.000000e+00> : vector<32x128xf32>
    %97 = tpu.matmul %94, %96, %cst_106 {dimension_numbers = #tpu.dot_dimension_numbers<[1], [0], [0], [1], [0, 0, 1, 1], [], []>} : vector<32x80xf32>, vector<80x128xf32>, vector<32x128xf32> -> vector<32x128xf32>
    %98 = arith.addf %93, %97 : vector<32x128xf32>
    %c0_107 = arith.constant 0 : index
    %c0_108 = arith.constant 0 : index
    %99 = vector.load %arg12[%c0_107, %c0_108] : memref<4x32xf32, #tpu.memory_space<vmem>>, vector<4x32xf32>
    %cst_109 = arith.constant dense<0.000000e+00> : vector<4x128xf32>
    %100 = tpu.matmul %99, %98, %cst_109 {dimension_numbers = #tpu.dot_dimension_numbers<[1], [0], [0], [1], [0, 0, 1, 1], [], []>} : vector<4x32xf32>, vector<32x128xf32>, vector<4x128xf32> -> vector<4x128xf32>
    %c0_110 = arith.constant 0 : index
    %c0_111 = arith.constant 0 : index
    %101 = vector.load %arg11[%c0_110, %c0_111] : memref<1x128xf32, #tpu.memory_space<vmem>>, vector<1x128xf32>
    %102 = vector.broadcast %101 : vector<1x128xf32> to vector<4x128xf32>
    %103 = arith.addf %100, %102 : vector<4x128xf32>
    %cst_112 = arith.constant 0.000000e+00 : f32
    %104 = vector.broadcast %cst_112 : f32 to vector<4x128xf32>
    %105 = arith.maximumf %103, %104 : vector<4x128xf32>
    %c0_113 = arith.constant 0 : index
    %c0_114 = arith.constant 0 : index
    %106 = vector.load %arg13[%c0_113, %c0_114] : memref<128x128xf32, #tpu.memory_space<vmem>>, vector<128x128xf32>
    %cst_115 = arith.constant dense<0.000000e+00> : vector<4x128xf32>
    %107 = tpu.matmul %105, %106, %cst_115 {dimension_numbers = #tpu.dot_dimension_numbers<[1], [0], [0], [1], [0, 0, 1, 1], [], []>} : vector<4x128xf32>, vector<128x128xf32>, vector<4x128xf32> -> vector<4x128xf32>
    %c0_116 = arith.constant 0 : index
    %c0_117 = arith.constant 0 : index
    %108 = vector.load %arg14[%c0_116, %c0_117] : memref<1x128xf32, #tpu.memory_space<vmem>>, vector<1x128xf32>
    %109 = vector.broadcast %108 : vector<1x128xf32> to vector<4x128xf32>
    %110 = arith.addf %107, %109 : vector<4x128xf32>
    %cst_118 = arith.constant 0.000000e+00 : f32
    %111 = vector.broadcast %cst_118 : f32 to vector<4x128xf32>
    %112 = arith.maximumf %110, %111 : vector<4x128xf32>
    %c0_119 = arith.constant 0 : index
    %c0_120 = arith.constant 0 : index
    %113 = vector.load %arg15[%c0_119, %c0_120] : memref<128x128xf32, #tpu.memory_space<vmem>>, vector<128x128xf32>
    %cst_121 = arith.constant dense<0.000000e+00> : vector<4x128xf32>
    %114 = tpu.matmul %112, %113, %cst_121 {dimension_numbers = #tpu.dot_dimension_numbers<[1], [0], [0], [1], [0, 0, 1, 1], [], []>} : vector<4x128xf32>, vector<128x128xf32>, vector<4x128xf32> -> vector<4x128xf32>
    %c0_122 = arith.constant 0 : index
    %c0_123 = arith.constant 0 : index
    %115 = vector.load %arg16[%c0_122, %c0_123] : memref<1x128xf32, #tpu.memory_space<vmem>>, vector<1x128xf32>
    %116 = vector.broadcast %115 : vector<1x128xf32> to vector<4x128xf32>
    %117 = arith.addf %114, %116 : vector<4x128xf32>
    %c0_124 = arith.constant 0 : index
    %c0_125 = arith.constant 0 : index
    %c0_126 = arith.constant 0 : index
    %118 = vector.load %arg17[%c0_124, %c0_125, %c0_126] : memref<1x4x128xf32, #tpu.memory_space<vmem>>, vector<1x4x128xf32>
    %119 = vector.shape_cast %118 : vector<1x4x128xf32> to vector<4x128xf32>
    %120 = vector.shape_cast %117 : vector<4x128xf32> to vector<1x4x128xf32>
    tpu.vector_store %arg17[%c0_124, %c0_125, %c0_126], %120 {strides = array<i32>} : memref<1x4x128xf32, #tpu.memory_space<vmem>>, vector<1x4x128xf32>,
    return
  }
  func.func @transform_0(%arg0: i32) -> (i32, i32) {
    %c0_i32 = arith.constant 0 : i32
    %c0_i32_0 = arith.constant 0 : i32
    return %arg0, %c0_i32 : i32, i32
  }
  func.func @transform_1(%arg0: i32) -> (i32, i32) {
    %c0_i32 = arith.constant 0 : i32
    %c0_i32_0 = arith.constant 0 : i32
    %c0_i32_1 = arith.constant 0 : i32
    return %c0_i32, %c0_i32_0 : i32, i32
  }
  func.func @transform_2(%arg0: i32) -> (i32, i32) {
    %c0_i32 = arith.constant 0 : i32
    %c0_i32_0 = arith.constant 0 : i32
    %c0_i32_1 = arith.constant 0 : i32
    return %c0_i32, %c0_i32_0 : i32, i32
  }
  func.func @transform_3(%arg0: i32) -> (i32, i32, i32) {
    %c0_i32 = arith.constant 0 : i32
    %c0_i32_0 = arith.constant 0 : i32
    %c0_i32_1 = arith.constant 0 : i32
    %c0_i32_2 = arith.constant 0 : i32
    return %c0_i32, %c0_i32_0, %c0_i32_1 : i32, i32, i32
  }
  func.func @transform_4(%arg0: i32) -> (i32, i32, i32) {
    %c0_i32 = arith.constant 0 : i32
    %c0_i32_0 = arith.constant 0 : i32
    %c0_i32_1 = arith.constant 0 : i32
    %c0_i32_2 = arith.constant 0 : i32
    return %c0_i32, %c0_i32_0, %c0_i32_1 : i32, i32, i32
  }
  func.func @transform_5(%arg0: i32) -> (i32, i32, i32) {
    %c0_i32 = arith.constant 0 : i32
    %c0_i32_0 = arith.constant 0 : i32
    %c0_i32_1 = arith.constant 0 : i32
    %c0_i32_2 = arith.constant 0 : i32
    return %c0_i32, %c0_i32_0, %c0_i32_1 : i32, i32, i32
  }
  func.func @transform_6(%arg0: i32) -> (i32, i32) {
    %c0_i32 = arith.constant 0 : i32
    %c0_i32_0 = arith.constant 0 : i32
    %c0_i32_1 = arith.constant 0 : i32
    return %c0_i32, %c0_i32_0 : i32, i32
  }
  func.func @transform_7(%arg0: i32) -> (i32, i32, i32) {
    %c0_i32 = arith.constant 0 : i32
    %c0_i32_0 = arith.constant 0 : i32
    %c0_i32_1 = arith.constant 0 : i32
    %c0_i32_2 = arith.constant 0 : i32
    return %c0_i32, %c0_i32_0, %c0_i32_1 : i32, i32, i32
  }
  func.func @transform_8(%arg0: i32) -> (i32, i32, i32) {
    %c0_i32 = arith.constant 0 : i32
    %c0_i32_0 = arith.constant 0 : i32
    %c0_i32_1 = arith.constant 0 : i32
    %c0_i32_2 = arith.constant 0 : i32
    return %c0_i32, %c0_i32_0, %c0_i32_1 : i32, i32, i32
  }
  func.func @transform_9(%arg0: i32) -> (i32, i32, i32) {
    %c0_i32 = arith.constant 0 : i32
    %c0_i32_0 = arith.constant 0 : i32
    %c0_i32_1 = arith.constant 0 : i32
    %c0_i32_2 = arith.constant 0 : i32
    return %c0_i32, %c0_i32_0, %c0_i32_1 : i32, i32, i32
  }
  func.func @transform_10(%arg0: i32) -> (i32, i32) {
    %c0_i32 = arith.constant 0 : i32
    %c0_i32_0 = arith.constant 0 : i32
    %c0_i32_1 = arith.constant 0 : i32
    return %c0_i32, %c0_i32_0 : i32, i32
  }
  func.func @transform_11(%arg0: i32) -> (i32, i32) {
    %c0_i32 = arith.constant 0 : i32
    %c0_i32_0 = arith.constant 0 : i32
    %c0_i32_1 = arith.constant 0 : i32
    return %c0_i32, %c0_i32_0 : i32, i32
  }
  func.func @transform_12(%arg0: i32) -> (i32, i32) {
    %c0_i32 = arith.constant 0 : i32
    %c0_i32_0 = arith.constant 0 : i32
    %c0_i32_1 = arith.constant 0 : i32
    return %c0_i32, %c0_i32_0 : i32, i32
  }
  func.func @transform_13(%arg0: i32) -> (i32, i32) {
    %c0_i32 = arith.constant 0 : i32
    %c0_i32_0 = arith.constant 0 : i32
    %c0_i32_1 = arith.constant 0 : i32
    return %c0_i32, %c0_i32_0 : i32, i32
  }
  func.func @transform_14(%arg0: i32) -> (i32, i32) {
    %c0_i32 = arith.constant 0 : i32
    %c0_i32_0 = arith.constant 0 : i32
    %c0_i32_1 = arith.constant 0 : i32
    return %c0_i32, %c0_i32_0 : i32, i32
  }
  func.func @transform_15(%arg0: i32) -> (i32, i32) {
    %c0_i32 = arith.constant 0 : i32
    %c0_i32_0 = arith.constant 0 : i32
    %c0_i32_1 = arith.constant 0 : i32
    return %c0_i32, %c0_i32_0 : i32, i32
  }
  func.func @transform_16(%arg0: i32) -> (i32, i32, i32) {
    %c0_i32 = arith.constant 0 : i32
    %c0_i32_0 = arith.constant 0 : i32
    %c0_i32_1 = arith.constant 0 : i32
    return %arg0, %c0_i32, %c0_i32_0 : i32, i32, i32
  }
}

</mosaic_0001>

<bundles_post_ra>
// kernel: lenet5_forward.1
= control target key start
LH: loop header
LB: loop body
LE: loop exit
PB: predicated region body
PF: predicated region fallthrough
CT: control target
= control target key end

     0   :  { %s8602_s0 = inlined_call_operand.vmem [shape: f32[256,896], index: 0, kind: input, shape index: {}]   ;;  %s8603_s1 = inlined_call_operand.vmem [shape: f32[896,224], index: 1, kind: input, shape index: {}]   ;;  %s8604_s2 = inlined_call_operand.vmem [shape: f32[1,224], index: 2, kind: input, shape index: {}]   ;;  %s8605_s3 = inlined_call_operand.vmem [shape: f32[2,64,128], index: 3, kind: input, shape index: {}]   ;;  %s8606_s4 = inlined_call_operand.vmem [shape: f32[2,224,112], index: 4, kind: input, shape index: {}]   ;;  %s8607_s5 = inlined_call_operand.vmem [shape: f32[5,112,160], index: 5, kind: input, shape index: {}]   ;;  %s8608_s6 = inlined_call_operand.vmem [shape: f32[1,160], index: 6, kind: input, shape index: {}]   ;;  %s8609_s7 = inlined_call_operand.vmem [shape: f32[2,32,64], index: 7, kind: input, shape index: {}]   ;;  %s8610_s8 = inlined_call_operand.vmem [shape: f32[2,160,80], index: 8, kind: input, shape index: {}]   ;;  %s8611_s9 = inlined_call_operand.vmem [shape: f32[5,80,128], index: 9, kind: input, shape index: {}]   ;;  %s8612_s10 = inlined_call_operand.vmem [shape: f32[1,128], index: 10, kind: input, shape index: {}]   ;;  %s8613_s11 = inlined_call_operand.vmem [shape: f32[4,32], index: 11, kind: input, shape index: {}]   ;;  %s8614_s12 = inlined_call_operand.vmem [shape: f32[128,128], index: 12, kind: input, shape index: {}]   ;;  %s8615_s13 = inlined_call_operand.vmem [shape: f32[1,128], index: 13, kind: input, shape index: {}]   ;;  %s8616_s14 = inlined_call_operand.vmem [shape: f32[128,128], index: 14, kind: input, shape index: {}]   ;;  %s8617_s15 = inlined_call_operand.vmem [shape: f32[1,128], index: 15, kind: input, shape index: {}]   ;;  %s8618_s16 = inlined_call_operand.hbm [shape: f32[2,4,128], index: 16, kind: output, shape index: {}]  }
   0x1   :  { %8626 = sst [smem:[#allocation13_spill]] %s8602_s0 }
   0x2   :  { %8627 = sst [smem:[#allocation14_spill]] %s8618_s16 }
   0x3   :  { %21 = vsyncpa [#allocation5], 0 }
   0x4   :  { %23 = vsyncpa [#allocation5 + $0x1], 0  ;;  %s6248_s21 = smov 0   ;;  %s6250_s22 = smov 0  }
   0x5   :  { %s6252_s23 = smov 0   ;;  %s6254_s24 = smov 0  }
   0x6 LB: > { %8628 = sst [smem:[#allocation7_spill]] %s6145_s21  ;;  %s6269_s25 = sadd.s32 4294967295, %s6157_s24   ;;  %s6157_s24 = sphi %s6254_s24, %s8641_s24   ;;  %s6153_s23 = sphi %s6252_s23, %s8643_s23   ;;  %s6149_s22 = sphi %s6250_s22, %s8645_s22   ;;  %s6145_s21 = sphi %s6248_s21, %s8644_s21  }
   0x7   : > { %8629 = sst [smem:[#allocation8_spill]] %s6153_s23  ;;  %s4447_s26 = sadd.s32 4294967294, %s6157_s24  }
   0x8   : > { %8630 = sst [smem:[#allocation9_spill]] %s6157_s24  ;;  %s6273_s27 = sadd.s32 1, %s6157_s24  }
   0x9   : > { %8631 = sst [smem:[#allocation10_spill]] %s6273_s27  ;;  %s377_s28 = sadd.s32 1, %s6153_s23 }
   0xa   : > { %s374_s29 = ssub.s32 %s6157_s24, %s6273_s27  ;;  %p387_p0 = scmp.ne.s32.totalorder %s6153_s23, %s6149_s22 }
   0xb   : > { %p375_p1 = scmp.eq.s32.totalorder %s374_s29, 0  ;;  %p388_p2 = scmp.eq.s32.totalorder %s6269_s25, 1 }
   0xc   : > { %p393_p3 = scmp.ne.s32.totalorder %s6149_s22, %s6145_s21  ;;  %p394_p4 = scmp.eq.s32.totalorder %s4447_s26, 1 }
   0xd   : > { %s6284_s30 = scalar_select %p375_p1, %s6153_s23, %s377_s28  }
   0xe   : > { %p6286_p5 = por %p388_p2, %p387_p0  ;;  %p6290_p6 = por %p394_p4, %p393_p3 }
   0xf   : > { %8632 = sst [smem:[#allocation11_spill]] %s6284_s30  ;;  %p4450_p7 = scmp.ge.s32.totalorder %s6157_s24, 1 }
  0x10   : > { %s8634_s17 = scalar_select %p6290_p6, 1, 0 }
  0x11   : > { %p467_p8 = scmp.lt.s32.totalorder %s6157_s24, 3 }
  0x12   : > { %8635 = sst [smem:[#allocation12_spill]] %s8634_s17 }
  0x13   : > { %p468_p9 = pnand %p4450_p7, %p467_p8 }
  0x14   : > { %v638_v0 = vld [vmem:[%s8603_s1 + $0x8] sm:$0xff] (!%p468_p9)  ;;  %v640_v1 = vld [vmem:[%s8603_s1 + $0x18] sm:$0xff] (!%p468_p9)  ;;  %v637_v2 = vld [vmem:[%s8603_s1] sm:$0xff] (!%p468_p9)  ;;  %s4452_s18 = sshll.u32 (!%p468_p9), %s6269_s25, 4  ;;  %s8636_s24 = sld [smem:[#allocation13_spill]] (!%p468_p9)  ;;  %vm1836_vm0 = vcmask (!%p468_p9), 785408  }
  0x15   : > { %471 = sbr.rel (%p468_p9) target bundleno = 2873 (0xb39), region = 84  ;;  %v5086_v3 = vpack.c.bf16 (!%p468_p9), %v640_v1, %v638_v0  ;;  %v639_v4 = vld [vmem:[%s8603_s1 + $0x10] sm:$0xff] (!%p468_p9)  ;;  %v642_v5 = vld [vmem:[%s8603_s1 + $0x28] sm:$0xff] (!%p468_p9)  ;;  %v644_v6 = vld [vmem:[%s8603_s1 + $0x38] sm:$0xff] (!%p468_p9)  ;;  %p519_p10 = scmp.lt.s32.totalorder (!%p468_p9), %s4452_s18, 31  ;;  %vm2108_vm1 = vcmask (!%p468_p9), 916480  }
  0x16   : > { %v5088_v7 = vpack.c.bf16 (!%p468_p9), %v639_v4, %v637_v2  ;;  %v5090_v8 = vpack.c.bf16 (!%p468_p9), %v644_v6, %v642_v5  ;;  %v641_v9 = vld [vmem:[%s8603_s1 + $0x20] sm:$0xff] (!%p468_p9)  ;;  %v643_v10 = vld [vmem:[%s8603_s1 + $0x30] sm:$0xff] (!%p468_p9)  ;;  %v646_v11 = vld [vmem:[%s8603_s1 + $0x48] sm:$0xff] (!%p468_p9)  ;;  %vm3083_vm2 = vcmask (!%p468_p9), 523264   ;;  %vm3319_vm3 = vcmask (!%p468_p9), 261120   ;;  %s515_s20 = sand.u32 (!%p468_p9), 1, %s6149_s22  }
  0x17   : > { %5087 = vmatprep.subr.bf16.mxu0 (!%p468_p9), %v5086_v3  ;;  %v648_v12 = vld [vmem:[%s8603_s1 + $0x58] sm:$0xff] (!%p468_p9)  ;;  %v5092_v13 = vpack.c.bf16 (!%p468_p9), %v643_v10, %v641_v9  ;;  %v645_v15 = vld [vmem:[%s8603_s1 + $0x40] sm:$0xff] (!%p468_p9)  ;;  %v647_v16 = vld [vmem:[%s8603_s1 + $0x50] sm:$0xff] (!%p468_p9)  ;;  %vm3527_vm4 = vcmask (!%p468_p9), 654336   ;;  %vm6161_vm5 = vmmov (!%p468_p9), 0   ;;  %s4451_s26 = sshll.u32 (!%p468_p9), %s515_s20, 2 }
  0x18   : > { %5089 = vmatpush1.bf16.msra.mxu0 (!%p468_p9), %v5088_v7  ;;  %v5094_v14 = vpack.c.bf16 (!%p468_p9), %v648_v12, %v646_v11  ;;  %v650_v17 = vld [vmem:[%s8603_s1 + $0x68] sm:$0xff] (!%p468_p9)  ;;  %v652_v18 = vld [vmem:[%s8603_s1 + $0x78] sm:$0xff] (!%p468_p9)  ;;  %v5096_v19 = vpack.c.bf16 (!%p468_p9), %v647_v16, %v645_v15  ;;  %v649_v21 = vld [vmem:[%s8603_s1 + $0x60] sm:$0xff] (!%p468_p9)  ;;  %s4763_s28 = sshll.u32 (!%p468_p9), %s6269_s25, 6  ;;  %s517_s29 = scalar_lea.vmem (!%p468_p9), [#allocation4], %s4451_s26 }
  0x19   : > { %5091 = vmatprep.subr.bf16.mxu0 (!%p468_p9), %v5090_v8  ;;  %v5098_v20 = vpack.c.bf16 (!%p468_p9), %v652_v18, %v650_v17  ;;  %v651_v22 = vld [vmem:[%s8603_s1 + $0x70] sm:$0xff] (!%p468_p9)  ;;  %v654_v23 = vld [vmem:[%s8603_s1 + $0x88] sm:$0xff] (!%p468_p9)  ;;  %v656_v24 = vld [vmem:[%s8603_s1 + $0x98] sm:$0xff] (!%p468_p9)  ;;  %s8637_s27 = sld [smem:[#allocation14_spill]] (!%p468_p9)  ;;  %s4375_s17 = scalar_lea.sflag (!%p468_p9), [#allocation5], %s515_s20 }
  0x1a   : > { %v5100_v25 = vpack.c.bf16 (!%p468_p9), %v651_v22, %v649_v21  ;;  %v5102_v26 = vpack.c.bf16 (!%p468_p9), %v656_v24, %v654_v23  ;;  %v653_v27 = vld [vmem:[%s8603_s1 + $0x80] sm:$0xff] (!%p468_p9)  ;;  %v655_v28 = vld [vmem:[%s8603_s1 + $0x90] sm:$0xff] (!%p468_p9)  ;;  %v658_v29 = vld [vmem:[%s8603_s1 + $0xa8] sm:$0xff] (!%p468_p9)  ;;  %s6162_s25 = smov (!%p468_p9), [#allocation4]  }
  0x1b   : > { %v660_v30 = vld [vmem:[%s8603_s1 + $0xb8] sm:$0xff] (!%p468_p9)  ;;  %v5104_v31 = vpack.c.bf16 (!%p468_p9), %v655_v28, %v653_v27  ;;  %v657_v33 = vld [vmem:[%s8603_s1 + $0xa0] sm:$0xff] (!%p468_p9)  ;;  %v659_v34 = vld [vmem:[%s8603_s1 + $0xb0] sm:$0xff] (!%p468_p9)  ;;  %s6099_s26 = sshll.u32 (!%p468_p9), %s6162_s25, 4  ;;  %s6100_s26 = int_to_ptr.vmem [resolvable:$false] %s6099_s26 }
  0x1c   : > { %5093 = vmatpush1.bf16.msra.mxu0 %v5092_v13  ;;  %s8647_s18 = smov (!%p519_p10, %s4452_s18), 31  ;;  %v5106_v32 = vpack.c.bf16 %v660_v30, %v658_v29  ;;  %v662_v35 = vld [vmem:[%s8603_s1 + $0xc8] sm:$0xff]  ;;  %v664_v36 = vld [vmem:[%s8603_s1 + $0xd8] sm:$0xff]  ;;  %v5108_v37 = vpack.c.bf16 %v659_v34, %v657_v33  ;;  %v661_v39 = vld [vmem:[%s8603_s1 + $0xc0] sm:$0xff] }
  0x1d   : > { %5095 = vmatprep.subr.bf16.mxu0 %v5094_v14  ;;  %s6052_s30 = smul.u32 56, %s8647_s18  ;;  %v5110_v38 = vpack.c.bf16 %v664_v36, %v662_v35  ;;  %v663_v40 = vld [vmem:[%s8603_s1 + $0xd0] sm:$0xff]  ;;  %v666_v42 = vld [vmem:[%s8603_s1 + $0xe8] sm:$0xff]  ;;  %v668_v43 = vld [vmem:[%s8603_s1 + $0xf8] sm:$0xff]  ;;  %s4388_s18 = sshll.u32 %s517_s29, 4  ;;  %s8562_s18 = int_to_ptr.vmem [resolvable:$true] %s4388_s18 }
  0x1e   : > { %v5112_v44 = vpack.c.bf16 %v663_v40, %v661_v39  ;;  %v5114_v45 = vpack.c.bf16 %v668_v43, %v666_v42  ;;  %v665_v46 = vld [vmem:[%s8603_s1 + $0xe0] sm:$0xff]  ;;  %v667_v47 = vld [vmem:[%s8603_s1 + $0xf0] sm:$0xff]  ;;  %v670_v48 = vld [vmem:[%s8603_s1 + $0x108] sm:$0xff]  ;;  %s6095_s19 = scalar_lea.vmem %s8562_s18, 64  ;;  %p6102_p0 = scmp.lt.s32.totalorder %s8562_s18, %s6100_s26 }
  0x1f   : > { %s6378_s16 = scalar_lea.vmem %s8636_s24, %s6052_s30  ;;  %v672_v49 = vld [vmem:[%s8603_s1 + $0x118] sm:$0xff]  ;;  %v5116_v50 = vpack.c.bf16 %v667_v47, %v665_v46  ;;  %v669_v52 = vld [vmem:[%s8603_s1 + $0x100] sm:$0xff]  ;;  %v671_v53 = vld [vmem:[%s8603_s1 + $0x110] sm:$0xff]  ;;  %p6096_p11 = scmp.ne.s32.totalorder %s8562_s18, %s6095_s19 }
  0x20   : > { %5097 = vmatpush1.bf16.msra.mxu0 %v5096_v19  ;;  %v526_v41 = vld [vmem:[%s6378_s16 + $0x8] sm:$0xff]  ;;  %v5118_v51 = vpack.c.bf16 %v672_v49, %v670_v48  ;;  %v676_v55 = vld [vmem:[%s8603_s1 + $0x138] sm:$0xff]  ;;  %v5120_v56 = vpack.c.bf16 %v671_v53, %v669_v52  ;;  %v673_v58 = vld [vmem:[%s8603_s1 + $0x120] sm:$0xff]  ;;  %s6101_s24 = scalar_lea.vmem %s6100_s26, 128 }
  0x21   : > { %5099 = vmatprep.subr.bf16.mxu0 %v5098_v20  ;;  %937 = vmatprep.mubr.f32.mxu0 %v526_v41  ;;  %v674_v54 = vld [vmem:[%s8603_s1 + $0x128] sm:$0xff]  ;;  %v675_v59 = vld [vmem:[%s8603_s1 + $0x130] sm:$0xff]  ;;  %v680_v61 = vld [vmem:[%s8603_s1 + $0x158] sm:$0xff]  ;;  %p6097_p12 = pnand %p6096_p11, %p6286_p5  ;;  %p6103_p1 = scmp.lt.s32.totalorder %s6101_s24, %s6095_s19 }
  0x22   : > { %v5122_v57 = vpack.c.bf16 %v676_v55, %v674_v54  ;;  %v678_v60 = vld [vmem:[%s8603_s1 + $0x148] sm:$0xff]  ;;  %v5124_v62 = vpack.c.bf16 %v675_v59, %v673_v58  ;;  %v677_v0 = vld [vmem:[%s8603_s1 + $0x140] sm:$0xff]  ;;  %v679_v1 = vld [vmem:[%s8603_s1 + $0x150] sm:$0xff] }
  0x23   : > { %v5126_v63 = vpack.c.bf16 %v680_v61, %v678_v60  ;;  %v682_v2 = vld [vmem:[%s8603_s1 + $0x168] sm:$0xff]  ;;  %v684_v3 = vld [vmem:[%s8603_s1 + $0x178] sm:$0xff]  ;;  %v5128_v4 = vpack.c.bf16 %v679_v1, %v677_v0  ;;  %v681_v6 = vld [vmem:[%s8603_s1 + $0x160] sm:$0xff]  ;;  %p6098_p13 = pneg %p6097_p12  ;;  %p6104_p2 = por %p6103_p1, %p6102_p0 }
  0x24   : > { %5101 = vmatpush1.bf16.msra.mxu0 %v5100_v25  ;;  %v5130_v5 = vpack.c.bf16 %v684_v3, %v682_v2  ;;  %v683_v7 = vld [vmem:[%s8603_s1 + $0x170] sm:$0xff]  ;;  %v686_v8 = vld [vmem:[%s8603_s1 + $0x188] sm:$0xff]  ;;  %v688_v9 = vld [vmem:[%s8603_s1 + $0x198] sm:$0xff] }
  0x25   : > { %5103 = vmatprep.subr.bf16.mxu0 %v5102_v26  ;;  %v5132_v10 = vpack.c.bf16 %v683_v7, %v681_v6  ;;  %v5134_v11 = vpack.c.bf16 %v688_v9, %v686_v8  ;;  %v685_v12 = vld [vmem:[%s8603_s1 + $0x180] sm:$0xff]  ;;  %v687_v13 = vld [vmem:[%s8603_s1 + $0x190] sm:$0xff]  ;;  %v690_v14 = vld [vmem:[%s8603_s1 + $0x1a8] sm:$0xff]  ;;  %p6105_p3 = pnand %p6104_p2, %p6098_p13 }
  0x26   : > { %v692_v15 = vld [vmem:[%s8603_s1 + $0x1b8] sm:$0xff]  ;;  %v5136_v16 = vpack.c.bf16 %v687_v13, %v685_v12  ;;  %v689_v18 = vld [vmem:[%s8603_s1 + $0x1a0] sm:$0xff]  ;;  %v691_v19 = vld [vmem:[%s8603_s1 + $0x1b0] sm:$0xff] }
  0x27   : > { %v5138_v17 = vpack.c.bf16 %v692_v15, %v690_v14  ;;  %v694_v20 = vld [vmem:[%s8603_s1 + $0x1c8] sm:$0xff]  ;;  %v696_v21 = vld [vmem:[%s8603_s1 + $0x1d8] sm:$0xff]  ;;  %v5140_v22 = vpack.c.bf16 %v691_v19, %v689_v18  ;;  %v693_v24 = vld [vmem:[%s8603_s1 + $0x1c0] sm:$0xff] }
  0x28   : > { %5105 = vmatpush1.bf16.msra.mxu0 %v5104_v31  ;;  %v5142_v23 = vpack.c.bf16 %v696_v21, %v694_v20  ;;  %v695_v25 = vld [vmem:[%s8603_s1 + $0x1d0] sm:$0xff]  ;;  %v698_v26 = vld [vmem:[%s8603_s1 + $0x1e8] sm:$0xff]  ;;  %v700_v27 = vld [vmem:[%s8603_s1 + $0x1f8] sm:$0xff] }
  0x29   : > { %5107 = vmatprep.subr.bf16.mxu0 %v5106_v32  ;;  %v5144_v28 = vpack.c.bf16 %v695_v25, %v693_v24  ;;  %v5146_v29 = vpack.c.bf16 %v700_v27, %v698_v26  ;;  %v697_v30 = vld [vmem:[%s8603_s1 + $0x1e0] sm:$0xff]  ;;  %v699_v31 = vld [vmem:[%s8603_s1 + $0x1f0] sm:$0xff]  ;;  %v702_v32 = vld [vmem:[%s8603_s1 + $0x208] sm:$0xff] }
  0x2a   : > { %v704_v33 = vld [vmem:[%s8603_s1 + $0x218] sm:$0xff]  ;;  %v5148_v34 = vpack.c.bf16 %v699_v31, %v697_v30  ;;  %v701_v36 = vld [vmem:[%s8603_s1 + $0x200] sm:$0xff]  ;;  %v710_v46 = vld [vmem:[%s8603_s1 + $0x248] sm:$0xff] }
  0x2b   : > { %v5150_v35 = vpack.c.bf16 %v704_v33, %v702_v32  ;;  %v708_v39 = vld [vmem:[%s8603_s1 + $0x238] sm:$0xff]  ;;  %v525_v40 = vld [vmem:[%s6378_s16] sm:$0xff]  ;;  %v711_v53 = vld [vmem:[%s8603_s1 + $0x250] sm:$0xff] }
  0x2c   : > { %5109 = vmatpush1.bf16.msra.mxu0 %v5108_v37  ;;  %v703_v37 = vld [vmem:[%s8603_s1 + $0x210] sm:$0xff]  ;;  %v533_v42 = vld [vmem:[%s6378_s16 + $0x40] sm:$0xff]  ;;  %v712_v47 = vld [vmem:[%s8603_s1 + $0x258] sm:$0xff] }
  0x2d   : > { %5111 = vmatprep.subr.bf16.mxu0 %v5110_v38  ;;  %v706_v38 = vld [vmem:[%s8603_s1 + $0x228] sm:$0xff]  ;;  %v5152_v41 = vpack.c.bf16 %v703_v37, %v701_v36  ;;  %v532_v48 = vld [vmem:[%s6378_s16 + $0x38] sm:$0xff]  ;;  %v709_v52 = vld [vmem:[%s8603_s1 + $0x240] sm:$0xff] }
  0x2e   : > { %v5154_v43 = vpack.c.bf16 %v708_v39, %v706_v38  ;;  %v714_v54 = vld [vmem:[%s8603_s1 + $0x268] sm:$0xff]  ;;  %v716_v55 = vld [vmem:[%s8603_s1 + $0x278] sm:$0xff]  ;;  %v547_v58 = vld [vmem:[%s6378_s16 + $0xb0] sm:$0xff] }
  0x2f   : > { %v5162_v59 = vpack.c.bf16 %v716_v55, %v714_v54  ;;  %v713_v60 = vld [vmem:[%s8603_s1 + $0x260] sm:$0xff]  ;;  %v715_v61 = vld [vmem:[%s8603_s1 + $0x270] sm:$0xff]  ;;  %v546_v0 = vld [vmem:[%s6378_s16 + $0xa8] sm:$0xff] }
  0x30   : > { %5113 = vmatpush1.bf16.msra.mxu0 %v5112_v44  ;;  %v705_v44 = vld [vmem:[%s8603_s1 + $0x220] sm:$0xff]  ;;  %v5164_v1 = vpack.c.bf16 %v715_v61, %v713_v60  ;;  %v554_v2 = vld [vmem:[%s6378_s16 + $0xe8] sm:$0xff]  ;;  %v724_v7 = vld [vmem:[%s8603_s1 + $0x2b8] sm:$0xff] }
  0x31   : > { %5115 = vmatprep.subr.bf16.mxu0 %v5114_v45  ;;  %v707_v45 = vld [vmem:[%s8603_s1 + $0x230] sm:$0xff]  ;;  %v722_v6 = vld [vmem:[%s8603_s1 + $0x2a8] sm:$0xff]  ;;  %v553_v8 = vld [vmem:[%s6378_s16 + $0xe0] sm:$0xff] }
  0x32   : > { %v5156_v49 = vpack.c.bf16 %v707_v45, %v705_v44  ;;  %v721_v12 = vld [vmem:[%s8603_s1 + $0x2a0] sm:$0xff]  ;;  %v723_v13 = vld [vmem:[%s8603_s1 + $0x2b0] sm:$0xff]  ;;  %v726_v14 = vld [vmem:[%s8603_s1 + $0x2c8] sm:$0xff] }
  0x33   : > { %v728_v15 = vld [vmem:[%s8603_s1 + $0x2d8] sm:$0xff]  ;;  %v725_v20 = vld [vmem:[%s8603_s1 + $0x2c0] sm:$0xff]  ;;  %v727_v21 = vld [vmem:[%s8603_s1 + $0x2d0] sm:$0xff] }
  0x34   : > { %5117 = vmatpush1.bf16.msra.mxu0 %v5116_v50  ;;  %v540_v50 = vld [vmem:[%s6378_s16 + $0x78] sm:$0xff]  ;;  %v5174_v19 = vpack.c.bf16 %v728_v15, %v726_v14  ;;  %v567_v24 = vld [vmem:[%s6378_s16 + $0x150] sm:$0xff]  ;;  %v5176_v25 = vpack.c.bf16 %v727_v21, %v725_v20  ;;  %v734_v30 = vld [vmem:[%s8603_s1 + $0x308] sm:$0xff] }
  0x35   : > { %5119 = vmatprep.subr.bf16.mxu0 %v5118_v51  ;;  %v5158_v51 = vpack.c.bf16 %v712_v47, %v710_v46  ;;  %v568_v18 = vld [vmem:[%s6378_s16 + $0x158] sm:$0xff]  ;;  %v575_v26 = vld [vmem:[%s6378_s16 + $0x190] sm:$0xff]  ;;  %v574_v32 = vld [vmem:[%s6378_s16 + $0x188] sm:$0xff] }
  0x36   : > { %v736_v31 = vld [vmem:[%s8603_s1 + $0x318] sm:$0xff]  ;;  %v733_v36 = vld [vmem:[%s8603_s1 + $0x300] sm:$0xff]  ;;  %v735_v37 = vld [vmem:[%s8603_s1 + $0x310] sm:$0xff] }
  0x37   : > { %v738_v38 = vld [vmem:[%s8603_s1 + $0x328] sm:$0xff]  ;;  %v740_v39 = vld [vmem:[%s8603_s1 + $0x338] sm:$0xff]  ;;  %v737_v44 = vld [vmem:[%s8603_s1 + $0x320] sm:$0xff] }
  0x38   : > { %5121 = vmatpush1.bf16.msra.mxu0 %v5120_v56  ;;  %v539_v56 = vld [vmem:[%s6378_s16 + $0x70] sm:$0xff]  ;;  %v742_v46 = vld [vmem:[%s8603_s1 + $0x348] sm:$0xff]  ;;  %v744_v47 = vld [vmem:[%s8603_s1 + $0x358] sm:$0xff] }
  0x39   : > { %5123 = vmatprep.subr.bf16.mxu0 %v5122_v57  ;;  %v5160_v57 = vpack.c.bf16 %v711_v53, %v709_v52  ;;  %v739_v45 = vld [vmem:[%s8603_s1 + $0x330] sm:$0xff]  ;;  %v741_v52 = vld [vmem:[%s8603_s1 + $0x340] sm:$0xff]  ;;  %v746_v54 = vld [vmem:[%s8603_s1 + $0x368] sm:$0xff] }
  0x3a   : > { %v743_v53 = vld [vmem:[%s8603_s1 + $0x350] sm:$0xff]  ;;  %v748_v55 = vld [vmem:[%s8603_s1 + $0x378] sm:$0xff]  ;;  %v745_v60 = vld [vmem:[%s8603_s1 + $0x360] sm:$0xff] }
  0x3b   : > { %v747_v61 = vld [vmem:[%s8603_s1 + $0x370] sm:$0xff]  ;;  %v758_v14 = vld [vmem:[%s8603_s1 + $0x3c8] sm:$0xff]  ;;  %v760_v15 = vld [vmem:[%s8603_s1 + $0x3d8] sm:$0xff] }
  0x3c   : > { %5125 = vmatpush1.bf16.msra.mxu0 %v5124_v62  ;;  %v718_v62 = vld [vmem:[%s8603_s1 + $0x288] sm:$0xff]  ;;  %v757_v20 = vld [vmem:[%s8603_s1 + $0x3c0] sm:$0xff]  ;;  %v759_v21 = vld [vmem:[%s8603_s1 + $0x3d0] sm:$0xff] }
  0x3d   : > { %5127 = vmatprep.subr.bf16.mxu0 %v5126_v63  ;;  %v720_v63 = vld [vmem:[%s8603_s1 + $0x298] sm:$0xff] }
  0x3e   : > { %v5166_v3 = vpack.c.bf16 %v720_v63, %v718_v62  ;;  %v750_v62 = vld [vmem:[%s8603_s1 + $0x388] sm:$0xff]  ;;  %v752_v63 = vld [vmem:[%s8603_s1 + $0x398] sm:$0xff] }
  0x40   : > { %5129 = vmatpush1.bf16.msra.mxu0 %v5128_v4  ;;  %v717_v4 = vld [vmem:[%s8603_s1 + $0x280] sm:$0xff] }
  0x41   : > { %5131 = vmatprep.subr.bf16.mxu0 %v5130_v5  ;;  %v719_v5 = vld [vmem:[%s8603_s1 + $0x290] sm:$0xff] }
  0x42   : > { %v5168_v9 = vpack.c.bf16 %v719_v5, %v717_v4  ;;  %v749_v4 = vld [vmem:[%s8603_s1 + $0x380] sm:$0xff]  ;;  %v751_v5 = vld [vmem:[%s8603_s1 + $0x390] sm:$0xff] }
  0x44   : > { %5133 = vmatpush1.bf16.msra.mxu0 %v5132_v10  ;;  %v561_v10 = vld [vmem:[%s6378_s16 + $0x120] sm:$0xff] }
  0x45   : > { %5135 = vmatprep.subr.bf16.mxu0 %v5134_v11  ;;  %v5170_v11 = vpack.c.bf16 %v724_v7, %v722_v6  ;;  %v754_v6 = vld [vmem:[%s8603_s1 + $0x3a8] sm:$0xff]  ;;  %v756_v7 = vld [vmem:[%s8603_s1 + $0x3b8] sm:$0xff] }
  0x48   : > { %5137 = vmatpush1.bf16.msra.mxu0 %v5136_v16  ;;  %v560_v16 = vld [vmem:[%s6378_s16 + $0x118] sm:$0xff] }
  0x49   : > { %5139 = vmatprep.subr.bf16.mxu0 %v5138_v17  ;;  %v5172_v17 = vpack.c.bf16 %v723_v13, %v721_v12  ;;  %v753_v12 = vld [vmem:[%s8603_s1 + $0x3a0] sm:$0xff]  ;;  %v755_v13 = vld [vmem:[%s8603_s1 + $0x3b0] sm:$0xff] }
  0x4c   : > { %5141 = vmatpush1.bf16.msra.mxu0 %v5140_v22  ;;  %v730_v22 = vld [vmem:[%s8603_s1 + $0x2e8] sm:$0xff] }
  0x4d   : > { %5143 = vmatprep.subr.bf16.mxu0 %v5142_v23  ;;  %v732_v23 = vld [vmem:[%s8603_s1 + $0x2f8] sm:$0xff] }
  0x4e   : > { %v5178_v27 = vpack.c.bf16 %v732_v23, %v730_v22  ;;  %v762_v22 = vld [vmem:[%s8603_s1 + $0x3e8] sm:$0xff]  ;;  %v764_v23 = vld [vmem:[%s8603_s1 + $0x3f8] sm:$0xff] }
  0x50   : > { %5145 = vmatpush1.bf16.msra.mxu0 %v5144_v28  ;;  %v729_v28 = vld [vmem:[%s8603_s1 + $0x2e0] sm:$0xff] }
  0x51   : > { %5147 = vmatprep.subr.bf16.mxu0 %v5146_v29  ;;  %v731_v29 = vld [vmem:[%s8603_s1 + $0x2f0] sm:$0xff] }
  0x52   : > { %v5180_v33 = vpack.c.bf16 %v731_v29, %v729_v28  ;;  %v761_v28 = vld [vmem:[%s8603_s1 + $0x3e0] sm:$0xff]  ;;  %v763_v29 = vld [vmem:[%s8603_s1 + $0x3f0] sm:$0xff] }
  0x54   : > { %5149 = vmatpush1.bf16.msra.mxu0 %v5148_v34  ;;  %v582_v34 = vld [vmem:[%s6378_s16 + $0x1c8] sm:$0xff] }
  0x55   : > { %5151 = vmatprep.subr.bf16.mxu0 %v5150_v35  ;;  %v5182_v35 = vpack.c.bf16 %v736_v31, %v734_v30  ;;  %v766_v30 = vld [vmem:[%s8603_s1 + $0x408] sm:$0xff]  ;;  %v768_v31 = vld [vmem:[%s8603_s1 + $0x418] sm:$0xff] }
  0x57   : > { %938 = vmatmul.mubr.f32.vlgmr.msra.gmra.mrb[0].mxu0 %v525_v40  ;;  %v581_v40 = vld [vmem:[%s6378_s16 + $0x1c0] sm:$0xff] }
  0x58   : > { %5153 = vmatpush1.bf16.msra.mxu0 %v5152_v41  ;;  %943 = vmatprep.mubr.f32.mxu0 %v533_v42  ;;  %v5184_v41 = vpack.c.bf16 %v735_v37, %v733_v36  ;;  %v589_v42 = vld [vmem:[%s6378_s16 + $0x200] sm:$0xff]  ;;  %v767_v37 = vld [vmem:[%s8603_s1 + $0x410] sm:$0xff] }
  0x59   : > { %5155 = vmatprep.subr.bf16.mxu0 %v5154_v43  ;;  %v5186_v43 = vpack.c.bf16 %v740_v39, %v738_v38  ;;  %v765_v36 = vld [vmem:[%s8603_s1 + $0x400] sm:$0xff]  ;;  %v770_v38 = vld [vmem:[%s8603_s1 + $0x428] sm:$0xff]  ;;  %v772_v39 = vld [vmem:[%s8603_s1 + $0x438] sm:$0xff] }
  0x5b   : > { %944 = vmatmul.mubr.f32.gmra.mrb[2].mxu0 %v532_v48  ;;  %v588_v48 = vld [vmem:[%s6378_s16 + $0x1f8] sm:$0xff] }
  0x5c   : > { %5157 = vmatpush1.bf16.msra.mxu0 %v5156_v49  ;;  %949 = vmatprep.mubr.f32.mxu0 %v540_v50  ;;  %v5188_v49 = vpack.c.bf16 %v739_v45, %v737_v44  ;;  %v596_v50 = vld [vmem:[%s6378_s16 + $0x238] sm:$0xff]  ;;  %v769_v44 = vld [vmem:[%s8603_s1 + $0x420] sm:$0xff]  ;;  %v771_v45 = vld [vmem:[%s8603_s1 + $0x430] sm:$0xff] }
  0x5d   : > { %5159 = vmatprep.subr.bf16.mxu0 %v5158_v51  ;;  %v5190_v51 = vpack.c.bf16 %v744_v47, %v742_v46  ;;  %v6159_v46 = vmov 0.0   ;;  %v774_v47 = vld [vmem:[%s8603_s1 + $0x448] sm:$0xff] }
  0x5e   : > { %1621 = vmatprep.mubr.f32.mxu1 %v6159_v46  ;;  %2117 = vst.msk [vmem:[#allocation2 + $0x40] sm:$0xff] %vm2108_vm1, %v6159_v46 }
  0x5f   : > { %950 = vmatmul.mubr.f32.gmra.mrb[4].mxu0 %v539_v56  ;;  %v595_v56 = vld [vmem:[%s6378_s16 + $0x230] sm:$0xff]  ;;  %3532 = vst.msk [vmem:[#allocation3 + $0x20] sm:$0xff] %vm3527_vm4, %v6159_v46 }
  0x60   : > { %5161 = vmatpush1.bf16.msra.mxu0 %v5160_v57  ;;  %955 = vmatprep.mubr.f32.mxu0 %v547_v58  ;;  %v5192_v57 = vpack.c.bf16 %v743_v53, %v741_v52  ;;  %v603_v58 = vld [vmem:[%s6378_s16 + $0x270] sm:$0xff]  ;;  %v773_v53 = vld [vmem:[%s8603_s1 + $0x440] sm:$0xff] }
  0x61   : > { %5163 = vmatprep.subr.bf16.mxu0 %v5162_v59  ;;  %v5194_v59 = vpack.c.bf16 %v748_v55, %v746_v54  ;;  %v775_v54 = vld [vmem:[%s8603_s1 + $0x450] sm:$0xff]  ;;  %v778_v55 = vld [vmem:[%s8603_s1 + $0x468] sm:$0xff] }
  0x63   : > { %956 = vmatmul.mubr.f32.gmra.mrb[6].mxu0 %v546_v0  ;;  %v602_v0 = vld [vmem:[%s6378_s16 + $0x268] sm:$0xff] }
  0x64   : > { %5165 = vmatpush1.bf16.msra.mxu0 %v5164_v1  ;;  %961 = vmatprep.mubr.f32.mxu0 %v554_v2  ;;  %v5196_v1 = vpack.c.bf16 %v747_v61, %v745_v60  ;;  %v610_v2 = vld [vmem:[%s6378_s16 + $0x2a8] sm:$0xff]  ;;  %v777_v61 = vld [vmem:[%s8603_s1 + $0x460] sm:$0xff] }
  0x65   : > { %5167 = vmatprep.subr.bf16.mxu0 %v5166_v3  ;;  %v5198_v3 = vpack.c.bf16 %v752_v63, %v750_v62  ;;  %v779_v62 = vld [vmem:[%s8603_s1 + $0x470] sm:$0xff]  ;;  %v782_v63 = vld [vmem:[%s8603_s1 + $0x488] sm:$0xff] }
  0x67   : > { %962 = vmatmul.mubr.f32.gmra.mrb[8].mxu0 %v553_v8  ;;  %v609_v8 = vld [vmem:[%s6378_s16 + $0x2a0] sm:$0xff] }
  0x68   : > { %5169 = vmatpush1.bf16.msra.mxu0 %v5168_v9  ;;  %967 = vmatprep.mubr.f32.mxu0 %v561_v10  ;;  %v5200_v9 = vpack.c.bf16 %v751_v5, %v749_v4  ;;  %v617_v10 = vld [vmem:[%s6378_s16 + $0x2e0] sm:$0xff] }
  0x69   : > { %5171 = vmatprep.subr.bf16.mxu0 %v5170_v11  ;;  %v5202_v11 = vpack.c.bf16 %v756_v7, %v754_v6  ;;  %v781_v5 = vld [vmem:[%s8603_s1 + $0x480] sm:$0xff]  ;;  %v783_v6 = vld [vmem:[%s8603_s1 + $0x490] sm:$0xff]  ;;  %v786_v7 = vld [vmem:[%s8603_s1 + $0x4a8] sm:$0xff] }
  0x6b   : > { %968 = vmatmul.mubr.f32.gmra.mrb[10].mxu0 %v560_v16  ;;  %v616_v16 = vld [vmem:[%s6378_s16 + $0x2d8] sm:$0xff] }
  0x6c   : > { %5173 = vmatpush1.bf16.msra.mxu0 %v5172_v17  ;;  %973 = vmatprep.mubr.f32.mxu0 %v568_v18  ;;  %v5204_v17 = vpack.c.bf16 %v755_v13, %v753_v12  ;;  %v624_v18 = vld [vmem:[%s6378_s16 + $0x318] sm:$0xff]  ;;  %v785_v13 = vld [vmem:[%s8603_s1 + $0x4a0] sm:$0xff] }
  0x6d   : > { %5175 = vmatprep.subr.bf16.mxu0 %v5174_v19  ;;  %v5206_v19 = vpack.c.bf16 %v760_v15, %v758_v14  ;;  %v787_v14 = vld [vmem:[%s8603_s1 + $0x4b0] sm:$0xff]  ;;  %v790_v15 = vld [vmem:[%s8603_s1 + $0x4c8] sm:$0xff] }
  0x6f   : > { %974 = vmatmul.mubr.f32.gmra.mrb[12].mxu0 %v567_v24  ;;  %v623_v24 = vld [vmem:[%s6378_s16 + $0x310] sm:$0xff] }
  0x70   : > { %5177 = vmatpush1.bf16.msra.mxu0 %v5176_v25  ;;  %979 = vmatprep.mubr.f32.mxu0 %v575_v26  ;;  %v5208_v25 = vpack.c.bf16 %v759_v21, %v757_v20  ;;  %v631_v26 = vld [vmem:[%s6378_s16 + $0x350] sm:$0xff]  ;;  %v789_v21 = vld [vmem:[%s8603_s1 + $0x4c0] sm:$0xff] }
  0x71   : > { %5179 = vmatprep.subr.bf16.mxu0 %v5178_v27  ;;  %v5210_v27 = vpack.c.bf16 %v764_v23, %v762_v22  ;;  %v791_v22 = vld [vmem:[%s8603_s1 + $0x4d0] sm:$0xff]  ;;  %v794_v23 = vld [vmem:[%s8603_s1 + $0x4e8] sm:$0xff] }
  0x73   : > { %980 = vmatmul.mubr.f32.gmra.mrb[14].mxu0 %v574_v32  ;;  %v630_v32 = vld [vmem:[%s6378_s16 + $0x348] sm:$0xff] }
  0x74   : > { %5181 = vmatpush1.bf16.msra.mxu0 %v5180_v33  ;;  %985 = vmatprep.mubr.f32.mxu0 %v582_v34  ;;  %v5212_v33 = vpack.c.bf16 %v763_v29, %v761_v28  ;;  %v528_v34 = vld [vmem:[%s6378_s16 + $0x18] sm:$0xff]  ;;  %v793_v29 = vld [vmem:[%s8603_s1 + $0x4e0] sm:$0xff] }
  0x75   : > { %5183 = vmatprep.subr.bf16.mxu0 %v5182_v35  ;;  %v5214_v35 = vpack.c.bf16 %v768_v31, %v766_v30  ;;  %v795_v30 = vld [vmem:[%s8603_s1 + $0x4f0] sm:$0xff]  ;;  %v798_v31 = vld [vmem:[%s8603_s1 + $0x508] sm:$0xff] }
  0x77   : > { %986 = vmatmul.mubr.f32.gmra.mrb[16].mxu0 %v581_v40  ;;  %v527_v40 = vld [vmem:[%s6378_s16 + $0x10] sm:$0xff] }
  0x78   : > { %5185 = vmatpush1.bf16.msra.mxu0 %v5184_v41  ;;  %991 = vmatprep.mubr.f32.mxu0 %v589_v42  ;;  %v5216_v41 = vpack.c.bf16 %v767_v37, %v765_v36  ;;  %v535_v42 = vld [vmem:[%s6378_s16 + $0x50] sm:$0xff]  ;;  %v797_v37 = vld [vmem:[%s8603_s1 + $0x500] sm:$0xff] }
  0x79   : > { %5187 = vmatprep.subr.bf16.mxu0 %v5186_v43  ;;  %v5218_v43 = vpack.c.bf16 %v772_v39, %v770_v38  ;;  %v799_v38 = vld [vmem:[%s8603_s1 + $0x510] sm:$0xff]  ;;  %v802_v39 = vld [vmem:[%s8603_s1 + $0x528] sm:$0xff] }
  0x7b   : > { %992 = vmatmul.mubr.f32.gmra.mrb[18].mxu0 %v588_v48  ;;  %v776_v48 = vld [vmem:[%s8603_s1 + $0x458] sm:$0xff] }
  0x7c   : > { %5189 = vmatpush1.bf16.msra.mxu0 %v5188_v49  ;;  %997 = vmatprep.mubr.f32.mxu0 %v596_v50  ;;  %v534_v49 = vld [vmem:[%s6378_s16 + $0x48] sm:$0xff]  ;;  %v5220_v50 = vpack.c.bf16 %v771_v45, %v769_v44  ;;  %v5222_v52 = vpack.c.bf16 %v776_v48, %v774_v47  ;;  %v801_v45 = vld [vmem:[%s8603_s1 + $0x520] sm:$0xff]  ;;  %v803_v47 = vld [vmem:[%s8603_s1 + $0x530] sm:$0xff] }
  0x7d   : > { %5191 = vmatprep.subr.bf16.mxu0 %v5190_v51  ;;  %v542_v51 = vld [vmem:[%s6378_s16 + $0x88] sm:$0xff] }
  0x7e   : > { %v806_v48 = vld [vmem:[%s8603_s1 + $0x548] sm:$0xff] }
  0x7f   : > { %998 = vmatmul.mubr.f32.gmra.mrb[20].mxu0 %v595_v56  ;;  %v780_v56 = vld [vmem:[%s8603_s1 + $0x478] sm:$0xff] }
  0x80   : > { %5193 = vmatpush1.bf16.msra.mxu0 %v5192_v57  ;;  %1003 = vmatprep.mubr.f32.mxu0 %v603_v58  ;;  %v541_v57 = vld [vmem:[%s6378_s16 + $0x80] sm:$0xff]  ;;  %v5224_v58 = vpack.c.bf16 %v775_v54, %v773_v53  ;;  %v5226_v60 = vpack.c.bf16 %v780_v56, %v778_v55  ;;  %v807_v55 = vld [vmem:[%s8603_s1 + $0x550] sm:$0xff]  ;;  %v810_v56 = vld [vmem:[%s8603_s1 + $0x568] sm:$0xff] }
  0x81   : > { %5195 = vmatprep.subr.bf16.mxu0 %v5194_v59  ;;  %v549_v59 = vld [vmem:[%s6378_s16 + $0xc0] sm:$0xff] }
  0x82   : > { %v805_v54 = vld [vmem:[%s8603_s1 + $0x540] sm:$0xff] }
  0x83   : > { %1004 = vmatmul.mubr.f32.gmra.mrb[22].mxu0 %v602_v0  ;;  %v784_v0 = vld [vmem:[%s8603_s1 + $0x498] sm:$0xff] }
  0x84   : > { %5197 = vmatpush1.bf16.msra.mxu0 %v5196_v1  ;;  %1009 = vmatprep.mubr.f32.mxu0 %v610_v2  ;;  %v548_v1 = vld [vmem:[%s6378_s16 + $0xb8] sm:$0xff]  ;;  %v5228_v2 = vpack.c.bf16 %v779_v62, %v777_v61  ;;  %v5230_v4 = vpack.c.bf16 %v784_v0, %v782_v63  ;;  %v809_v62 = vld [vmem:[%s8603_s1 + $0x560] sm:$0xff]  ;;  %v811_v63 = vld [vmem:[%s8603_s1 + $0x570] sm:$0xff] }
  0x85   : > { %5199 = vmatprep.subr.bf16.mxu0 %v5198_v3  ;;  %v556_v3 = vld [vmem:[%s6378_s16 + $0xf8] sm:$0xff]  ;;  %v814_v0 = vld [vmem:[%s8603_s1 + $0x588] sm:$0xff] }
  0x87   : > { %1010 = vmatmul.mubr.f32.gmra.mrb[24].mxu0 %v609_v8  ;;  %v788_v8 = vld [vmem:[%s8603_s1 + $0x4b8] sm:$0xff] }
  0x88   : > { %5201 = vmatpush1.bf16.msra.mxu0 %v5200_v9  ;;  %1015 = vmatprep.mubr.f32.mxu0 %v617_v10  ;;  %v555_v9 = vld [vmem:[%s6378_s16 + $0xf0] sm:$0xff]  ;;  %v5232_v10 = vpack.c.bf16 %v783_v6, %v781_v5  ;;  %v5234_v12 = vpack.c.bf16 %v788_v8, %v786_v7  ;;  %v813_v6 = vld [vmem:[%s8603_s1 + $0x580] sm:$0xff]  ;;  %v818_v8 = vld [vmem:[%s8603_s1 + $0x5a8] sm:$0xff] }
  0x89   : > { %5203 = vmatprep.subr.bf16.mxu0 %v5202_v11  ;;  %v563_v11 = vld [vmem:[%s6378_s16 + $0x130] sm:$0xff] }
  0x8a   : > { %v815_v7 = vld [vmem:[%s8603_s1 + $0x590] sm:$0xff] }
  0x8b   : > { %1016 = vmatmul.mubr.f32.gmra.mrb[26].mxu0 %v616_v16  ;;  %v792_v16 = vld [vmem:[%s8603_s1 + $0x4d8] sm:$0xff] }
  0x8c   : > { %5205 = vmatpush1.bf16.msra.mxu0 %v5204_v17  ;;  %1021 = vmatprep.mubr.f32.mxu0 %v624_v18  ;;  %v562_v17 = vld [vmem:[%s6378_s16 + $0x128] sm:$0xff]  ;;  %v5236_v18 = vpack.c.bf16 %v787_v14, %v785_v13  ;;  %v5238_v20 = vpack.c.bf16 %v792_v16, %v790_v15  ;;  %v817_v14 = vld [vmem:[%s8603_s1 + $0x5a0] sm:$0xff]  ;;  %v819_v15 = vld [vmem:[%s8603_s1 + $0x5b0] sm:$0xff] }
  0x8d   : > { %5207 = vmatprep.subr.bf16.mxu0 %v5206_v19  ;;  %v570_v19 = vld [vmem:[%s6378_s16 + $0x168] sm:$0xff] }
  0x8e   : > { %v822_v16 = vld [vmem:[%s8603_s1 + $0x5c8] sm:$0xff] }
  0x8f   : > { %1022 = vmatmul.mubr.f32.gmra.mrb[28].mxu0 %v623_v24  ;;  %v796_v24 = vld [vmem:[%s8603_s1 + $0x4f8] sm:$0xff] }
  0x90   : > { %5209 = vmatpush1.bf16.msra.mxu0 %v5208_v25  ;;  %1027 = vmatprep.mubr.f32.mxu0 %v631_v26  ;;  %v569_v25 = vld [vmem:[%s6378_s16 + $0x160] sm:$0xff]  ;;  %v5240_v26 = vpack.c.bf16 %v791_v22, %v789_v21  ;;  %v5242_v28 = vpack.c.bf16 %v796_v24, %v794_v23  ;;  %v823_v23 = vld [vmem:[%s8603_s1 + $0x5d0] sm:$0xff]  ;;  %v826_v24 = vld [vmem:[%s8603_s1 + $0x5e8] sm:$0xff] }
  0x91   : > { %5211 = vmatprep.subr.bf16.mxu0 %v5210_v27  ;;  %v577_v27 = vld [vmem:[%s6378_s16 + $0x1a0] sm:$0xff] }
  0x92   : > { %v821_v22 = vld [vmem:[%s8603_s1 + $0x5c0] sm:$0xff] }
  0x93   : > { %1028 = vmatmul.mubr.f32.gmra.mrb[30].mxu0 %v630_v32  ;;  %v800_v32 = vld [vmem:[%s8603_s1 + $0x518] sm:$0xff] }
  0x94   : > { %5213 = vmatpush1.bf16.msra.mxu0 %v5212_v33  ;;  %1098 = vmatprep.mubr.f32.mxu0 %v528_v34  ;;  %v576_v33 = vld [vmem:[%s6378_s16 + $0x198] sm:$0xff]  ;;  %v5244_v34 = vpack.c.bf16 %v795_v30, %v793_v29  ;;  %v5246_v36 = vpack.c.bf16 %v800_v32, %v798_v31  ;;  %v825_v30 = vld [vmem:[%s8603_s1 + $0x5e0] sm:$0xff]  ;;  %v827_v31 = vld [vmem:[%s8603_s1 + $0x5f0] sm:$0xff] }
  0x95   : > { %5215 = vmatprep.subr.bf16.mxu0 %v5214_v35  ;;  %v584_v35 = vld [vmem:[%s6378_s16 + $0x1d8] sm:$0xff]  ;;  %v830_v32 = vld [vmem:[%s8603_s1 + $0x608] sm:$0xff] }
  0x97   : > { %1099 = vmatmul.mubr.f32.vlgmr.msra.gmra.mrb[0].mxu0 %v527_v40  ;;  %v804_v40 = vld [vmem:[%s8603_s1 + $0x538] sm:$0xff] }
  0x98   : > { %5217 = vmatpush1.bf16.msra.mxu0 %v5216_v41  ;;  %1104 = vmatprep.mubr.f32.mxu0 %v535_v42  ;;  %v583_v41 = vld [vmem:[%s6378_s16 + $0x1d0] sm:$0xff]  ;;  %v5248_v42 = vpack.c.bf16 %v799_v38, %v797_v37  ;;  %v5250_v44 = vpack.c.bf16 %v804_v40, %v802_v39  ;;  %v829_v38 = vld [vmem:[%s8603_s1 + $0x600] sm:$0xff]  ;;  %v834_v40 = vld [vmem:[%s8603_s1 + $0x628] sm:$0xff] }
  0x99   : > { %5219 = vmatprep.subr.bf16.mxu0 %v5218_v43  ;;  %v591_v43 = vld [vmem:[%s6378_s16 + $0x210] sm:$0xff] }
  0x9a   : > { %v831_v39 = vld [vmem:[%s8603_s1 + $0x610] sm:$0xff] }
  0x9b   : > { %1105 = vmatmul.mubr.f32.gmra.mrb[2].mxu0 %v534_v49  ;;  %v808_v49 = vld [vmem:[%s8603_s1 + $0x558] sm:$0xff] }
  0x9c   : > { %5221 = vmatpush1.bf16.msra.mxu0 %v5220_v50  ;;  %1110 = vmatprep.mubr.f32.mxu0 %v542_v51  ;;  %v590_v50 = vld [vmem:[%s6378_s16 + $0x208] sm:$0xff]  ;;  %v5252_v51 = vpack.c.bf16 %v803_v47, %v801_v45  ;;  %v5254_v53 = vpack.c.bf16 %v808_v49, %v806_v48  ;;  %v833_v47 = vld [vmem:[%s8603_s1 + $0x620] sm:$0xff]  ;;  %v835_v48 = vld [vmem:[%s8603_s1 + $0x630] sm:$0xff] }
  0x9d   : > { %5223 = vmatprep.subr.bf16.mxu0 %v5222_v52  ;;  %v598_v52 = vld [vmem:[%s6378_s16 + $0x248] sm:$0xff] }
  0x9e   : > { %v838_v49 = vld [vmem:[%s8603_s1 + $0x648] sm:$0xff] }
  0x9f   : > { %1111 = vmatmul.mubr.f32.gmra.mrb[4].mxu0 %v541_v57  ;;  %v812_v57 = vld [vmem:[%s8603_s1 + $0x578] sm:$0xff] }
  0xa0   : > { %5225 = vmatpush1.bf16.msra.mxu0 %v5224_v58  ;;  %1116 = vmatprep.mubr.f32.mxu0 %v549_v59  ;;  %v597_v58 = vld [vmem:[%s6378_s16 + $0x240] sm:$0xff]  ;;  %v5256_v59 = vpack.c.bf16 %v807_v55, %v805_v54  ;;  %v5258_v61 = vpack.c.bf16 %v812_v57, %v810_v56  ;;  %v839_v56 = vld [vmem:[%s8603_s1 + $0x650] sm:$0xff]  ;;  %v842_v57 = vld [vmem:[%s8603_s1 + $0x668] sm:$0xff] }
  0xa1   : > { %5227 = vmatprep.subr.bf16.mxu0 %v5226_v60  ;;  %v605_v60 = vld [vmem:[%s6378_s16 + $0x280] sm:$0xff] }
  0xa2   : > { %v837_v55 = vld [vmem:[%s8603_s1 + $0x640] sm:$0xff] }
  0xa3   : > { %1117 = vmatmul.mubr.f32.gmra.mrb[6].mxu0 %v548_v1  ;;  %v816_v1 = vld [vmem:[%s8603_s1 + $0x598] sm:$0xff] }
  0xa4   : > { %5229 = vmatpush1.bf16.msra.mxu0 %v5228_v2  ;;  %1122 = vmatprep.mubr.f32.mxu0 %v556_v3  ;;  %v604_v2 = vld [vmem:[%s6378_s16 + $0x278] sm:$0xff]  ;;  %v5260_v3 = vpack.c.bf16 %v811_v63, %v809_v62  ;;  %v5262_v5 = vpack.c.bf16 %v816_v1, %v814_v0  ;;  %v841_v63 = vld [vmem:[%s8603_s1 + $0x660] sm:$0xff]  ;;  %v843_v0 = vld [vmem:[%s8603_s1 + $0x670] sm:$0xff] }
  0xa5   : > { %5231 = vmatprep.subr.bf16.mxu0 %v5230_v4  ;;  %v612_v4 = vld [vmem:[%s6378_s16 + $0x2b8] sm:$0xff]  ;;  %v846_v1 = vld [vmem:[%s8603_s1 + $0x688] sm:$0xff] }
  0xa7   : > { %1123 = vmatmul.mubr.f32.gmra.mrb[8].mxu0 %v555_v9  ;;  %v820_v9 = vld [vmem:[%s8603_s1 + $0x5b8] sm:$0xff] }
  0xa8   : > { %5233 = vmatpush1.bf16.msra.mxu0 %v5232_v10  ;;  %1128 = vmatprep.mubr.f32.mxu0 %v563_v11  ;;  %v611_v10 = vld [vmem:[%s6378_s16 + $0x2b0] sm:$0xff]  ;;  %v5264_v11 = vpack.c.bf16 %v815_v7, %v813_v6  ;;  %v5266_v13 = vpack.c.bf16 %v820_v9, %v818_v8  ;;  %v845_v7 = vld [vmem:[%s8603_s1 + $0x680] sm:$0xff]  ;;  %v850_v9 = vld [vmem:[%s8603_s1 + $0x6a8] sm:$0xff] }
  0xa9   : > { %5235 = vmatprep.subr.bf16.mxu0 %v5234_v12  ;;  %v619_v12 = vld [vmem:[%s6378_s16 + $0x2f0] sm:$0xff] }
  0xaa   : > { %v847_v8 = vld [vmem:[%s8603_s1 + $0x690] sm:$0xff] }
  0xab   : > { %1129 = vmatmul.mubr.f32.gmra.mrb[10].mxu0 %v562_v17  ;;  %v824_v17 = vld [vmem:[%s8603_s1 + $0x5d8] sm:$0xff] }
  0xac   : > { %5237 = vmatpush1.bf16.msra.mxu0 %v5236_v18  ;;  %1134 = vmatprep.mubr.f32.mxu0 %v570_v19  ;;  %v618_v18 = vld [vmem:[%s6378_s16 + $0x2e8] sm:$0xff]  ;;  %v5268_v19 = vpack.c.bf16 %v819_v15, %v817_v14  ;;  %v5270_v21 = vpack.c.bf16 %v824_v17, %v822_v16  ;;  %v849_v15 = vld [vmem:[%s8603_s1 + $0x6a0] sm:$0xff]  ;;  %v851_v16 = vld [vmem:[%s8603_s1 + $0x6b0] sm:$0xff] }
  0xad   : > { %5239 = vmatprep.subr.bf16.mxu0 %v5238_v20  ;;  %v626_v20 = vld [vmem:[%s6378_s16 + $0x328] sm:$0xff] }
  0xae   : > { %v854_v17 = vld [vmem:[%s8603_s1 + $0x6c8] sm:$0xff] }
  0xaf   : > { %1135 = vmatmul.mubr.f32.gmra.mrb[12].mxu0 %v569_v25  ;;  %v828_v25 = vld [vmem:[%s8603_s1 + $0x5f8] sm:$0xff] }
  0xb0   : > { %5241 = vmatpush1.bf16.msra.mxu0 %v5240_v26  ;;  %1140 = vmatprep.mubr.f32.mxu0 %v577_v27  ;;  %v625_v26 = vld [vmem:[%s6378_s16 + $0x320] sm:$0xff]  ;;  %v5272_v27 = vpack.c.bf16 %v823_v23, %v821_v22  ;;  %v5274_v29 = vpack.c.bf16 %v828_v25, %v826_v24  ;;  %v855_v24 = vld [vmem:[%s8603_s1 + $0x6d0] sm:$0xff]  ;;  %v858_v25 = vld [vmem:[%s8603_s1 + $0x6e8] sm:$0xff] }
  0xb1   : > { %5243 = vmatprep.subr.bf16.mxu0 %v5242_v28  ;;  %v633_v28 = vld [vmem:[%s6378_s16 + $0x360] sm:$0xff] }
  0xb2   : > { %v853_v23 = vld [vmem:[%s8603_s1 + $0x6c0] sm:$0xff] }
  0xb3   : > { %1141 = vmatmul.mubr.f32.gmra.mrb[14].mxu0 %v576_v33  ;;  %v832_v33 = vld [vmem:[%s8603_s1 + $0x618] sm:$0xff] }
  0xb4   : > { %5245 = vmatpush1.bf16.msra.mxu0 %v5244_v34  ;;  %1146 = vmatprep.mubr.f32.mxu0 %v584_v35  ;;  %v632_v34 = vld [vmem:[%s6378_s16 + $0x358] sm:$0xff]  ;;  %v5276_v35 = vpack.c.bf16 %v827_v31, %v825_v30  ;;  %v5278_v37 = vpack.c.bf16 %v832_v33, %v830_v32  ;;  %v857_v31 = vld [vmem:[%s8603_s1 + $0x6e0] sm:$0xff]  ;;  %v859_v32 = vld [vmem:[%s8603_s1 + $0x6f0] sm:$0xff] }
  0xb5   : > { %5247 = vmatprep.subr.bf16.mxu0 %v5246_v36  ;;  %v530_v36 = vld [vmem:[%s6378_s16 + $0x28] sm:$0xff] }
  0xb6   : > { %v578_v33 = vld [vmem:[%s6378_s16 + $0x1a8] sm:$0xff] }
  0xb7   : > { %1147 = vmatmul.mubr.f32.gmra.mrb[16].mxu0 %v583_v41  ;;  %v836_v41 = vld [vmem:[%s8603_s1 + $0x638] sm:$0xff] }
  0xb8   : > { %5249 = vmatpush1.bf16.msra.mxu0 %v5248_v42  ;;  %1152 = vmatprep.mubr.f32.mxu0 %v591_v43  ;;  %v529_v42 = vld [vmem:[%s6378_s16 + $0x20] sm:$0xff]  ;;  %v5280_v43 = vpack.c.bf16 %v831_v39, %v829_v38  ;;  %v5282_v45 = vpack.c.bf16 %v836_v41, %v834_v40  ;;  %v592_v38 = vld [vmem:[%s6378_s16 + $0x218] sm:$0xff]  ;;  %v599_v40 = vld [vmem:[%s6378_s16 + $0x250] sm:$0xff] }
  0xb9   : > { %5251 = vmatprep.subr.bf16.mxu0 %v5250_v44  ;;  %v537_v44 = vld [vmem:[%s6378_s16 + $0x60] sm:$0xff]  ;;  %v600_v39 = vld [vmem:[%s6378_s16 + $0x258] sm:$0xff]  ;;  %v607_v41 = vld [vmem:[%s6378_s16 + $0x290] sm:$0xff] }
  0xbb   : > { %1153 = vmatmul.mubr.f32.gmra.mrb[18].mxu0 %v590_v50  ;;  %v840_v50 = vld [vmem:[%s8603_s1 + $0x658] sm:$0xff] }
  0xbc   : > { %5253 = vmatpush1.bf16.msra.mxu0 %v5252_v51  ;;  %1158 = vmatprep.mubr.f32.mxu0 %v598_v52  ;;  %v536_v51 = vld [vmem:[%s6378_s16 + $0x58] sm:$0xff]  ;;  %v5284_v52 = vpack.c.bf16 %v835_v48, %v833_v47  ;;  %v5286_v54 = vpack.c.bf16 %v840_v50, %v838_v49  ;;  %v627_v49 = vld [vmem:[%s6378_s16 + $0x330] sm:$0xff] }
  0xbd   : > { %5255 = vmatprep.subr.bf16.mxu0 %v5254_v53  ;;  %v544_v53 = vld [vmem:[%s6378_s16 + $0x98] sm:$0xff]  ;;  %v635_v50 = vld [vmem:[%s6378_s16 + $0x370] sm:$0xff] }
  0xbe   : > { %v620_v47 = vld [vmem:[%s6378_s16 + $0x2f8] sm:$0xff] }
  0xbf   : > { %1159 = vmatmul.mubr.f32.gmra.mrb[20].mxu0 %v597_v58  ;;  %v844_v58 = vld [vmem:[%s8603_s1 + $0x678] sm:$0xff] }
  0xc0   : > { %5257 = vmatpush1.bf16.msra.mxu0 %v5256_v59  ;;  %1164 = vmatprep.mubr.f32.mxu0 %v605_v60  ;;  %v543_v59 = vld [vmem:[%s6378_s16 + $0x90] sm:$0xff]  ;;  %v5288_v60 = vpack.c.bf16 %v839_v56, %v837_v55  ;;  %v5290_v62 = vpack.c.bf16 %v844_v58, %v842_v57  ;;  %v628_v48 = vld [vmem:[%s6378_s16 + $0x338] sm:$0xff]  ;;  %v566_v57 = vld [vmem:[%s6378_s16 + $0x148] sm:$0xff] }
  0xc1   : > { %5259 = vmatprep.subr.bf16.mxu0 %v5258_v61  ;;  %v551_v61 = vld [vmem:[%s6378_s16 + $0xd0] sm:$0xff]  ;;  %v552_v55 = vld [vmem:[%s6378_s16 + $0xd8] sm:$0xff]  ;;  %v573_v58 = vld [vmem:[%s6378_s16 + $0x180] sm:$0xff] }
  0xc2   : > { %v559_v56 = vld [vmem:[%s6378_s16 + $0x110] sm:$0xff] }
  0xc3   : > { %1165 = vmatmul.mubr.f32.gmra.mrb[22].mxu0 %v604_v2  ;;  %v848_v2 = vld [vmem:[%s8603_s1 + $0x698] sm:$0xff] }
  0xc4   : > { %5261 = vmatpush1.bf16.msra.mxu0 %v5260_v3  ;;  %1170 = vmatprep.mubr.f32.mxu0 %v612_v4  ;;  %v550_v3 = vld [vmem:[%s6378_s16 + $0xc8] sm:$0xff]  ;;  %v5292_v4 = vpack.c.bf16 %v843_v0, %v841_v63  ;;  %v5294_v6 = vpack.c.bf16 %v848_v2, %v846_v1  ;;  %v608_v63 = vld [vmem:[%s6378_s16 + $0x298] sm:$0xff]  ;;  %v615_v0 = vld [vmem:[%s6378_s16 + $0x2d0] sm:$0xff] }
  0xc5   : > { %5263 = vmatprep.subr.bf16.mxu0 %v5262_v5  ;;  %v558_v5 = vld [vmem:[%s6378_s16 + $0x108] sm:$0xff]  ;;  %v629_v2 = vld [vmem:[%s6378_s16 + $0x340] sm:$0xff] }
  0xc6   : > { %v622_v1 = vld [vmem:[%s6378_s16 + $0x308] sm:$0xff] }
  0xc7   : > { %1171 = vmatmul.mubr.f32.gmra.mrb[24].mxu0 %v611_v10  ;;  %v852_v10 = vld [vmem:[%s8603_s1 + $0x6b8] sm:$0xff] }
  0xc8   : > { %5265 = vmatpush1.bf16.msra.mxu0 %v5264_v11  ;;  %1176 = vmatprep.mubr.f32.mxu0 %v619_v12  ;;  %v557_v11 = vld [vmem:[%s6378_s16 + $0x100] sm:$0xff]  ;;  %v5296_v12 = vpack.c.bf16 %v847_v8, %v845_v7  ;;  %v5298_v14 = vpack.c.bf16 %v852_v10, %v850_v9 }
  0xc9   : > { %5267 = vmatprep.subr.bf16.mxu0 %v5266_v13  ;;  %v565_v13 = vld [vmem:[%s6378_s16 + $0x140] sm:$0xff] }
  0xca   : > { %v861_v7 = vld [vmem:[%s8604_s2] sm:$0x3] }
  0xcb   : > { %1177 = vmatmul.mubr.f32.gmra.mrb[26].mxu0 %v618_v18  ;;  %v856_v18 = vld [vmem:[%s8603_s1 + $0x6d8] sm:$0xff] }
  0xcc   : > { %5269 = vmatpush1.bf16.msra.mxu0 %v5268_v19  ;;  %1182 = vmatprep.mubr.f32.mxu0 %v626_v20  ;;  %v564_v19 = vld [vmem:[%s6378_s16 + $0x138] sm:$0xff]  ;;  %v5300_v20 = vpack.c.bf16 %v851_v16, %v849_v15  ;;  %v5302_v22 = vpack.c.bf16 %v856_v18, %v854_v17 }
  0xcd   : > { %5271 = vmatprep.subr.bf16.mxu0 %v5270_v21  ;;  %v572_v21 = vld [vmem:[%s6378_s16 + $0x178] sm:$0xff] }
  0xcf   : > { %1183 = vmatmul.mubr.f32.gmra.mrb[28].mxu0 %v625_v26  ;;  %v860_v26 = vld [vmem:[%s8603_s1 + $0x6f8] sm:$0xff] }
  0xd0   : > { %5273 = vmatpush1.bf16.msra.mxu0 %v5272_v27  ;;  %1188 = vmatprep.mubr.f32.mxu0 %v633_v28  ;;  %v571_v27 = vld [vmem:[%s6378_s16 + $0x170] sm:$0xff]  ;;  %v5304_v28 = vpack.c.bf16 %v855_v24, %v853_v23  ;;  %v5306_v30 = vpack.c.bf16 %v860_v26, %v858_v25 }
  0xd1   : > { %5275 = vmatprep.subr.bf16.mxu0 %v5274_v29  ;;  %v579_v29 = vld [vmem:[%s6378_s16 + $0x1b0] sm:$0xff] }
  0xd3   : > { %1189 = vmatmul.mubr.f32.gmra.mrb[30].mxu0 %v632_v34  ;;  %v5308_v34 = vpack.c.bf16 %v859_v32, %v857_v31 }
  0xd4   : > { %5277 = vmatpush1.bf16.msra.mxu0 %v5276_v35  ;;  %1259 = vmatprep.mubr.f32.mxu0 %v530_v36  ;;  %v586_v35 = vld [vmem:[%s6378_s16 + $0x1e8] sm:$0xff]  ;;  %v585_v36 = vld [vmem:[%s6378_s16 + $0x1e0] sm:$0xff] }
  0xd5   : > { %5279 = vmatprep.subr.bf16.mxu0 %v5278_v37  ;;  %v593_v37 = vld [vmem:[%s6378_s16 + $0x220] sm:$0xff] }
  0xd7   : > { %1260 = vmatmul.mubr.f32.vlgmr.msra.gmra.mrb[0].mxu0 %v529_v42  ;;  %v606_v42 = vld [vmem:[%s6378_s16 + $0x288] sm:$0xff] }
  0xd8   : > { %1265 = vmatprep.mubr.f32.mxu0 %v537_v44  ;;  %5281 = vmatpush1.bf16.msra.mxu0 %v5280_v43  ;;  %v614_v43 = vld [vmem:[%s6378_s16 + $0x2c8] sm:$0xff]  ;;  %v613_v44 = vld [vmem:[%s6378_s16 + $0x2c0] sm:$0xff] }
  0xd9   : > { %5283 = vmatprep.subr.bf16.mxu0 %v5282_v45  ;;  %v621_v45 = vld [vmem:[%s6378_s16 + $0x300] sm:$0xff] }
  0xdb   : > { %1266 = vmatmul.mubr.f32.gmra.mrb[2].mxu0 %v536_v51  ;;  %v634_v51 = vld [vmem:[%s6378_s16 + $0x368] sm:$0xff] }
  0xdc   : > { %1271 = vmatprep.mubr.f32.mxu0 %v544_v53  ;;  %5285 = vmatpush1.bf16.msra.mxu0 %v5284_v52  ;;  %v531_v52 = vld [vmem:[%s6378_s16 + $0x30] sm:$0xff]  ;;  %v538_v53 = vld [vmem:[%s6378_s16 + $0x68] sm:$0xff] }
  0xdd   : > { %5287 = vmatprep.subr.bf16.mxu0 %v5286_v54  ;;  %v545_v54 = vld [vmem:[%s6378_s16 + $0xa0] sm:$0xff] }
  0xdf   : > { %1272 = vmatmul.mubr.f32.gmra.mrb[4].mxu0 %v543_v59  ;;  %v580_v59 = vld [vmem:[%s6378_s16 + $0x1b8] sm:$0xff] }
  0xe0   : > { %1277 = vmatprep.mubr.f32.mxu0 %v551_v61  ;;  %5289 = vmatpush1.bf16.msra.mxu0 %v5288_v60  ;;  %v587_v60 = vld [vmem:[%s6378_s16 + $0x1f0] sm:$0xff]  ;;  %v594_v61 = vld [vmem:[%s6378_s16 + $0x228] sm:$0xff] }
  0xe1   : > { %5291 = vmatprep.subr.bf16.mxu0 %v5290_v62  ;;  %v601_v62 = vld [vmem:[%s6378_s16 + $0x260] sm:$0xff] }
  0xe3   : > { %1278 = vmatmul.mubr.f32.gmra.mrb[6].mxu0 %v550_v3  ;;  %v636_v3 = vld [vmem:[%s6378_s16 + $0x378] sm:$0xff]  ;;  %s8560_s16 = scalar_lea.hbm %s8637_s27, %s4763_s28 }
  0xe4   : > { %1283 = vmatprep.mubr.f32.mxu0 %v558_v5  ;;  %5293 = vmatpush1.bf16.msra.mxu0 %v5292_v4  ;;  %v863_v4 = vlaneseq }
  0xe5   : > { %5295 = vmatprep.subr.bf16.mxu0 %v5294_v6 }
  0xe6   : > { %v7104_v5 = vshrl.u32 %v863_v4, 7 }
  0xe7   : > { %1284 = vmatmul.mubr.f32.gmra.mrb[8].mxu0 %v557_v11 }
  0xe8   : > { %1289 = vmatprep.mubr.f32.mxu0 %v565_v13  ;;  %5297 = vmatpush1.bf16.msra.mxu0 %v5296_v12  ;;  %v865_v6 = vsub.s32 0, %v7104_v5  ;;  %v869_v8 = vsub.s32 1, %v7104_v5 }
  0xe9   : > { %5299 = vmatprep.subr.bf16.mxu0 %v5298_v14 }
  0xea   : > { %v7113_v9 = vrot.slane %v861_v7, %v865_v6  ;;  %v7117_v11 = vrot.slane %v861_v7, %v869_v8 }
  0xeb   : > { %1290 = vmatmul.mubr.f32.gmra.mrb[10].mxu0 %v564_v19 }
  0xec   : > { %1295 = vmatprep.mubr.f32.mxu0 %v572_v21  ;;  %5301 = vmatpush1.bf16.msra.mxu0 %v5300_v20 }
  0xed   : > { %5303 = vmatprep.subr.bf16.mxu0 %v5302_v22 }
  0xef   : > { %1296 = vmatmul.mubr.f32.gmra.mrb[12].mxu0 %v571_v27 }
  0xf0   : > { %1301 = vmatprep.mubr.f32.mxu0 %v579_v29  ;;  %5305 = vmatpush1.bf16.msra.mxu0 %v5304_v28 }
  0xf1   : > { %5307 = vmatprep.subr.bf16.mxu0 %v5306_v30 }
  0xf3   : > { %1302 = vmatmul.mubr.f32.gmra.mrb[14].mxu0 %v578_v33 }
  0xf4   : > { %1307 = vmatprep.mubr.f32.mxu0 %v586_v35  ;;  %5309 = vmatpush1.bf16.msra.mxu0 %v5308_v34 }
  0xf7   : > { %1308 = vmatmul.mubr.f32.gmra.mrb[16].mxu0 %v585_v36 }
  0xf8   : > { %1313 = vmatprep.mubr.f32.mxu0 %v593_v37 }
  0xfb   : > { %1314 = vmatmul.mubr.f32.gmra.mrb[18].mxu0 %v592_v38 }
  0xfc   : > { %1319 = vmatprep.mubr.f32.mxu0 %v600_v39 }
  0xff   : > { %1320 = vmatmul.mubr.f32.gmra.mrb[20].mxu0 %v599_v40 }
 0x100   : > { %1325 = vmatprep.mubr.f32.mxu0 %v607_v41 }
 0x103   : > { %1326 = vmatmul.mubr.f32.gmra.mrb[22].mxu0 %v606_v42 }
 0x104   : > { %1331 = vmatprep.mubr.f32.mxu0 %v614_v43 }
 0x107   : > { %1332 = vmatmul.mubr.f32.gmra.mrb[24].mxu0 %v613_v44 }
 0x108   : > { %1337 = vmatprep.mubr.f32.mxu0 %v621_v45 }
 0x10b   : > { %1338 = vmatmul.mubr.f32.gmra.mrb[26].mxu0 %v620_v47 }
 0x10c   : > { %1343 = vmatprep.mubr.f32.mxu0 %v628_v48 }
 0x10f   : > { %1344 = vmatmul.mubr.f32.gmra.mrb[28].mxu0 %v627_v49 }
 0x110   : > { %1349 = vmatprep.mubr.f32.mxu0 %v635_v50 }
 0x113   : > { %1350 = vmatmul.mubr.f32.gmra.mrb[30].mxu0 %v634_v51 }
 0x114   : > { %1420 = vmatprep.mubr.f32.mxu0 %v6159_v46 }
 0x117   : > { %1421 = vmatmul.mubr.f32.vlgmr.msra.gmra.mrb[0].mxu0 %v531_v52 }
 0x118   : > { %1426 = vmatprep.mubr.f32.mxu0 %v6159_v46 }
 0x11b   : > { %1427 = vmatmul.mubr.f32.gmra.mrb[2].mxu0 %v538_v53 }
 0x11c   : > { %1432 = vmatprep.mubr.f32.mxu0 %v6159_v46 }
 0x11f   : > { %1433 = vmatmul.mubr.f32.gmra.mrb[4].mxu0 %v545_v54 }
 0x120   : > { %1438 = vmatprep.mubr.f32.mxu0 %v6159_v46 }
 0x123   : > { %1439 = vmatmul.mubr.f32.gmra.mrb[6].mxu0 %v552_v55 }
 0x124   : > { %1444 = vmatprep.mubr.f32.mxu0 %v6159_v46 }
 0x127   : > { %1445 = vmatmul.mubr.f32.gmra.mrb[8].mxu0 %v559_v56 }
 0x128   : > { %1450 = vmatprep.mubr.f32.mxu0 %v6159_v46 }
 0x12b   : > { %1451 = vmatmul.mubr.f32.gmra.mrb[10].mxu0 %v566_v57 }
 0x12c   : > { %1456 = vmatprep.mubr.f32.mxu0 %v6159_v46 }
 0x12f   : > { %1457 = vmatmul.mubr.f32.gmra.mrb[12].mxu0 %v573_v58 }
 0x130   : > { %1462 = vmatprep.mubr.f32.mxu0 %v6159_v46 }
 0x133   : > { %1463 = vmatmul.mubr.f32.gmra.mrb[14].mxu0 %v580_v59 }
 0x134   : > { %1468 = vmatprep.mubr.f32.mxu0 %v6159_v46 }
 0x137   : > { %1469 = vmatmul.mubr.f32.gmra.mrb[16].mxu0 %v587_v60 }
 0x138   : > { %1474 = vmatprep.mubr.f32.mxu0 %v6159_v46 }
 0x13b   : > { %1475 = vmatmul.mubr.f32.gmra.mrb[18].mxu0 %v594_v61 }
 0x13c   : > { %1480 = vmatprep.mubr.f32.mxu0 %v6159_v46 }
 0x13f   : > { %1481 = vmatmul.mubr.f32.gmra.mrb[20].mxu0 %v601_v62 }
 0x140   : > { %1486 = vmatprep.mubr.f32.mxu0 %v6159_v46 }
 0x143   : > { %1487 = vmatmul.mubr.f32.gmra.mrb[22].mxu0 %v608_v63 }
 0x144   : > { %1492 = vmatprep.mubr.f32.mxu0 %v6159_v46 }
 0x147   : > { %1493 = vmatmul.mubr.f32.gmra.mrb[24].mxu0 %v615_v0 }
 0x148   : > { %1498 = vmatprep.mubr.f32.mxu0 %v6159_v46 }
 0x14b   : > { %1499 = vmatmul.mubr.f32.gmra.mrb[26].mxu0 %v622_v1 }
 0x14c   : > { %1504 = vmatprep.mubr.f32.mxu0 %v6159_v46 }
 0x14f   : > { %1505 = vmatmul.mubr.f32.gmra.mrb[28].mxu0 %v629_v2 }
 0x150   : > { %1510 = vmatprep.mubr.f32.mxu0 %v6159_v46 }
 0x153   : > { %1511 = vmatmul.mubr.f32.gmra.mrb[30].mxu0 %v636_v3 }
 0x154   : > { %3160 = vmatprep.mubr.f32.mxu0 %v6159_v46 }
 0x1ea   : > { %v1422_v10 = vpop.f32.mrb[0].mxu0 }
 0x1eb   : > { %v1424_v12 = vpop.f32.mrb[1].mxu0  ;;  %v5844_v13 = vadd.f32 %v1422_v10, %v7113_v9 }
 0x1ec   : > { %v5845_v14 = vadd.f32 %v1424_v12, %v7117_v11 }
 0x1ed   : > { %v1517_v19 = vmax.f32 %v5844_v13, 0.0 }
 0x1ee   : > { %v1428_v15 = vpop.f32.mrb[2].mxu0  ;;  %v1518_v21 = vmax.f32 %v5845_v14, 0.0 }
 0x1ef   : > { %v5846_v16 = vadd.f32 %v1428_v15, %v7113_v9  ;;  %v1430_v17 = vpop.f32.mrb[3].mxu0 }
 0x1f0   : > { %v5847_v18 = vadd.f32 %v1430_v17, %v7117_v11 }
 0x1f1   : > { %v1519_v20 = vmax.f32 %v5846_v16, 0.0 }
 0x1f2   : > { %v1520_v22 = vmax.f32 %v5847_v18, 0.0  ;;  %v1434_v23 = vpop.f32.mrb[4].mxu0 }
 0x1f3   : > { %v1436_v24 = vpop.f32.mrb[5].mxu0  ;;  %v7123_v25 = vpack.c.bf16 %v1519_v20, %v1517_v19  ;;  %v5848_v27 = vadd.f32 %v1434_v23, %v7113_v9 }
 0x1f4   : > { %v7125_v26 = vpack.c.bf16 %v1520_v22, %v1518_v21  ;;  %v5849_v28 = vadd.f32 %v1436_v24, %v7117_v11 }
 0x1f5   : > { %v1521_v33 = vmax.f32 %v5848_v27, 0.0 }
 0x1f6   : > { %v1440_v29 = vpop.f32.mrb[6].mxu0  ;;  %5311 = vmatprep.subr.bf16.mxu1 %v7125_v26  ;;  %v1522_v35 = vmax.f32 %v5849_v28, 0.0 }
 0x1f7   : > { %v5850_v30 = vadd.f32 %v1440_v29, %v7113_v9  ;;  %v1442_v31 = vpop.f32.mrb[7].mxu0  ;;  %5313 = vmatpush1.bf16.msra.mxu1 %v7123_v25 }
 0x1f8   : > { %v5851_v32 = vadd.f32 %v1442_v31, %v7117_v11 }
 0x1f9   : > { %v1523_v34 = vmax.f32 %v5850_v30, 0.0 }
 0x1fa   : > { %v1524_v36 = vmax.f32 %v5851_v32, 0.0  ;;  %v1446_v37 = vpop.f32.mrb[8].mxu0 }
 0x1fb   : > { %v7133_v38 = vpack.c.bf16 %v1523_v34, %v1521_v33  ;;  %v1448_v39 = vpop.f32.mrb[9].mxu0  ;;  %v5852_v41 = vadd.f32 %v1446_v37, %v7113_v9 }
 0x1fc   : > { %v7135_v40 = vpack.c.bf16 %v1524_v36, %v1522_v35  ;;  %v5853_v42 = vadd.f32 %v1448_v39, %v7117_v11 }
 0x1fd   : > { %v1525_v48 = vmax.f32 %v5852_v41, 0.0 }
 0x1fe   : > { %v1452_v43 = vpop.f32.mrb[10].mxu0  ;;  %5315 = vmatprep.subr.bf16.mxu1 %v7135_v40  ;;  %v1526_v50 = vmax.f32 %v5853_v42, 0.0 }
 0x1ff   : > { %v5854_v44 = vadd.f32 %v1452_v43, %v7113_v9  ;;  %v1454_v45 = vpop.f32.mrb[11].mxu0  ;;  %5317 = vmatpush1.bf16.msra.mxu1 %v7133_v38 }
 0x200   : > { %v5855_v47 = vadd.f32 %v1454_v45, %v7117_v11 }
 0x201   : > { %v1527_v49 = vmax.f32 %v5854_v44, 0.0 }
 0x202   : > { %v1528_v51 = vmax.f32 %v5855_v47, 0.0  ;;  %v1458_v52 = vpop.f32.mrb[12].mxu0 }
 0x203   : > { %v7143_v53 = vpack.c.bf16 %v1527_v49, %v1525_v48  ;;  %v1460_v54 = vpop.f32.mrb[13].mxu0  ;;  %v5856_v56 = vadd.f32 %v1458_v52, %v7113_v9 }
 0x204   : > { %v7145_v55 = vpack.c.bf16 %v1528_v51, %v1526_v50  ;;  %v5857_v57 = vadd.f32 %v1460_v54, %v7117_v11 }
 0x205   : > { %v1529_v62 = vmax.f32 %v5856_v56, 0.0 }
 0x206   : > { %v1464_v58 = vpop.f32.mrb[14].mxu0  ;;  %5319 = vmatprep.subr.bf16.mxu1 %v7145_v55  ;;  %v1530_v0 = vmax.f32 %v5857_v57, 0.0 }
 0x207   : > { %v5858_v59 = vadd.f32 %v1464_v58, %v7113_v9  ;;  %v1466_v60 = vpop.f32.mrb[15].mxu0  ;;  %5321 = vmatpush1.bf16.msra.mxu1 %v7143_v53 }
 0x208   : > { %v5859_v61 = vadd.f32 %v1466_v60, %v7117_v11 }
 0x209   : > { %v1531_v63 = vmax.f32 %v5858_v59, 0.0 }
 0x20a   : > { %v1532_v1 = vmax.f32 %v5859_v61, 0.0  ;;  %v1470_v2 = vpop.f32.mrb[16].mxu0 }
 0x20b   : > { %v7153_v3 = vpack.c.bf16 %v1531_v63, %v1529_v62  ;;  %v1472_v4 = vpop.f32.mrb[17].mxu0  ;;  %v5860_v10 = vadd.f32 %v1470_v2, %v7113_v9 }
 0x20c   : > { %v7155_v7 = vpack.c.bf16 %v1532_v1, %v1530_v0  ;;  %v5861_v12 = vadd.f32 %v1472_v4, %v7117_v11 }
 0x20d   : > { %v1533_v17 = vmax.f32 %v5860_v10, 0.0 }
 0x20e   : > { %v1476_v13 = vpop.f32.mrb[18].mxu0  ;;  %5323 = vmatprep.subr.bf16.mxu1 %v7155_v7  ;;  %v1534_v19 = vmax.f32 %v5861_v12, 0.0 }
 0x20f   : > { %v5862_v14 = vadd.f32 %v1476_v13, %v7113_v9  ;;  %v1478_v15 = vpop.f32.mrb[19].mxu0  ;;  %5325 = vmatpush1.bf16.msra.mxu1 %v7153_v3 }
 0x210   : > { %v5863_v16 = vadd.f32 %v1478_v15, %v7117_v11  ;;  %v1549_v15 = vld [vmem:[%s8605_s3] sm:$0xff] }
 0x211   : > { %v1535_v18 = vmax.f32 %v5862_v14, 0.0 }
 0x212   : > { %v1536_v20 = vmax.f32 %v5863_v16, 0.0  ;;  %v1482_v21 = vpop.f32.mrb[20].mxu0 }
 0x213   : > { %v7163_v22 = vpack.c.bf16 %v1535_v18, %v1533_v17  ;;  %v1484_v23 = vpop.f32.mrb[21].mxu0  ;;  %v5864_v27 = vadd.f32 %v1482_v21, %v7113_v9  ;;  %v6160_v17 = vmov 0.0|0.0   ;;  %v1810_v18 = vld [vmem:[%s8606_s4 + $0x10] sm:$0xff] }
 0x214   : > { %v7165_v24 = vpack.c.bf16 %v1536_v20, %v1534_v19  ;;  %v5865_v28 = vadd.f32 %v1484_v23, %v7117_v11  ;;  %v1811_v19 = vld [vmem:[%s8606_s4 + $0x18] sm:$0xff]  ;;  %v4455_v20 = vld [vmem:[%s8605_s3 + $0x48] sm:$0xff] }
 0x215   : > { %v1537_v33 = vmax.f32 %v5864_v27, 0.0  ;;  %v5378_v21 = vpack.c.bf16 %v1811_v19, %v1810_v18  ;;  %v1813_v23 = vld [vmem:[%s8606_s4 + $0x28] sm:$0xff] }
 0x216   : > { %v1488_v29 = vpop.f32.mrb[22].mxu0  ;;  %5327 = vmatprep.subr.bf16.mxu1 %v7165_v24  ;;  %v1538_v35 = vmax.f32 %v5865_v28, 0.0  ;;  %v1814_v28 = vld [vmem:[%s8606_s4 + $0x30] sm:$0xff] }
 0x217   : > { %v5866_v30 = vadd.f32 %v1488_v29, %v7113_v9  ;;  %v1490_v31 = vpop.f32.mrb[23].mxu0  ;;  %5329 = vmatpush1.bf16.msra.mxu1 %v7163_v22  ;;  %v1815_v29 = vld [vmem:[%s8606_s4 + $0x38] sm:$0xff] }
 0x218   : > { %v5867_v32 = vadd.f32 %v1490_v31, %v7117_v11  ;;  %v5384_v31 = vpack.c.bf16 %v1815_v29, %v1814_v28 }
 0x219   : > { %v1539_v34 = vmax.f32 %v5866_v30, 0.0  ;;  %v4457_v30 = vld [vmem:[%s8605_s3 + $0x58] sm:$0xff] }
 0x21a   : > { %v1540_v36 = vmax.f32 %v5867_v32, 0.0  ;;  %v1494_v37 = vpop.f32.mrb[24].mxu0  ;;  %v1816_v32 = vld [vmem:[%s8606_s4 + $0x40] sm:$0xff] }
 0x21b   : > { %v5332_v39 = vpack.c.bf16 %v1539_v34, %v1537_v33  ;;  %v1496_v41 = vpop.f32.mrb[25].mxu0  ;;  %v5868_v43 = vadd.f32 %v1494_v37, %v7113_v9  ;;  %v1817_v33 = vld [vmem:[%s8606_s4 + $0x48] sm:$0xff]  ;;  %v4458_v34 = vld [vmem:[%s8605_s3 + $0x60] sm:$0xff]  ;;  %v4460_v37 = vld [vmem:[%s8605_s3 + $0x70] sm:$0xff] }
 0x21c   : > { %v5330_v42 = vpack.c.bf16 %v1540_v36, %v1538_v35  ;;  %v5869_v44 = vadd.f32 %v1496_v41, %v7117_v11  ;;  %v5387_v35 = vpack.c.bf16 %v1817_v33, %v1816_v32  ;;  %v4459_v36 = vld [vmem:[%s8605_s3 + $0x68] sm:$0xff]  ;;  %v1818_v41 = vld [vmem:[%s8606_s4 + $0x50] sm:$0xff] }
 0x21d   : > { %v1541_v50 = vmax.f32 %v5868_v43, 0.0 }
 0x21e   : > { %v1500_v45 = vpop.f32.mrb[26].mxu0  ;;  %5331 = vmatprep.subr.bf16.mxu1 %v5330_v42  ;;  %v1542_v52 = vmax.f32 %v5869_v44, 0.0  ;;  %v1820_v44 = vld [vmem:[%s8606_s4 + $0x60] sm:$0xff] }
 0x21f   : > { %v5870_v47 = vadd.f32 %v1500_v45, %v7113_v9  ;;  %v1502_v48 = vpop.f32.mrb[27].mxu0  ;;  %5333 = vmatpush1.bf16.msra.mxu1 %v5332_v39  ;;  %v1821_v45 = vld [vmem:[%s8606_s4 + $0x68] sm:$0xff] }
 0x220   : > { %v5871_v49 = vadd.f32 %v1502_v48, %v7117_v11  ;;  %v1822_v48 = vld [vmem:[%s8606_s4 + $0x70] sm:$0xff] }
 0x221   : > { %v1543_v51 = vmax.f32 %v5870_v47, 0.0  ;;  %v5393_v47 = vpack.c.bf16 %v1821_v45, %v1820_v44 }
 0x222   : > { %v1544_v54 = vmax.f32 %v5871_v49, 0.0  ;;  %v1506_v56 = vpop.f32.mrb[28].mxu0  ;;  %v1823_v49 = vld [vmem:[%s8606_s4 + $0x78] sm:$0xff] }
 0x223   : > { %v5336_v57 = vpack.c.bf16 %v1543_v51, %v1541_v50  ;;  %v1508_v58 = vpop.f32.mrb[29].mxu0  ;;  %v5872_v60 = vadd.f32 %v1506_v56, %v7113_v9  ;;  %v5396_v50 = vpack.c.bf16 %v1823_v49, %v1822_v48  ;;  %v1824_v51 = vld [vmem:[%s8606_s4 + $0x80] sm:$0xff]  ;;  %v1826_v56 = vld [vmem:[%s8606_s4 + $0x90] sm:$0xff]  ;;  %v4477_v48 = vld [vmem:[%s8606_s4 + $0x118] sm:$0xff] }
 0x224   : > { %v5334_v59 = vpack.c.bf16 %v1544_v54, %v1542_v52  ;;  %v5873_v61 = vadd.f32 %v1508_v58, %v7117_v11  ;;  %v1825_v52 = vld [vmem:[%s8606_s4 + $0x88] sm:$0xff] }
 0x225   : > { %v1545_v2 = vmax.f32 %v5872_v60, 0.0  ;;  %v5399_v54 = vpack.c.bf16 %v1825_v52, %v1824_v51  ;;  %v1829_v60 = vld [vmem:[%s8606_s4 + $0xa8] sm:$0xff] }
 0x226   : > { %v1512_v62 = vpop.f32.mrb[30].mxu0  ;;  %5335 = vmatprep.subr.bf16.mxu1 %v5334_v59  ;;  %v1546_v10 = vmax.f32 %v5873_v61, 0.0 }
 0x227   : > { %v5874_v63 = vadd.f32 %v1512_v62, %v7113_v9  ;;  %v1514_v0 = vpop.f32.mrb[31].mxu0  ;;  %5337 = vmatpush1.bf16.msra.mxu1 %v5336_v57  ;;  %v1550_v9 = vld [vmem:[%s8605_s3 + $0x8] sm:$0xff]  ;;  %v1830_v62 = vld [vmem:[%s8606_s4 + $0xb0] sm:$0xff] }
 0x228   : > { %v5875_v1 = vadd.f32 %v1514_v0, %v7117_v11  ;;  %v1551_v11 = vld [vmem:[%s8605_s3 + $0x10] sm:$0xff] }
 0x229   : > { %v1547_v4 = vmax.f32 %v5874_v63, 0.0  ;;  %v1831_v63 = vld [vmem:[%s8606_s4 + $0xb8] sm:$0xff] }
 0x22a   : > { %v1548_v12 = vmax.f32 %v5875_v1, 0.0  ;;  %v5408_v0 = vpack.c.bf16 %v1831_v63, %v1830_v62  ;;  %v1832_v1 = vld [vmem:[%s8606_s4 + $0xc0] sm:$0xff]  ;;  %v4480_v63 = vld [vmem:[%s8606_s4 + $0x130] sm:$0xff] }
 0x22b   : > { %v5340_v13 = vpack.c.bf16 %v1547_v4, %v1545_v2  ;;  %v1833_v2 = vld [vmem:[%s8606_s4 + $0xc8] sm:$0xff] }
 0x22c   : > { %v5338_v14 = vpack.c.bf16 %v1548_v12, %v1546_v10  ;;  %v5411_v4 = vpack.c.bf16 %v1833_v2, %v1832_v1  ;;  %v1834_v10 = vld [vmem:[%s8606_s4 + $0xd0] sm:$0xff]  ;;  %v1835_v12 = vld [vmem:[%s8606_s4 + $0xd8] sm:$0xff] }
 0x22e   : > { %5339 = vmatprep.subr.bf16.mxu1 %v5338_v14 }
 0x22f   : > { %5341 = vmatpush1.bf16.msra.mxu1 %v5340_v13 }
 0x230   : > { %5343 = vmatprep.subr.bf16.mxu1 %v7125_v26  ;;  %v1553_v26 = vld [vmem:[%s8605_s3 + $0x20] sm:$0xff] }
 0x232   : > { %1622 = vmatmul.mubr.f32.vlgmr.msra.gmra.mrb[0].mxu1 %v1549_v15 }
 0x233   : > { %5345 = vmatpush1.bf16.msra.mxu1 %v7123_v25  ;;  %1627 = vmatprep.mubr.f32.mxu1 %v6159_v46  ;;  %v1552_v25 = vld [vmem:[%s8605_s3 + $0x18] sm:$0xff] }
 0x234   : > { %5347 = vmatprep.subr.bf16.mxu1 %v7135_v40  ;;  %v1555_v40 = vld [vmem:[%s8605_s3 + $0x30] sm:$0xff] }
 0x236   : > { %1628 = vmatmul.mubr.f32.gmra.mrb[2].mxu1 %v1550_v9 }
 0x237   : > { %5349 = vmatpush1.bf16.msra.mxu1 %v7133_v38  ;;  %1633 = vmatprep.mubr.f32.mxu1 %v6159_v46  ;;  %v1554_v38 = vld [vmem:[%s8605_s3 + $0x28] sm:$0xff] }
 0x238   : > { %5351 = vmatprep.subr.bf16.mxu1 %v7145_v55  ;;  %v1808_v55 = vld [vmem:[%s8606_s4] sm:$0xff] }
 0x23a   : > { %1634 = vmatmul.mubr.f32.gmra.mrb[4].mxu1 %v1551_v11 }
 0x23b   : > { %5353 = vmatpush1.bf16.msra.mxu1 %v7143_v53  ;;  %1639 = vmatprep.mubr.f32.mxu1 %v6159_v46  ;;  %v1556_v53 = vld [vmem:[%s8605_s3 + $0x38] sm:$0xff] }
 0x23c   : > { %5355 = vmatprep.subr.bf16.mxu1 %v7155_v7  ;;  %v4454_v7 = vld [vmem:[%s8605_s3 + $0x40] sm:$0xff] }
 0x23e   : > { %1640 = vmatmul.mubr.f32.gmra.mrb[6].mxu1 %v1552_v25 }
 0x23f   : > { %5357 = vmatpush1.bf16.msra.mxu1 %v7153_v3  ;;  %1645 = vmatprep.mubr.f32.mxu1 %v6159_v46  ;;  %v1809_v3 = vld [vmem:[%s8606_s4 + $0x8] sm:$0xff] }
 0x240   : > { %5359 = vmatprep.subr.bf16.mxu1 %v7165_v24  ;;  %v5375_v16 = vpack.c.bf16 %v1809_v3, %v1808_v55  ;;  %v4456_v24 = vld [vmem:[%s8605_s3 + $0x50] sm:$0xff] }
 0x242   : > { %1646 = vmatmul.mubr.f32.gmra.mrb[8].mxu1 %v1553_v26 }
 0x243   : > { %5361 = vmatpush1.bf16.msra.mxu1 %v7163_v22  ;;  %1651 = vmatprep.mubr.f32.mxu1 %v6159_v46  ;;  %v1812_v22 = vld [vmem:[%s8606_s4 + $0x20] sm:$0xff] }
 0x244   : > { %5363 = vmatprep.subr.bf16.mxu1 %v5330_v42  ;;  %v5381_v27 = vpack.c.bf16 %v1813_v23, %v1812_v22  ;;  %v1819_v42 = vld [vmem:[%s8606_s4 + $0x58] sm:$0xff]  ;;  %v4471_v22 = vld [vmem:[%s8606_s4 + $0xe8] sm:$0xff] }
 0x245   : > { %v5390_v43 = vpack.c.bf16 %v1819_v42, %v1818_v41 }
 0x246   : > { %1652 = vmatmul.mubr.f32.gmra.mrb[10].mxu1 %v1554_v38 }
 0x247   : > { %5365 = vmatpush1.bf16.msra.mxu1 %v5332_v39  ;;  %1657 = vmatprep.mubr.f32.mxu1 %v6159_v46  ;;  %v4461_v39 = vld [vmem:[%s8605_s3 + $0x78] sm:$0xff] }
 0x248   : > { %5367 = vmatprep.subr.bf16.mxu1 %v5334_v59  ;;  %v1828_v59 = vld [vmem:[%s8606_s4 + $0xa0] sm:$0xff] }
 0x249   : > { %v5405_v61 = vpack.c.bf16 %v1829_v60, %v1828_v59 }
 0x24a   : > { %1658 = vmatmul.mubr.f32.gmra.mrb[12].mxu1 %v1555_v40 }
 0x24b   : > { %5369 = vmatpush1.bf16.msra.mxu1 %v5336_v57  ;;  %1663 = vmatprep.mubr.f32.mxu1 %v6159_v46  ;;  %v1827_v57 = vld [vmem:[%s8606_s4 + $0x98] sm:$0xff] }
 0x24c   : > { %5371 = vmatprep.subr.bf16.mxu1 %v5338_v14  ;;  %v5402_v58 = vpack.c.bf16 %v1827_v57, %v1826_v56  ;;  %v4478_v56 = vld [vmem:[%s8606_s4 + $0x120] sm:$0xff]  ;;  %v4479_v57 = vld [vmem:[%s8606_s4 + $0x128] sm:$0xff] }
 0x24d   : > { %v5429_v62 = vpack.c.bf16 %v4479_v57, %v4478_v56 }
 0x24e   : > { %1664 = vmatmul.mubr.f32.gmra.mrb[14].mxu1 %v1556_v53 }
 0x24f   : > { %5373 = vmatpush1.bf16.msra.mxu1 %v5340_v13  ;;  %1743 = vmatprep.mubr.f32.mxu1 %v6159_v46  ;;  %v5414_v13 = vpack.c.bf16 %v1835_v12, %v1834_v10 }
 0x250   : > { %5374 = vmatprep.subr.bf16.mxu1 %v6160_v17 }
 0x252   : > { %1744 = vmatmul.mubr.f32.vlgmr.msra.gmra.mrb[16].mxu1 %v4454_v7 }
 0x253   : > { %1749 = vmatprep.mubr.f32.mxu1 %v6159_v46  ;;  %5376 = vmatpush1.bf16.msra.mxu1 %v5375_v16 }
 0x254   : > { %5377 = vmatprep.subr.bf16.mxu1 %v6160_v17 }
 0x256   : > { %1750 = vmatmul.mubr.f32.gmra.mrb[18].mxu1 %v4455_v20 }
 0x257   : > { %1755 = vmatprep.mubr.f32.mxu1 %v6159_v46  ;;  %5379 = vmatpush1.bf16.msra.mxu1 %v5378_v21  ;;  %v4470_v21 = vld [vmem:[%s8606_s4 + $0xe0] sm:$0xff] }
 0x258   : > { %5380 = vmatprep.subr.bf16.mxu1 %v6160_v17  ;;  %v5417_v29 = vpack.c.bf16 %v4471_v22, %v4470_v21  ;;  %v4487_v21 = vld [vmem:[%s8606_s4 + $0x168] sm:$0xff]  ;;  %v4489_v22 = vld [vmem:[%s8606_s4 + $0x178] sm:$0xff] }
 0x25a   : > { %1756 = vmatmul.mubr.f32.gmra.mrb[20].mxu1 %v4456_v24 }
 0x25b   : > { %1761 = vmatprep.mubr.f32.mxu1 %v6159_v46  ;;  %5382 = vmatpush1.bf16.msra.mxu1 %v5381_v27 }
 0x25c   : > { %5383 = vmatprep.subr.bf16.mxu1 %v6160_v17 }
 0x25e   : > { %1762 = vmatmul.mubr.f32.gmra.mrb[22].mxu1 %v4457_v30  ;;  %v4472_v30 = vld [vmem:[%s8606_s4 + $0xf0] sm:$0xff] }
 0x25f   : > { %1767 = vmatprep.mubr.f32.mxu1 %v6159_v46  ;;  %5385 = vmatpush1.bf16.msra.mxu1 %v5384_v31  ;;  %v4473_v31 = vld [vmem:[%s8606_s4 + $0xf8] sm:$0xff] }
 0x260   : > { %5386 = vmatprep.subr.bf16.mxu1 %v6160_v17 }
 0x262   : > { %1768 = vmatmul.mubr.f32.gmra.mrb[24].mxu1 %v4458_v34 }
 0x263   : > { %1773 = vmatprep.mubr.f32.mxu1 %v6159_v46  ;;  %5388 = vmatpush1.bf16.msra.mxu1 %v5387_v35 }
 0x264   : > { %5389 = vmatprep.subr.bf16.mxu1 %v6160_v17 }
 0x266   : > { %1774 = vmatmul.mubr.f32.gmra.mrb[26].mxu1 %v4459_v36  ;;  %v5420_v36 = vpack.c.bf16 %v4473_v31, %v4472_v30  ;;  %v4492_v30 = vld [vmem:[%s8606_s4 + $0x190] sm:$0xff]  ;;  %v4493_v31 = vld [vmem:[%s8606_s4 + $0x198] sm:$0xff] }
 0x267   : > { %1779 = vmatprep.mubr.f32.mxu1 %v6159_v46  ;;  %5391 = vmatpush1.bf16.msra.mxu1 %v5390_v43 }
 0x268   : > { %5392 = vmatprep.subr.bf16.mxu1 %v6160_v17 }
 0x26a   : > { %1780 = vmatmul.mubr.f32.gmra.mrb[28].mxu1 %v4460_v37  ;;  %v4474_v37 = vld [vmem:[%s8606_s4 + $0x100] sm:$0xff] }
 0x26b   : > { %1785 = vmatprep.mubr.f32.mxu1 %v6159_v46  ;;  %5394 = vmatpush1.bf16.msra.mxu1 %v5393_v47  ;;  %v4476_v47 = vld [vmem:[%s8606_s4 + $0x110] sm:$0xff] }
 0x26c   : > { %5395 = vmatprep.subr.bf16.mxu1 %v6160_v17 }
 0x26e   : > { %1786 = vmatmul.mubr.f32.gmra.mrb[30].mxu1 %v4461_v39  ;;  %v4475_v39 = vld [vmem:[%s8606_s4 + $0x108] sm:$0xff] }
 0x26f   : > { %5397 = vmatpush1.bf16.msra.mxu1 %v5396_v50  ;;  %v5423_v45 = vpack.c.bf16 %v4475_v39, %v4474_v37  ;;  %v4496_v39 = vld [vmem:[%s8606_s4 + $0x1b0] sm:$0xff] }
 0x270   : > { %5398 = vmatprep.subr.bf16.mxu1 %v6160_v17 }
 0x273   : > { %5400 = vmatpush1.bf16.msra.mxu1 %v5399_v54  ;;  %v5426_v54 = vpack.c.bf16 %v4477_v48, %v4476_v47  ;;  %v4513_v47 = vld [vmem:[%s8607_s5 + $0x118] sm:$0xff] }
 0x274   : > { %5401 = vmatprep.subr.bf16.mxu1 %v6160_v17 }
 0x277   : > { %5403 = vmatpush1.bf16.msra.mxu1 %v5402_v58 }
 0x278   : > { %5404 = vmatprep.subr.bf16.mxu1 %v6160_v17 }
 0x27b   : > { %5406 = vmatpush1.bf16.msra.mxu1 %v5405_v61 }
 0x27c   : > { %5407 = vmatprep.subr.bf16.mxu1 %v6160_v17 }
 0x27f   : > { %5409 = vmatpush1.bf16.msra.mxu1 %v5408_v0  ;;  %v4481_v0 = vld [vmem:[%s8606_s4 + $0x138] sm:$0xff] }
 0x280   : > { %5410 = vmatprep.subr.bf16.mxu1 %v6160_v17  ;;  %v5432_v12 = vpack.c.bf16 %v4481_v0, %v4480_v63  ;;  %v4518_v0 = vld [vmem:[%s8607_s5 + $0x140] sm:$0xff] }
 0x283   : > { %5412 = vmatpush1.bf16.msra.mxu1 %v5411_v4 }
 0x284   : > { %5413 = vmatprep.subr.bf16.mxu1 %v6160_v17 }
 0x287   : > { %5415 = vmatpush1.bf16.msra.mxu1 %v5414_v13  ;;  %v4482_v13 = vld [vmem:[%s8606_s4 + $0x140] sm:$0xff] }
 0x288   : > { %5416 = vmatprep.subr.bf16.mxu1 %v6160_v17 }
 0x305   : > { %v1623_v14 = vpop.f32.mrb[0].mxu1 }
 0x306   : > { %v1625_v15 = vpop.f32.mrb[1].mxu1 }
 0x309   : > { %v1629_v9 = vpop.f32.mrb[2].mxu1 }
 0x30a   : > { %v1631_v11 = vpop.f32.mrb[3].mxu1 }
 0x30d   : > { %v1635_v25 = vpop.f32.mrb[4].mxu1 }
 0x30e   : > { %v1637_v26 = vpop.f32.mrb[5].mxu1 }
 0x311   : > { %v1641_v38 = vpop.f32.mrb[6].mxu1 }
 0x312   : > { %v1643_v40 = vpop.f32.mrb[7].mxu1 }
 0x315   : > { %v1647_v53 = vpop.f32.mrb[8].mxu1 }
 0x316   : > { %v1649_v55 = vpop.f32.mrb[9].mxu1 }
 0x319   : > { %v1653_v3 = vpop.f32.mrb[10].mxu1 }
 0x31a   : > { %v7353_v7 = vpop.f32.mrb[11].mxu1 }
 0x31d   : > { %v7355_v16 = vpop.f32.mrb[12].mxu1 }
 0x31e   : > { %v7357_v18 = vpop.f32.mrb[13].mxu1 }
 0x321   : > { %v7359_v19 = vpop.f32.mrb[14].mxu1 }
 0x322   : > { %v7361_v20 = vpop.f32.mrb[15].mxu1 }
 0x325   : > { %v1745_v23 = vpop.f32.mrb[16].mxu1 }
 0x326   : > { %v7369_v24 = vmax.f32 %v1623_v14, %v1745_v23  ;;  %v1747_v27 = vpop.f32.mrb[17].mxu1  ;;  %v4483_v14 = vld [vmem:[%s8606_s4 + $0x148] sm:$0xff] }
 0x327   : > { %v7371_v28 = vmax.f32 %v1625_v15, %v1747_v27  ;;  %v4490_v27 = vld [vmem:[%s8606_s4 + $0x180] sm:$0xff] }
 0x329   : > { %v1751_v32 = vpop.f32.mrb[18].mxu1  ;;  %4462 = vmatprep.mubr.msk.f32.mxu1 %vm1836_vm0, %v7371_v28 }
 0x32a   : > { %v7381_v33 = vmax.f32 %v1629_v9, %v1751_v32  ;;  %v1753_v34 = vpop.f32.mrb[19].mxu1  ;;  %1926 = vmatmul.mubr.f32.vlgmr.msra.gmra.mrb[32].mxu1 %v7369_v24  ;;  %v5450_v32 = vpack.c.bf16 %v4493_v31, %v4492_v30 }
 0x32b   : > { %v7384_v35 = vmax.f32 %v1631_v11, %v1753_v34  ;;  %5418 = vmatpush1.bf16.msra.mxu1 %v5417_v29  ;;  %v4494_v34 = vld [vmem:[%s8606_s4 + $0x1a0] sm:$0xff] }
 0x32c   : > { %5419 = vmatprep.subr.bf16.mxu1 %v6160_v17 }
 0x32d   : > { %v1757_v41 = vpop.f32.mrb[20].mxu1  ;;  %4463 = vmatprep.mubr.msk.f32.mxu1 %vm1836_vm0, %v7384_v35 }
 0x32e   : > { %v7395_v42 = vmax.f32 %v1635_v25, %v1757_v41  ;;  %v1759_v43 = vpop.f32.mrb[21].mxu1  ;;  %1931 = vmatmul.mubr.f32.gmra.mrb[34].mxu1 %v7381_v33  ;;  %v4497_v41 = vld [vmem:[%s8606_s4 + $0x1b8] sm:$0xff] }
 0x32f   : > { %v7398_v44 = vmax.f32 %v1637_v26, %v1759_v43  ;;  %5421 = vmatpush1.bf16.msra.mxu1 %v5420_v36  ;;  %v5435_v26 = vpack.c.bf16 %v4483_v14, %v4482_v13  ;;  %v4495_v36 = vld [vmem:[%s8606_s4 + $0x1a8] sm:$0xff]  ;;  %v5456_v43 = vpack.c.bf16 %v4497_v41, %v4496_v39  ;;  %v4522_v13 = vld [vmem:[%s8607_s5 + $0x160] sm:$0xff]  ;;  %v4524_v14 = vld [vmem:[%s8607_s5 + $0x170] sm:$0xff] }
 0x330   : > { %5422 = vmatprep.subr.bf16.mxu1 %v6160_v17  ;;  %v5453_v37 = vpack.c.bf16 %v4495_v36, %v4494_v34 }
 0x331   : > { %v1763_v49 = vpop.f32.mrb[22].mxu1  ;;  %4464 = vmatprep.mubr.msk.f32.mxu1 %vm1836_vm0, %v7398_v44 }
 0x332   : > { %v7409_v50 = vmax.f32 %v1641_v38, %v1763_v49  ;;  %v1765_v51 = vpop.f32.mrb[23].mxu1  ;;  %1936 = vmatmul.mubr.f32.gmra.mrb[36].mxu1 %v7395_v42  ;;  %v4484_v38 = vld [vmem:[%s8606_s4 + $0x150] sm:$0xff] }
 0x333   : > { %v7412_v52 = vmax.f32 %v1643_v40, %v1765_v51  ;;  %5424 = vmatpush1.bf16.msra.mxu1 %v5423_v45  ;;  %v4485_v40 = vld [vmem:[%s8606_s4 + $0x158] sm:$0xff]  ;;  %v4511_v45 = vld [vmem:[%s8607_s5 + $0x108] sm:$0xff]  ;;  %v4512_v51 = vld [vmem:[%s8607_s5 + $0x110] sm:$0xff] }
 0x334   : > { %5425 = vmatprep.subr.bf16.mxu1 %v6160_v17  ;;  %v5462_v49 = vpack.c.bf16 %v4513_v47, %v4511_v45 }
 0x335   : > { %v1769_v58 = vpop.f32.mrb[24].mxu1  ;;  %4465 = vmatprep.mubr.msk.f32.mxu1 %vm1836_vm0, %v7412_v52 }
 0x336   : > { %v7423_v59 = vmax.f32 %v1647_v53, %v1769_v58  ;;  %v1771_v60 = vpop.f32.mrb[25].mxu1  ;;  %1941 = vmatmul.mubr.f32.gmra.mrb[38].mxu1 %v7409_v50  ;;  %v4514_v58 = vld [vmem:[%s8607_s5 + $0x120] sm:$0xff] }
 0x337   : > { %v7426_v61 = vmax.f32 %v1649_v55, %v1771_v60  ;;  %5427 = vmatpush1.bf16.msra.mxu1 %v5426_v54  ;;  %v4517_v54 = vld [vmem:[%s8607_s5 + $0x138] sm:$0xff]  ;;  %v4519_v60 = vld [vmem:[%s8607_s5 + $0x148] sm:$0xff] }
 0x338   : > { %5428 = vmatprep.subr.bf16.mxu1 %v6160_v17 }
 0x339   : > { %v1775_v1 = vpop.f32.mrb[26].mxu1  ;;  %4466 = vmatprep.mubr.msk.f32.mxu1 %vm1836_vm0, %v7426_v61 }
 0x33a   : > { %v7437_v2 = vmax.f32 %v1653_v3, %v1775_v1  ;;  %v1777_v4 = vpop.f32.mrb[27].mxu1  ;;  %1946 = vmatmul.mubr.f32.gmra.mrb[40].mxu1 %v7423_v59  ;;  %v4520_v1 = vld [vmem:[%s8607_s5 + $0x150] sm:$0xff] }
 0x33b   : > { %v7441_v10 = vmax.f32 %v7353_v7, %v1777_v4  ;;  %5430 = vmatpush1.bf16.msra.mxu1 %v5429_v62  ;;  %v4523_v4 = vld [vmem:[%s8607_s5 + $0x168] sm:$0xff] }
 0x33c   : > { %5431 = vmatprep.subr.bf16.mxu1 %v6160_v17 }
 0x33d   : > { %v1781_v15 = vpop.f32.mrb[28].mxu1  ;;  %4467 = vmatprep.mubr.msk.f32.mxu1 %vm1836_vm0, %v7441_v10 }
 0x33e   : > { %v7453_v9 = vmax.f32 %v7355_v16, %v1781_v15  ;;  %v1783_v11 = vpop.f32.mrb[29].mxu1  ;;  %1951 = vmatmul.mubr.f32.gmra.mrb[42].mxu1 %v7437_v2  ;;  %v5438_v16 = vpack.c.bf16 %v4485_v40, %v4484_v38  ;;  %v5476_v15 = vpack.c.bf16 %v4524_v14, %v4522_v13  ;;  %v4528_v38 = vld [vmem:[%s8607_s5 + $0x190] sm:$0xff] }
 0x33f   : > { %v1805_v25 = vmax.f32 %v7357_v18, %v1783_v11  ;;  %5433 = vmatpush1.bf16.msra.mxu1 %v5432_v12  ;;  %v4486_v18 = vld [vmem:[%s8606_s4 + $0x160] sm:$0xff]  ;;  %v4529_v11 = vld [vmem:[%s8607_s5 + $0x198] sm:$0xff] }
 0x340   : > { %5434 = vmatprep.subr.bf16.mxu1 %v6160_v17 }
 0x341   : > { %v1787_v53 = vpop.f32.mrb[30].mxu1  ;;  %4468 = vmatprep.mubr.msk.f32.mxu1 %vm1836_vm0, %v1805_v25 }
 0x342   : > { %v1806_v55 = vmax.f32 %v7359_v19, %v1787_v53  ;;  %v1789_v3 = vpop.f32.mrb[31].mxu1  ;;  %1956 = vmatmul.mubr.f32.gmra.mrb[44].mxu1 %v7453_v9  ;;  %v5441_v19 = vpack.c.bf16 %v4487_v21, %v4486_v18  ;;  %v4531_v53 = vld [vmem:[%s8607_s5 + $0x1a8] sm:$0xff] }
 0x343   : > { %v1807_v7 = vmax.f32 %v7361_v20, %v1789_v3  ;;  %5436 = vmatpush1.bf16.msra.mxu1 %v5435_v26  ;;  %v4488_v20 = vld [vmem:[%s8606_s4 + $0x170] sm:$0xff]  ;;  %v4526_v26 = vld [vmem:[%s8607_s5 + $0x180] sm:$0xff]  ;;  %v2127_v21 = vld [vmem:[%s8607_s5 + $0x8] sm:$0xff] }
 0x344   : > { %5437 = vmatprep.subr.bf16.mxu1 %v6160_v17  ;;  %v5444_v23 = vpack.c.bf16 %v4489_v22, %v4488_v20  ;;  %v5480_v40 = vpack.c.bf16 %v4528_v38, %v4526_v26  ;;  %v2139_v26 = vld [vmem:[%s8607_s5 + $0x68] sm:$0xff]  ;;  %v2141_v38 = vld [vmem:[%s8607_s5 + $0x78] sm:$0xff] }
 0x345   : > { %4469 = vmatprep.mubr.msk.f32.mxu1 %vm1836_vm0, %v1807_v7 }
 0x346   : > { %1961 = vmatmul.mubr.f32.gmra.mrb[46].mxu1 %v1806_v55 }
 0x347   : > { %5439 = vmatpush1.bf16.msra.mxu1 %v5438_v16  ;;  %4498 = vmatprep.mubr.msk.f32.mxu1 %vm1836_vm0, %v7371_v28  ;;  %v4491_v28 = vld [vmem:[%s8606_s4 + $0x188] sm:$0xff]  ;;  %v4532_v16 = vld [vmem:[%s8607_s5 + $0x1b0] sm:$0xff] }
 0x348   : > { %5440 = vmatprep.subr.bf16.mxu1 %v6160_v17  ;;  %v5447_v29 = vpack.c.bf16 %v4491_v28, %v4490_v27 }
 0x34b   : > { %5442 = vmatpush1.bf16.msra.mxu1 %v5441_v19  ;;  %v2129_v19 = vld [vmem:[%s8607_s5 + $0x18] sm:$0xff] }
 0x34c   : > { %5443 = vmatprep.subr.bf16.mxu1 %v6160_v17  ;;  %v5486_v20 = vpack.c.bf16 %v2129_v19, %v2127_v21  ;;  %v2143_v19 = vld [vmem:[%s8607_s5 + $0x88] sm:$0xff] }
 0x34f   : > { %5445 = vmatpush1.bf16.msra.mxu1 %v5444_v23 }
 0x350   : > { %5446 = vmatprep.subr.bf16.mxu1 %v6160_v17 }
 0x353   : > { %5448 = vmatpush1.bf16.msra.mxu1 %v5447_v29 }
 0x354   : > { %5449 = vmatprep.subr.bf16.mxu1 %v6160_v17 }
 0x357   : > { %5451 = vmatpush1.bf16.msra.mxu1 %v5450_v32 }
 0x358   : > { %5452 = vmatprep.subr.bf16.mxu1 %v6160_v17 }
 0x35b   : > { %5454 = vmatpush1.bf16.msra.mxu1 %v5453_v37 }
 0x35c   : > { %5455 = vmatprep.subr.bf16.mxu1 %v6160_v17 }
 0x35f   : > { %5457 = vmatpush1.bf16.msra.mxu1 %v5456_v43 }
 0x362   : > { %2060 = vmatmul.mubr.f32.vlgmr.msra.gmra.mrb[48].mxu1 %v7369_v24  ;;  %v4507_v24 = vld [vmem:[%s8607_s5 + $0xe8] sm:$0xff] }
 0x363   : > { %4499 = vmatprep.mubr.msk.f32.mxu1 %vm1836_vm0, %v7384_v35  ;;  %v4506_v35 = vld [vmem:[%s8607_s5 + $0xe0] sm:$0xff] }
 0x366   : > { %2065 = vmatmul.mubr.f32.gmra.mrb[50].mxu1 %v7381_v33  ;;  %v4509_v33 = vld [vmem:[%s8607_s5 + $0xf8] sm:$0xff] }
 0x367   : > { %4500 = vmatprep.mubr.msk.f32.mxu1 %vm1836_vm0, %v7398_v44  ;;  %v4508_v44 = vld [vmem:[%s8607_s5 + $0xf0] sm:$0xff] }
 0x368   : > { %v5460_v48 = vpack.c.bf16 %v4508_v44, %v4506_v35 }
 0x36a   : > { %2070 = vmatmul.mubr.f32.gmra.mrb[52].mxu1 %v7395_v42  ;;  %v5458_v42 = vpack.c.bf16 %v4509_v33, %v4507_v24 }
 0x36b   : > { %4501 = vmatprep.mubr.msk.f32.mxu1 %vm1836_vm0, %v7412_v52  ;;  %v4515_v52 = vld [vmem:[%s8607_s5 + $0x128] sm:$0xff] }
 0x36c   : > { %5459 = vmatprep.subr.bf16.mxu1 %v5458_v42  ;;  %v5466_v57 = vpack.c.bf16 %v4517_v54, %v4515_v52  ;;  %v2126_v52 = vld [vmem:[%s8607_s5] sm:$0xff]  ;;  %v2128_v54 = vld [vmem:[%s8607_s5 + $0x10] sm:$0xff] }
 0x36d   : > { %5461 = vmatpush1.bf16.msra.mxu1 %v5460_v48 }
 0x36e   : > { %2075 = vmatmul.mubr.f32.gmra.mrb[54].mxu1 %v7409_v50  ;;  %v4510_v50 = vld [vmem:[%s8607_s5 + $0x100] sm:$0xff]  ;;  %5463 = vmatprep.subr.bf16.mxu1 %v5462_v49 }
 0x36f   : > { %4502 = vmatprep.mubr.msk.f32.mxu1 %vm1836_vm0, %v7426_v61  ;;  %v5464_v56 = vpack.c.bf16 %v4512_v51, %v4510_v50  ;;  %v4521_v61 = vld [vmem:[%s8607_s5 + $0x158] sm:$0xff] }
 0x370   : > { %v5470_v63 = vpack.c.bf16 %v4521_v61, %v4519_v60 }
 0x371   : > { %5465 = vmatpush1.bf16.msra.mxu1 %v5464_v56  ;;  %v2131_v56 = vld [vmem:[%s8607_s5 + $0x28] sm:$0xff] }
 0x372   : > { %2080 = vmatmul.mubr.f32.gmra.mrb[56].mxu1 %v7423_v59  ;;  %v4516_v59 = vld [vmem:[%s8607_s5 + $0x130] sm:$0xff]  ;;  %5467 = vmatprep.subr.bf16.mxu1 %v5466_v57  ;;  %v2133_v57 = vld [vmem:[%s8607_s5 + $0x38] sm:$0xff] }
 0x373   : > { %4503 = vmatprep.mubr.msk.f32.mxu1 %vm1836_vm0, %v7441_v10  ;;  %v5468_v62 = vpack.c.bf16 %v4516_v59, %v4514_v58  ;;  %v4525_v10 = vld [vmem:[%s8607_s5 + $0x178] sm:$0xff]  ;;  %v5488_v59 = vpack.c.bf16 %v2128_v54, %v2126_v52  ;;  %v4551_v52 = vld [vmem:[%s8607_s5 + $0x1c8] sm:$0xff] }
 0x374   : > { %v5474_v12 = vpack.c.bf16 %v4525_v10, %v4523_v4  ;;  %v2137_v4 = vld [vmem:[%s8607_s5 + $0x58] sm:$0xff] }
 0x375   : > { %5469 = vmatpush1.bf16.msra.mxu1 %v5468_v62  ;;  %v5490_v62 = vpack.c.bf16 %v2133_v57, %v2131_v56  ;;  %v4553_v54 = vld [vmem:[%s8607_s5 + $0x1d8] sm:$0xff] }
 0x376   : > { %2085 = vmatmul.mubr.f32.gmra.mrb[58].mxu1 %v7437_v2  ;;  %5471 = vmatprep.subr.bf16.mxu1 %v5470_v63  ;;  %v5472_v2 = vpack.c.bf16 %v4520_v1, %v4518_v0  ;;  %v2130_v63 = vld [vmem:[%s8607_s5 + $0x20] sm:$0xff]  ;;  %v2132_v0 = vld [vmem:[%s8607_s5 + $0x30] sm:$0xff]  ;;  %v5514_v57 = vpack.c.bf16 %v4553_v54, %v4551_v52  ;;  %v4593_v52 = vld [vmem:[%s8607_s5 + $0x2d8] sm:$0xff] }
 0x377   : > { %4504 = vmatprep.mubr.msk.f32.mxu1 %vm1836_vm0, %v1805_v25 }
 0x379   : > { %5473 = vmatpush1.bf16.msra.mxu1 %v5472_v2  ;;  %v2135_v2 = vld [vmem:[%s8607_s5 + $0x48] sm:$0xff] }
 0x37a   : > { %2090 = vmatmul.mubr.f32.gmra.mrb[60].mxu1 %v7453_v9  ;;  %5475 = vmatprep.subr.bf16.mxu1 %v5474_v12  ;;  %v4527_v9 = vld [vmem:[%s8607_s5 + $0x188] sm:$0xff]  ;;  %v5492_v12 = vpack.c.bf16 %v2132_v0, %v2130_v63  ;;  %v4557_v63 = vld [vmem:[%s8607_s5 + $0x1f8] sm:$0xff] }
 0x37b   : > { %4505 = vmatprep.mubr.msk.f32.mxu1 %vm1836_vm0, %v1807_v7  ;;  %v5478_v25 = vpack.c.bf16 %v4529_v11, %v4527_v9  ;;  %v4530_v7 = vld [vmem:[%s8607_s5 + $0x1a0] sm:$0xff]  ;;  %v2136_v11 = vld [vmem:[%s8607_s5 + $0x50] sm:$0xff] }
 0x37c   : > { %v5484_v18 = vpack.c.bf16 %v4532_v16, %v4530_v7  ;;  %v2134_v9 = vld [vmem:[%s8607_s5 + $0x40] sm:$0xff]  ;;  %v5498_v7 = vpack.c.bf16 %v2141_v38, %v2139_v26  ;;  %v4563_v26 = vld [vmem:[%s8607_s5 + $0x228] sm:$0xff]  ;;  %v4565_v38 = vld [vmem:[%s8607_s5 + $0x238] sm:$0xff] }
 0x37d   : > { %5477 = vmatpush1.bf16.msra.mxu1 %v5476_v15  ;;  %v5494_v15 = vpack.c.bf16 %v2137_v4, %v2135_v2  ;;  %v2138_v16 = vld [vmem:[%s8607_s5 + $0x60] sm:$0xff]  ;;  %v4556_v4 = vld [vmem:[%s8607_s5 + $0x1f0] sm:$0xff] }
 0x37e   : > { %2095 = vmatmul.mubr.f32.gmra.mrb[62].mxu1 %v1806_v55  ;;  %5479 = vmatprep.subr.bf16.mxu1 %v5478_v25  ;;  %v4533_v55 = vld [vmem:[%s8607_s5 + $0x1b8] sm:$0xff]  ;;  %v4554_v2 = vld [vmem:[%s8607_s5 + $0x1e0] sm:$0xff] }
 0x37f   : > { %2279 = vmatprep.mubr.f32.mxu1 %v6159_v46  ;;  %v5482_v3 = vpack.c.bf16 %v4533_v55, %v4531_v53  ;;  %v5496_v53 = vpack.c.bf16 %v2136_v11, %v2134_v9  ;;  %v4558_v9 = vld [vmem:[%s8607_s5 + $0x200] sm:$0xff]  ;;  %v4560_v11 = vld [vmem:[%s8607_s5 + $0x210] sm:$0xff] }
 0x381   : > { %5481 = vmatpush1.bf16.msra.mxu1 %v5480_v40 }
 0x382   : > { %5483 = vmatprep.subr.bf16.mxu1 %v5482_v3 }
 0x385   : > { %5485 = vmatpush1.bf16.msra.mxu1 %v5484_v18  ;;  %v2140_v18 = vld [vmem:[%s8607_s5 + $0x70] sm:$0xff] }
 0x386   : > { %5487 = vmatprep.subr.bf16.mxu1 %v5486_v20  ;;  %v2145_v20 = vld [vmem:[%s8607_s5 + $0x98] sm:$0xff] }
 0x3fd   : > { %v1927_v22 = vpop.f32.mrb[32].mxu1 }
 0x3fe   : > { %v1929_v23 = vpop.f32.mrb[33].mxu1 }
 0x3ff   : > { %v5500_v23 = vpack.c.bf16 %v2140_v18, %v2138_v16  ;;  %v4567_v16 = vld [vmem:[%s8607_s5 + $0x248] sm:$0xff]  ;;  %v4569_v18 = vld [vmem:[%s8607_s5 + $0x258] sm:$0xff] }
 0x401   : > { %v1932_v27 = vpop.f32.mrb[34].mxu1 }
 0x402   : > { %v1934_v28 = vpop.f32.mrb[35].mxu1 }
 0x405   : > { %v1937_v29 = vpop.f32.mrb[36].mxu1 }
 0x406   : > { %v1939_v30 = vpop.f32.mrb[37].mxu1 }
 0x407   : > { %v2142_v30 = vld [vmem:[%s8607_s5 + $0x80] sm:$0xff] }
 0x409   : > { %v1942_v31 = vpop.f32.mrb[38].mxu1 }
 0x40a   : > { %v1944_v32 = vpop.f32.mrb[39].mxu1 }
 0x40d   : > { %v1947_v34 = vpop.f32.mrb[40].mxu1 }
 0x40e   : > { %v1949_v36 = vpop.f32.mrb[41].mxu1 }
 0x40f   : > { %v2149_v36 = vld [vmem:[%s8607_s5 + $0xb8] sm:$0xff] }
 0x411   : > { %v7626_v37 = vpop.f32.mrb[42].mxu1 }
 0x412   : > { %v1954_v39 = vpop.f32.mrb[43].mxu1 }
 0x415   : > { %v7628_v41 = vpop.f32.mrb[44].mxu1 }
 0x416   : > { %v1959_v43 = vpop.f32.mrb[45].mxu1 }
 0x419   : > { %v7630_v24 = vpop.f32.mrb[46].mxu1 }
 0x41a   : > { %v1964_v33 = vpop.f32.mrb[47].mxu1 }
 0x435   : > { %v2061_v35 = vpop.f32.mrb[48].mxu1 }
 0x436   : > { %v2100_v42 = vmax.f32 %v1927_v22, %v2061_v35  ;;  %v2063_v44 = vpop.f32.mrb[49].mxu1  ;;  %v2146_v35 = vld [vmem:[%s8607_s5 + $0xa0] sm:$0xff] }
 0x438   : > { %2109 = vst.msk [vmem:[#allocation2] sm:$0xff] %vm2108_vm1, %v2100_v42  ;;  %v2148_v42 = vld [vmem:[%s8607_s5 + $0xb0] sm:$0xff] }
 0x439   : > { %v2066_v45 = vpop.f32.mrb[50].mxu1 }
 0x43a   : > { %v2101_v47 = vmax.f32 %v1932_v27, %v2066_v45  ;;  %v2068_v48 = vpop.f32.mrb[51].mxu1  ;;  %v2151_v45 = vld [vmem:[%s8607_s5 + $0xc8] sm:$0xff] }
 0x43c   : > { %2110 = vst.msk [vmem:[#allocation2 + $0x8] sm:$0xff] %vm2108_vm1, %v2101_v47  ;;  %v5508_v47 = vpack.c.bf16 %v2148_v42, %v2146_v35  ;;  %v4587_v42 = vld [vmem:[%s8607_s5 + $0x2a8] sm:$0xff] }
 0x43d   : > { %v2071_v49 = vpop.f32.mrb[52].mxu1 }
 0x43e   : > { %v2102_v50 = vmax.f32 %v1937_v29, %v2071_v49  ;;  %v2073_v51 = vpop.f32.mrb[53].mxu1  ;;  %v5502_v29 = vpack.c.bf16 %v2145_v20, %v2143_v19  ;;  %v2150_v49 = vld [vmem:[%s8607_s5 + $0xc0] sm:$0xff]  ;;  %v5530_v19 = vpack.c.bf16 %v4569_v18, %v4567_v16 }
 0x43f   : > { %v4566_v20 = vld [vmem:[%s8607_s5 + $0x240] sm:$0xff] }
 0x440   : > { %2111 = vst.msk [vmem:[#allocation2 + $0x10] sm:$0xff] %vm2108_vm1, %v2102_v50  ;;  %v2152_v50 = vld [vmem:[%s8607_s5 + $0xd0] sm:$0xff] }
 0x441   : > { %v2076_v58 = vpop.f32.mrb[54].mxu1  ;;  %v5512_v56 = vpack.c.bf16 %v2152_v50, %v2150_v49  ;;  %v4588_v49 = vld [vmem:[%s8607_s5 + $0x2b0] sm:$0xff] }
 0x442   : > { %v2103_v60 = vmax.f32 %v1942_v31, %v2076_v58  ;;  %v2078_v61 = vpop.f32.mrb[55].mxu1  ;;  %v2144_v31 = vld [vmem:[%s8607_s5 + $0x90] sm:$0xff] }
 0x443   : > { %v2154_v1 = vld [vmem:[#allocation2 + $0x1] sm:$0xff]  ;;  %v5504_v39 = vpack.c.bf16 %v2144_v31, %v2142_v30 }
 0x444   : > { %2112 = vst.msk [vmem:[#allocation2 + $0x18] sm:$0xff] %vm2108_vm1, %v2103_v60  ;;  %4534 = vmatmul.mubr.msk.f32.vlgmr.msra.gmra.mrb[64].mxu1 %vm2108_vm1, %v2154_v1  ;;  %v4552_v60 = vld [vmem:[%s8607_s5 + $0x1d0] sm:$0xff]  ;;  %v4570_v31 = vld [vmem:[%s8607_s5 + $0x260] sm:$0xff] }
 0x445   : > { %v2081_v10 = vpop.f32.mrb[56].mxu1  ;;  %2285 = vmatprep.mubr.f32.mxu1 %v6159_v46  ;;  %5489 = vmatpush1.bf16.msra.mxu1 %v5488_v59  ;;  %v4550_v59 = vld [vmem:[%s8607_s5 + $0x1c0] sm:$0xff] }
 0x446   : > { %v2104_v13 = vmax.f32 %v1947_v34, %v2081_v10  ;;  %v2083_v14 = vpop.f32.mrb[57].mxu1  ;;  %5491 = vmatprep.subr.bf16.mxu1 %v5490_v62  ;;  %v2147_v34 = vld [vmem:[%s8607_s5 + $0xa8] sm:$0xff]  ;;  %v5516_v0 = vpack.c.bf16 %v4552_v60, %v4550_v59  ;;  %v2118_v10 = vld [vmem:[#allocation2] sm:$0xff] }
 0x447   : > { %v2155_v25 = vld [vmem:[#allocation2 + $0x9] sm:$0xff]  ;;  %v5506_v33 = vpack.c.bf16 %v2149_v36, %v2147_v34  ;;  %v5520_v14 = vpack.c.bf16 %v4556_v4, %v4554_v2 }
 0x448   : > { %2113 = vst.msk [vmem:[#allocation2 + $0x20] sm:$0xff] %vm2108_vm1, %v2104_v13  ;;  %4535 = vmatmul.mubr.msk.f32.gmra.mrb[66].mxu1 %vm2108_vm1, %v2155_v25  ;;  %v4555_v62 = vld [vmem:[%s8607_s5 + $0x1e8] sm:$0xff]  ;;  %v4561_v13 = vld [vmem:[%s8607_s5 + $0x218] sm:$0xff] }
 0x449   : > { %v2086_v40 = vpop.f32.mrb[58].mxu1  ;;  %2291 = vmatprep.mubr.f32.mxu1 %v6159_v46  ;;  %5493 = vmatpush1.bf16.msra.mxu1 %v5492_v12  ;;  %v5518_v1 = vpack.c.bf16 %v4557_v63, %v4555_v62  ;;  %v4559_v12 = vld [vmem:[%s8607_s5 + $0x208] sm:$0xff] }
 0x44a   : > { %v2105_v55 = vmax.f32 %v7626_v37, %v2086_v40  ;;  %v2088_v3 = vpop.f32.mrb[59].mxu1  ;;  %5495 = vmatprep.subr.bf16.mxu1 %v5494_v15  ;;  %v5522_v15 = vpack.c.bf16 %v4561_v13, %v4559_v12  ;;  %v2119_v25 = vld [vmem:[#allocation2 + $0x8] sm:$0xff]  ;;  %v5524_v40 = vpack.c.bf16 %v4560_v11, %v4558_v9 }
 0x44b   : > { %v2156_v21 = vld [vmem:[#allocation2 + $0x11] sm:$0xff]  ;;  %v4575_v36 = vld [vmem:[%s8607_s5 + $0x288] sm:$0xff] }
 0x44c   : > { %2114 = vst.msk [vmem:[#allocation2 + $0x28] sm:$0xff] %vm2108_vm1, %v2105_v55  ;;  %4536 = vmatmul.mubr.msk.f32.gmra.mrb[68].mxu1 %vm2108_vm1, %v2156_v21  ;;  %v4562_v55 = vld [vmem:[%s8607_s5 + $0x220] sm:$0xff]  ;;  %v4564_v3 = vld [vmem:[%s8607_s5 + $0x230] sm:$0xff]  ;;  %v4595_v60 = vld [vmem:[%s8607_s5 + $0x2e8] sm:$0xff] }
 0x44d   : > { %v2091_v22 = vpop.f32.mrb[60].mxu1  ;;  %2297 = vmatprep.mubr.f32.mxu1 %v6159_v46  ;;  %5497 = vmatpush1.bf16.msra.mxu1 %v5496_v53  ;;  %v5526_v53 = vpack.c.bf16 %v4565_v38, %v4563_v26  ;;  %v5528_v21 = vpack.c.bf16 %v4564_v3, %v4562_v55  ;;  %v2465_v59 = vld [vmem:[#allocation2 + $0x2] sm:$0xff]  ;;  %v2466_v2 = vld [vmem:[#allocation2 + $0xa] sm:$0xff]  ;;  %v2467_v9 = vld [vmem:[#allocation2 + $0x12] sm:$0xff] }
 0x44e   : > { %v2106_v27 = vmax.f32 %v7628_v41, %v2091_v22  ;;  %v2093_v28 = vpop.f32.mrb[61].mxu1  ;;  %5499 = vmatprep.subr.bf16.mxu1 %v5498_v7  ;;  %v2120_v7 = vld [vmem:[#allocation2 + $0x10] sm:$0xff]  ;;  %v4599_v4 = vld [vmem:[%s8607_s5 + $0x308] sm:$0xff] }
 0x44f   : > { %v2157_v32 = vld [vmem:[#allocation2 + $0x19] sm:$0xff]  ;;  %v4568_v22 = vld [vmem:[%s8607_s5 + $0x250] sm:$0xff]  ;;  %v4603_v11 = vld [vmem:[%s8607_s5 + $0x328] sm:$0xff] }
 0x450   : > { %2115 = vst.msk [vmem:[#allocation2 + $0x30] sm:$0xff] %vm2108_vm1, %v2106_v27  ;;  %4537 = vmatmul.mubr.msk.f32.gmra.mrb[70].mxu1 %vm2108_vm1, %v2157_v32  ;;  %v4571_v27 = vld [vmem:[%s8607_s5 + $0x268] sm:$0xff]  ;;  %v4573_v28 = vld [vmem:[%s8607_s5 + $0x278] sm:$0xff]  ;;  %v4572_v32 = vld [vmem:[%s8607_s5 + $0x270] sm:$0xff] }
 0x451   : > { %v2096_v37 = vpop.f32.mrb[62].mxu1  ;;  %2303 = vmatprep.mubr.f32.mxu1 %v6159_v46  ;;  %5501 = vmatpush1.bf16.msra.mxu1 %v5500_v23  ;;  %v2121_v23 = vld [vmem:[#allocation2 + $0x18] sm:$0xff]  ;;  %v5534_v30 = vpack.c.bf16 %v4573_v28, %v4571_v27  ;;  %v2122_v34 = vld [vmem:[#allocation2 + $0x20] sm:$0xff]  ;;  %v4607_v3 = vld [vmem:[%s8607_s5 + $0x348] sm:$0xff] }
 0x452   : > { %v2107_v41 = vmax.f32 %v7630_v24, %v2096_v37  ;;  %v2098_v43 = vpop.f32.mrb[63].mxu1  ;;  %5503 = vmatprep.subr.bf16.mxu1 %v5502_v29  ;;  %v2153_v24 = vld [vmem:[%s8607_s5 + $0xd8] sm:$0xff]  ;;  %v5532_v29 = vpack.c.bf16 %v4568_v22, %v4566_v20  ;;  %v4611_v22 = vld [vmem:[%s8607_s5 + $0x368] sm:$0xff] }
 0x453   : > { %v2158_v44 = vld [vmem:[#allocation2 + $0x21] sm:$0xff]  ;;  %v5510_v48 = vpack.c.bf16 %v2153_v24, %v2151_v45  ;;  %v4577_v37 = vld [vmem:[%s8607_s5 + $0x298] sm:$0xff] }
 0x454   : > { %2116 = vst.msk [vmem:[#allocation2 + $0x38] sm:$0xff] %vm2108_vm1, %v2107_v41  ;;  %4538 = vmatmul.mubr.msk.f32.gmra.mrb[72].mxu1 %vm2108_vm1, %v2158_v44  ;;  %v5538_v41 = vpack.c.bf16 %v4577_v37, %v4575_v36  ;;  %v4574_v43 = vld [vmem:[%s8607_s5 + $0x280] sm:$0xff]  ;;  %v2123_v35 = vld [vmem:[#allocation2 + $0x28] sm:$0xff]  ;;  %v4589_v44 = vld [vmem:[%s8607_s5 + $0x2b8] sm:$0xff] }
 0x455   : > { %2309 = vmatprep.mubr.f32.mxu1 %v6159_v46  ;;  %5505 = vmatpush1.bf16.msra.mxu1 %v5504_v39  ;;  %v5536_v39 = vpack.c.bf16 %v4572_v32, %v4570_v31  ;;  %v5542_v24 = vpack.c.bf16 %v4589_v44, %v4587_v42  ;;  %v2468_v55 = vld [vmem:[#allocation2 + $0x1a] sm:$0xff]  ;;  %v2469_v20 = vld [vmem:[#allocation2 + $0x22] sm:$0xff] }
 0x456   : > { %5507 = vmatprep.subr.bf16.mxu1 %v5506_v33  ;;  %v4576_v33 = vld [vmem:[%s8607_s5 + $0x290] sm:$0xff]  ;;  %v4623_v32 = vld [vmem:[%s8607_s5 + $0x388] sm:$0xff]  ;;  %v4629_v42 = vld [vmem:[%s8607_s5 + $0x3b8] sm:$0xff] }
 0x457   : > { %v2159_v51 = vld [vmem:[#allocation2 + $0x29] sm:$0xff]  ;;  %v5540_v45 = vpack.c.bf16 %v4576_v33, %v4574_v43 }
 0x458   : > { %4539 = vmatmul.mubr.msk.f32.gmra.mrb[74].mxu1 %vm2108_vm1, %v2159_v51  ;;  %v4591_v51 = vld [vmem:[%s8607_s5 + $0x2c8] sm:$0xff]  ;;  %v4624_v43 = vld [vmem:[%s8607_s5 + $0x390] sm:$0xff] }
 0x459   : > { %2315 = vmatprep.mubr.f32.mxu1 %v6159_v46  ;;  %5509 = vmatpush1.bf16.msra.mxu1 %v5508_v47  ;;  %v2124_v47 = vld [vmem:[#allocation2 + $0x30] sm:$0xff] }
 0x45a   : > { %5511 = vmatprep.subr.bf16.mxu1 %v5510_v48  ;;  %v4586_v48 = vld [vmem:[%s8607_s5 + $0x2a0] sm:$0xff]  ;;  %v2470_v31 = vld [vmem:[#allocation2 + $0x2a] sm:$0xff] }
 0x45b   : > { %v2160_v58 = vld [vmem:[#allocation2 + $0x31] sm:$0xff]  ;;  %v2161_v61 = vld [vmem:[#allocation2 + $0x39] sm:$0xff]  ;;  %v5544_v54 = vpack.c.bf16 %v4588_v49, %v4586_v48  ;;  %v2655_v48 = vld [vmem:[#allocation2 + $0x3] sm:$0xff] }
 0x45c   : > { %4540 = vmatmul.mubr.msk.f32.gmra.mrb[76].mxu1 %vm2108_vm1, %v2160_v58  ;;  %v2125_v50 = vld [vmem:[#allocation2 + $0x38] sm:$0xff]  ;;  %v4592_v58 = vld [vmem:[%s8607_s5 + $0x2d0] sm:$0xff]  ;;  %v4631_v49 = vld [vmem:[%s8607_s5 + $0x3c8] sm:$0xff] }
 0x45d   : > { %2321 = vmatprep.mubr.f32.mxu1 %v6159_v46  ;;  %5513 = vmatpush1.bf16.msra.mxu1 %v5512_v56  ;;  %v5546_v56 = vpack.c.bf16 %v4593_v52, %v4591_v51  ;;  %v2472_v33 = vld [vmem:[#allocation2 + $0x3a] sm:$0xff] }
 0x45e   : > { %5515 = vmatprep.subr.bf16.mxu1 %v5514_v57  ;;  %v4590_v57 = vld [vmem:[%s8607_s5 + $0x2c0] sm:$0xff] }
 0x45f   : > { %v5548_v62 = vpack.c.bf16 %v4592_v58, %v4590_v57  ;;  %v2656_v57 = vld [vmem:[#allocation2 + $0xb] sm:$0xff] }
 0x460   : > { %4541 = vmatmul.mubr.msk.f32.gmra.mrb[78].mxu1 %vm2108_vm1, %v2161_v61  ;;  %v4597_v61 = vld [vmem:[%s8607_s5 + $0x2f8] sm:$0xff]  ;;  %v4635_v58 = vld [vmem:[%s8607_s5 + $0x3e8] sm:$0xff] }
 0x461   : > { %2416 = vmatprep.mubr.f32.mxu1 %v6159_v46  ;;  %v5550_v63 = vpack.c.bf16 %v4597_v61, %v4595_v60 }
 0x464   : > { %4542 = vmatmul.mubr.msk.f32.vlgmr.msra.gmra.mrb[64].mxu1 %vm2108_vm1, %v2118_v10  ;;  %v4601_v10 = vld [vmem:[%s8607_s5 + $0x318] sm:$0xff] }
 0x465   : > { %2422 = vmatprep.mubr.f32.mxu1 %v6159_v46  ;;  %5517 = vmatpush1.bf16.msra.mxu1 %v5516_v0  ;;  %v4594_v0 = vld [vmem:[%s8607_s5 + $0x2e0] sm:$0xff]  ;;  %v5554_v13 = vpack.c.bf16 %v4601_v10, %v4599_v4 }
 0x466   : > { %5519 = vmatprep.subr.bf16.mxu1 %v5518_v1  ;;  %v4596_v1 = vld [vmem:[%s8607_s5 + $0x2f0] sm:$0xff] }
 0x467   : > { %v5552_v12 = vpack.c.bf16 %v4596_v1, %v4594_v0  ;;  %v2657_v0 = vld [vmem:[#allocation2 + $0x13] sm:$0xff]  ;;  %v4639_v1 = vld [vmem:[%s8607_s5 + $0x408] sm:$0xff] }
 0x468   : > { %4543 = vmatmul.mubr.msk.f32.gmra.mrb[66].mxu1 %vm2108_vm1, %v2119_v25  ;;  %v4605_v25 = vld [vmem:[%s8607_s5 + $0x338] sm:$0xff] }
 0x469   : > { %2428 = vmatprep.mubr.f32.mxu1 %v6159_v46  ;;  %5521 = vmatpush1.bf16.msra.mxu1 %v5520_v14  ;;  %v4598_v14 = vld [vmem:[%s8607_s5 + $0x300] sm:$0xff]  ;;  %v5558_v38 = vpack.c.bf16 %v4605_v25, %v4603_v11 }
 0x46a   : > { %5523 = vmatprep.subr.bf16.mxu1 %v5522_v15  ;;  %v4600_v15 = vld [vmem:[%s8607_s5 + $0x310] sm:$0xff] }
 0x46b   : > { %v5556_v26 = vpack.c.bf16 %v4600_v15, %v4598_v14  ;;  %v2658_v14 = vld [vmem:[#allocation2 + $0x1b] sm:$0xff]  ;;  %v4643_v15 = vld [vmem:[%s8607_s5 + $0x428] sm:$0xff] }
 0x46c   : > { %4544 = vmatmul.mubr.msk.f32.gmra.mrb[68].mxu1 %vm2108_vm1, %v2120_v7  ;;  %v4609_v7 = vld [vmem:[%s8607_s5 + $0x358] sm:$0xff] }
 0x46d   : > { %2434 = vmatprep.mubr.f32.mxu1 %v6159_v46  ;;  %5525 = vmatpush1.bf16.msra.mxu1 %v5524_v40  ;;  %v4602_v40 = vld [vmem:[%s8607_s5 + $0x320] sm:$0xff]  ;;  %v5562_v18 = vpack.c.bf16 %v4609_v7, %v4607_v3 }
 0x46e   : > { %5527 = vmatprep.subr.bf16.mxu1 %v5526_v53  ;;  %v4604_v53 = vld [vmem:[%s8607_s5 + $0x330] sm:$0xff] }
 0x46f   : > { %v5560_v16 = vpack.c.bf16 %v4604_v53, %v4602_v40  ;;  %v2659_v40 = vld [vmem:[#allocation2 + $0x23] sm:$0xff] }
 0x470   : > { %4545 = vmatmul.mubr.msk.f32.gmra.mrb[70].mxu1 %vm2108_vm1, %v2121_v23  ;;  %v4613_v23 = vld [vmem:[%s8607_s5 + $0x378] sm:$0xff]  ;;  %v4647_v53 = vld [vmem:[%s8607_s5 + $0x448] sm:$0xff] }
 0x471   : > { %2440 = vmatprep.mubr.f32.mxu1 %v6159_v46  ;;  %5529 = vmatpush1.bf16.msra.mxu1 %v5528_v21  ;;  %v4606_v21 = vld [vmem:[%s8607_s5 + $0x340] sm:$0xff]  ;;  %v5566_v28 = vpack.c.bf16 %v4613_v23, %v4611_v22 }
 0x472   : > { %5531 = vmatprep.subr.bf16.mxu1 %v5530_v19  ;;  %v4608_v19 = vld [vmem:[%s8607_s5 + $0x350] sm:$0xff]  ;;  %v2662_v22 = vld [vmem:[#allocation2 + $0x3b] sm:$0xff]  ;;  %v2845_v23 = vld [vmem:[#allocation2 + $0x4] sm:$0xff] }
 0x473   : > { %v5564_v27 = vpack.c.bf16 %v4608_v19, %v4606_v21  ;;  %v2660_v21 = vld [vmem:[#allocation2 + $0x2b] sm:$0xff] }
 0x474   : > { %4546 = vmatmul.mubr.msk.f32.gmra.mrb[72].mxu1 %vm2108_vm1, %v2122_v34  ;;  %v4625_v34 = vld [vmem:[%s8607_s5 + $0x398] sm:$0xff] }
 0x475   : > { %2446 = vmatprep.mubr.f32.mxu1 %v6159_v46  ;;  %5533 = vmatpush1.bf16.msra.mxu1 %v5532_v29  ;;  %v4610_v29 = vld [vmem:[%s8607_s5 + $0x360] sm:$0xff]  ;;  %v5570_v37 = vpack.c.bf16 %v4625_v34, %v4623_v32  ;;  %v2851_v32 = vld [vmem:[#allocation2 + $0x34] sm:$0xff] }
 0x476   : > { %5535 = vmatprep.subr.bf16.mxu1 %v5534_v30  ;;  %v4612_v30 = vld [vmem:[%s8607_s5 + $0x370] sm:$0xff]  ;;  %v2852_v34 = vld [vmem:[#allocation2 + $0x3c] sm:$0xff] }
 0x477   : > { %v5568_v36 = vpack.c.bf16 %v4612_v30, %v4610_v29  ;;  %v2848_v29 = vld [vmem:[#allocation2 + $0x1c] sm:$0xff]  ;;  %v2849_v30 = vld [vmem:[#allocation2 + $0x24] sm:$0xff] }
 0x478   : > { %4547 = vmatmul.mubr.msk.f32.gmra.mrb[74].mxu1 %vm2108_vm1, %v2123_v35  ;;  %v4627_v35 = vld [vmem:[%s8607_s5 + $0x3a8] sm:$0xff] }
 0x479   : > { %2452 = vmatprep.mubr.f32.mxu1 %v6159_v46  ;;  %5537 = vmatpush1.bf16.msra.mxu1 %v5536_v39  ;;  %v2471_v39 = vld [vmem:[#allocation2 + $0x32] sm:$0xff] }
 0x47a   : > { %5539 = vmatprep.subr.bf16.mxu1 %v5538_v41  ;;  %v4622_v41 = vld [vmem:[%s8607_s5 + $0x380] sm:$0xff] }
 0x47b   : > { %v5572_v44 = vpack.c.bf16 %v4624_v43, %v4622_v41  ;;  %v4676_v41 = vld [vmem:[%s8610_s8 + $0xb0] sm:$0xff]  ;;  %v4677_v43 = vld [vmem:[%s8610_s8 + $0xb8] sm:$0xff] }
 0x47c   : > { %4548 = vmatmul.mubr.msk.f32.gmra.mrb[76].mxu1 %vm2108_vm1, %v2124_v47  ;;  %v4628_v47 = vld [vmem:[%s8607_s5 + $0x3b0] sm:$0xff] }
 0x47d   : > { %2458 = vmatprep.mubr.f32.mxu1 %v6159_v46  ;;  %5541 = vmatpush1.bf16.msra.mxu1 %v5540_v45  ;;  %v5574_v45 = vpack.c.bf16 %v4629_v42, %v4627_v35  ;;  %v4678_v35 = vld [vmem:[%s8610_s8 + $0xc0] sm:$0xff]  ;;  %v4679_v42 = vld [vmem:[%s8610_s8 + $0xc8] sm:$0xff] }
 0x47e   : > { %5543 = vmatprep.subr.bf16.mxu1 %v5542_v24  ;;  %v4626_v24 = vld [vmem:[%s8607_s5 + $0x3a0] sm:$0xff] }
 0x47f   : > { %v5576_v51 = vpack.c.bf16 %v4628_v47, %v4626_v24  ;;  %v4681_v24 = vld [vmem:[%s8610_s8 + $0xd8] sm:$0xff] }
 0x480   : > { %4549 = vmatmul.mubr.msk.f32.gmra.mrb[78].mxu1 %vm2108_vm1, %v2125_v50  ;;  %v4633_v50 = vld [vmem:[%s8607_s5 + $0x3d8] sm:$0xff] }
 0x481   : > { %2590 = vmatprep.mubr.f32.mxu1 %v6159_v46  ;;  %v5578_v52 = vpack.c.bf16 %v4633_v50, %v4631_v49  ;;  %v4683_v49 = vld [vmem:[%s8610_s8 + $0xe8] sm:$0xff] }
 0x484   : > { %4578 = vmatmul.mubr.msk.f32.vlgmr.msra.gmra.mrb[64].mxu1 %vm2108_vm1, %v2465_v59  ;;  %v4637_v59 = vld [vmem:[%s8607_s5 + $0x3f8] sm:$0xff] }
 0x485   : > { %2596 = vmatprep.mubr.f32.mxu1 %v6159_v46  ;;  %5545 = vmatpush1.bf16.msra.mxu1 %v5544_v54  ;;  %v4630_v54 = vld [vmem:[%s8607_s5 + $0x3c0] sm:$0xff]  ;;  %v5582_v61 = vpack.c.bf16 %v4637_v59, %v4635_v58 }
 0x486   : > { %5547 = vmatprep.subr.bf16.mxu1 %v5546_v56  ;;  %v4632_v56 = vld [vmem:[%s8607_s5 + $0x3d0] sm:$0xff]  ;;  %v3035_v59 = vld [vmem:[%s8608_s6] sm:$0x3] }
 0x487   : > { %v5580_v60 = vpack.c.bf16 %v4632_v56, %v4630_v54  ;;  %v4686_v56 = vld [vmem:[%s8610_s8 + $0x100] sm:$0xff] }
 0x488   : > { %4579 = vmatmul.mubr.msk.f32.gmra.mrb[66].mxu1 %vm2108_vm1, %v2466_v2  ;;  %v4641_v2 = vld [vmem:[%s8607_s5 + $0x418] sm:$0xff] }
 0x489   : > { %2602 = vmatprep.mubr.f32.mxu1 %v6159_v46  ;;  %5549 = vmatpush1.bf16.msra.mxu1 %v5548_v62  ;;  %v4634_v62 = vld [vmem:[%s8607_s5 + $0x3e0] sm:$0xff]  ;;  %v5586_v10 = vpack.c.bf16 %v4641_v2, %v4639_v1 }
 0x48a   : > { %5551 = vmatprep.subr.bf16.mxu1 %v5550_v63  ;;  %v4636_v63 = vld [vmem:[%s8607_s5 + $0x3f0] sm:$0xff] }
 0x48b   : > { %v5584_v4 = vpack.c.bf16 %v4636_v63, %v4634_v62  ;;  %v3044_v62 = vrot.slane %v3035_v59, %v869_v8 }
 0x48c   : > { %4580 = vmatmul.mubr.msk.f32.gmra.mrb[68].mxu1 %vm2108_vm1, %v2467_v9  ;;  %v4645_v9 = vld [vmem:[%s8607_s5 + $0x438] sm:$0xff] }
 0x48d   : > { %2608 = vmatprep.mubr.f32.mxu1 %v6159_v46  ;;  %5553 = vmatpush1.bf16.msra.mxu1 %v5552_v12  ;;  %v4638_v12 = vld [vmem:[%s8607_s5 + $0x400] sm:$0xff]  ;;  %v5590_v25 = vpack.c.bf16 %v4645_v9, %v4643_v15 }
 0x48e   : > { %5555 = vmatprep.subr.bf16.mxu1 %v5554_v13  ;;  %v4640_v13 = vld [vmem:[%s8607_s5 + $0x410] sm:$0xff] }
 0x48f   : > { %v5588_v11 = vpack.c.bf16 %v4640_v13, %v4638_v12 }
 0x490   : > { %4581 = vmatmul.mubr.msk.f32.gmra.mrb[70].mxu1 %vm2108_vm1, %v2468_v55  ;;  %v4649_v55 = vld [vmem:[%s8607_s5 + $0x458] sm:$0xff] }
 0x491   : > { %2614 = vmatprep.mubr.f32.mxu1 %v6159_v46  ;;  %5557 = vmatpush1.bf16.msra.mxu1 %v5556_v26  ;;  %v4642_v26 = vld [vmem:[%s8607_s5 + $0x420] sm:$0xff]  ;;  %v5594_v7 = vpack.c.bf16 %v4649_v55, %v4647_v53 }
 0x492   : > { %5559 = vmatprep.subr.bf16.mxu1 %v5558_v38  ;;  %v4644_v38 = vld [vmem:[%s8607_s5 + $0x430] sm:$0xff] }
 0x493   : > { %v5592_v3 = vpack.c.bf16 %v4644_v38, %v4642_v26 }
 0x494   : > { %4582 = vmatmul.mubr.msk.f32.gmra.mrb[72].mxu1 %vm2108_vm1, %v2469_v20  ;;  %v2661_v20 = vld [vmem:[#allocation2 + $0x33] sm:$0xff] }
 0x495   : > { %2620 = vmatprep.mubr.f32.mxu1 %v6159_v46  ;;  %5561 = vmatpush1.bf16.msra.mxu1 %v5560_v16  ;;  %v4646_v16 = vld [vmem:[%s8607_s5 + $0x440] sm:$0xff] }
 0x496   : > { %5563 = vmatprep.subr.bf16.mxu1 %v5562_v18  ;;  %v4648_v18 = vld [vmem:[%s8607_s5 + $0x450] sm:$0xff] }
 0x497   : > { %v5596_v19 = vpack.c.bf16 %v4648_v18, %v4646_v16 }
 0x498   : > { %4583 = vmatmul.mubr.msk.f32.gmra.mrb[74].mxu1 %vm2108_vm1, %v2470_v31  ;;  %v2850_v31 = vld [vmem:[#allocation2 + $0x2c] sm:$0xff] }
 0x499   : > { %2626 = vmatprep.mubr.f32.mxu1 %v6159_v46  ;;  %5565 = vmatpush1.bf16.msra.mxu1 %v5564_v27  ;;  %v2846_v27 = vld [vmem:[#allocation2 + $0xc] sm:$0xff] }
 0x49a   : > { %5567 = vmatprep.subr.bf16.mxu1 %v5566_v28  ;;  %v2847_v28 = vld [vmem:[#allocation2 + $0x14] sm:$0xff] }
 0x49c   : > { %4584 = vmatmul.mubr.msk.f32.gmra.mrb[76].mxu1 %vm2108_vm1, %v2471_v39 }
 0x49d   : > { %2632 = vmatprep.mubr.f32.mxu1 %v6159_v46  ;;  %5569 = vmatpush1.bf16.msra.mxu1 %v5568_v36  ;;  %v4674_v36 = vld [vmem:[%s8610_s8 + $0xa0] sm:$0xff] }
 0x49e   : > { %5571 = vmatprep.subr.bf16.mxu1 %v5570_v37  ;;  %v4675_v37 = vld [vmem:[%s8610_s8 + $0xa8] sm:$0xff] }
 0x49f   : > { %v5661_v39 = vpack.c.bf16 %v4675_v37, %v4674_v36 }
 0x4a0   : > { %4585 = vmatmul.mubr.msk.f32.gmra.mrb[78].mxu1 %vm2108_vm1, %v2472_v33  ;;  %v5664_v33 = vpack.c.bf16 %v4677_v43, %v4676_v41 }
 0x4a1   : > { %2780 = vmatprep.mubr.f32.mxu1 %v6159_v46 }
 0x4a4   : > { %4614 = vmatmul.mubr.msk.f32.vlgmr.msra.gmra.mrb[64].mxu1 %vm2108_vm1, %v2655_v48  ;;  %v4682_v48 = vld [vmem:[%s8610_s8 + $0xe0] sm:$0xff] }
 0x4a5   : > { %2786 = vmatprep.mubr.f32.mxu1 %v6159_v46  ;;  %5573 = vmatpush1.bf16.msra.mxu1 %v5572_v44  ;;  %v5667_v44 = vpack.c.bf16 %v4679_v42, %v4678_v35  ;;  %v5673_v50 = vpack.c.bf16 %v4683_v49, %v4682_v48 }
 0x4a6   : > { %5575 = vmatprep.subr.bf16.mxu1 %v5574_v45  ;;  %v4680_v45 = vld [vmem:[%s8610_s8 + $0xd0] sm:$0xff] }
 0x4a7   : > { %v5670_v47 = vpack.c.bf16 %v4681_v24, %v4680_v45 }
 0x4a8   : > { %4615 = vmatmul.mubr.msk.f32.gmra.mrb[66].mxu1 %vm2108_vm1, %v2656_v57  ;;  %v4687_v57 = vld [vmem:[%s8610_s8 + $0x108] sm:$0xff] }
 0x4a9   : > { %2792 = vmatprep.mubr.f32.mxu1 %v6159_v46  ;;  %5577 = vmatpush1.bf16.msra.mxu1 %v5576_v51  ;;  %v4684_v51 = vld [vmem:[%s8610_s8 + $0xf0] sm:$0xff]  ;;  %v5679_v58 = vpack.c.bf16 %v4687_v57, %v4686_v56  ;;  %v3079_v56 = vld [vmem:[%s8609_s7] sm:$0xff]  ;;  %v3080_v57 = vld [vmem:[%s8609_s7 + $0x8] sm:$0xff] }
 0x4aa   : > { %5579 = vmatprep.subr.bf16.mxu1 %v5578_v52  ;;  %v4685_v52 = vld [vmem:[%s8610_s8 + $0xf8] sm:$0xff] }
 0x4ab   : > { %v5676_v54 = vpack.c.bf16 %v4685_v52, %v4684_v51 }
 0x4ac   : > { %4616 = vmatmul.mubr.msk.f32.gmra.mrb[68].mxu1 %vm2108_vm1, %v2657_v0 }
 0x4ad   : > { %2798 = vmatprep.mubr.f32.mxu1 %v6159_v46  ;;  %5581 = vmatpush1.bf16.msra.mxu1 %v5580_v60  ;;  %v3040_v60 = vrot.slane %v3035_v59, %v865_v6  ;;  %v3082_v59 = vld [vmem:[%s8609_s7 + $0x18] sm:$0xff] }
 0x4ae   : > { %5583 = vmatprep.subr.bf16.mxu1 %v5582_v61 }
 0x4b0   : > { %4617 = vmatmul.mubr.msk.f32.gmra.mrb[70].mxu1 %vm2108_vm1, %v2658_v14 }
 0x4b1   : > { %2804 = vmatprep.mubr.f32.mxu1 %v6159_v46  ;;  %5585 = vmatpush1.bf16.msra.mxu1 %v5584_v4 }
 0x4b2   : > { %5587 = vmatprep.subr.bf16.mxu1 %v5586_v10 }
 0x4b4   : > { %4618 = vmatmul.mubr.msk.f32.gmra.mrb[72].mxu1 %vm2108_vm1, %v2659_v40 }
 0x4b5   : > { %2810 = vmatprep.mubr.f32.mxu1 %v6159_v46  ;;  %5589 = vmatpush1.bf16.msra.mxu1 %v5588_v11 }
 0x4b6   : > { %5591 = vmatprep.subr.bf16.mxu1 %v5590_v25 }
 0x4b8   : > { %4619 = vmatmul.mubr.msk.f32.gmra.mrb[74].mxu1 %vm2108_vm1, %v2660_v21 }
 0x4b9   : > { %2816 = vmatprep.mubr.f32.mxu1 %v6159_v46  ;;  %5593 = vmatpush1.bf16.msra.mxu1 %v5592_v3 }
 0x4ba   : > { %5595 = vmatprep.subr.bf16.mxu1 %v5594_v7 }
 0x4bc   : > { %4620 = vmatmul.mubr.msk.f32.gmra.mrb[76].mxu1 %vm2108_vm1, %v2661_v20 }
 0x4bd   : > { %2822 = vmatprep.mubr.f32.mxu1 %v6159_v46  ;;  %5597 = vmatpush1.bf16.msra.mxu1 %v5596_v19 }
 0x4be   : > { %5660 = vmatprep.subr.bf16.mxu1 %v6160_v17 }
 0x4c0   : > { %4621 = vmatmul.mubr.msk.f32.gmra.mrb[78].mxu1 %vm2108_vm1, %v2662_v22 }
 0x4c1   : > { %2970 = vmatprep.mubr.f32.mxu1 %v6159_v46 }
 0x4c4   : > { %4650 = vmatmul.mubr.msk.f32.vlgmr.msra.gmra.mrb[64].mxu1 %vm2108_vm1, %v2845_v23 }
 0x4c5   : > { %2976 = vmatprep.mubr.f32.mxu1 %v6159_v46  ;;  %5662 = vmatpush1.bf16.msra.mxu1 %v5661_v39 }
 0x4c6   : > { %5663 = vmatprep.subr.bf16.mxu1 %v6160_v17 }
 0x4c8   : > { %4651 = vmatmul.mubr.msk.f32.gmra.mrb[66].mxu1 %vm2108_vm1, %v2846_v27 }
 0x4c9   : > { %2982 = vmatprep.mubr.f32.mxu1 %v6159_v46  ;;  %5665 = vmatpush1.bf16.msra.mxu1 %v5664_v33 }
 0x4ca   : > { %5666 = vmatprep.subr.bf16.mxu1 %v6160_v17 }
 0x4cc   : > { %4652 = vmatmul.mubr.msk.f32.gmra.mrb[68].mxu1 %vm2108_vm1, %v2847_v28 }
 0x4cd   : > { %2988 = vmatprep.mubr.f32.mxu1 %v6159_v46  ;;  %5668 = vmatpush1.bf16.msra.mxu1 %v5667_v44 }
 0x4ce   : > { %5669 = vmatprep.subr.bf16.mxu1 %v6160_v17 }
 0x4d0   : > { %4653 = vmatmul.mubr.msk.f32.gmra.mrb[70].mxu1 %vm2108_vm1, %v2848_v29 }
 0x4d1   : > { %2994 = vmatprep.mubr.f32.mxu1 %v6159_v46  ;;  %5671 = vmatpush1.bf16.msra.mxu1 %v5670_v47 }
 0x4d2   : > { %5672 = vmatprep.subr.bf16.mxu1 %v6160_v17 }
 0x4d4   : > { %4654 = vmatmul.mubr.msk.f32.gmra.mrb[72].mxu1 %vm2108_vm1, %v2849_v30 }
 0x4d5   : > { %3000 = vmatprep.mubr.f32.mxu1 %v6159_v46  ;;  %5674 = vmatpush1.bf16.msra.mxu1 %v5673_v50 }
 0x4d6   : > { %5675 = vmatprep.subr.bf16.mxu1 %v6160_v17 }
 0x4d8   : > { %4655 = vmatmul.mubr.msk.f32.gmra.mrb[74].mxu1 %vm2108_vm1, %v2850_v31 }
 0x4d9   : > { %3006 = vmatprep.mubr.f32.mxu1 %v6159_v46  ;;  %5677 = vmatpush1.bf16.msra.mxu1 %v5676_v54 }
 0x4da   : > { %5678 = vmatprep.subr.bf16.mxu1 %v6160_v17 }
 0x4dc   : > { %4656 = vmatmul.mubr.msk.f32.gmra.mrb[76].mxu1 %vm2108_vm1, %v2851_v32 }
 0x4dd   : > { %3012 = vmatprep.mubr.f32.mxu1 %v6159_v46  ;;  %5680 = vmatpush1.bf16.msra.mxu1 %v5679_v58  ;;  %v3081_v58 = vld [vmem:[%s8609_s7 + $0x10] sm:$0xff] }
 0x4de   : > { %5681 = vmatprep.subr.bf16.mxu1 %v6160_v17 }
 0x4e0   : > { %4657 = vmatmul.mubr.msk.f32.gmra.mrb[78].mxu1 %vm2108_vm1, %v2852_v34 }
 0x597   : > { %v2972_v61 = vpop.f32.mrb[64].mxu1 }
 0x598   : > { %v2974_v63 = vpop.f32.mrb[65].mxu1  ;;  %v3047_v0 = vadd.f32 %v3040_v60, %v2972_v61  ;;  %v3300_v61 = vld [vmem:[%s8610_s8 + $0x8] sm:$0xff] }
 0x599   : > { %v3048_v1 = vadd.f32 %v3044_v62, %v2974_v63 }
 0x59a   : > { %v3063_v13 = vmax.f32 %v3047_v0, 0.0  ;;  %v3301_v0 = vld [vmem:[%s8610_s8 + $0x10] sm:$0xff] }
 0x59b   : > { %v2978_v2 = vpop.f32.mrb[66].mxu1  ;;  %v3064_v15 = vmax.f32 %v3048_v1, 0.0  ;;  %v3302_v1 = vld [vmem:[%s8610_s8 + $0x18] sm:$0xff] }
 0x59c   : > { %v3049_v4 = vadd.f32 %v3040_v60, %v2978_v2  ;;  %v2980_v10 = vpop.f32.mrb[67].mxu1  ;;  %v4663_v2 = vld [vmem:[%s8609_s7 + $0x28] sm:$0xff] }
 0x59d   : > { %v3050_v12 = vadd.f32 %v3044_v62, %v2980_v10  ;;  %v3303_v10 = vld [vmem:[%s8610_s8 + $0x20] sm:$0xff] }
 0x59e   : > { %v3065_v14 = vmax.f32 %v3049_v4, 0.0  ;;  %v5634_v4 = vpack.c.bf16 %v3302_v1, %v3301_v0 }
 0x59f   : > { %v3066_v9 = vmax.f32 %v3050_v12, 0.0  ;;  %v2984_v11 = vpop.f32.mrb[68].mxu1  ;;  %v3304_v12 = vld [vmem:[%s8610_s8 + $0x28] sm:$0xff] }
 0x5a0   : > { %v5600_v25 = vpack.c.bf16 %v3065_v14, %v3063_v13  ;;  %v2986_v26 = vpop.f32.mrb[69].mxu1  ;;  %v3051_v6 = vadd.f32 %v3040_v60, %v2984_v11  ;;  %v4664_v13 = vld [vmem:[%s8609_s7 + $0x30] sm:$0xff]  ;;  %v5637_v14 = vpack.c.bf16 %v3304_v12, %v3303_v10  ;;  %v4665_v11 = vld [vmem:[%s8609_s7 + $0x38] sm:$0xff] }
 0x5a1   : > { %v5598_v38 = vpack.c.bf16 %v3066_v9, %v3064_v15  ;;  %v3052_v40 = vadd.f32 %v3044_v62, %v2986_v26  ;;  %v3305_v15 = vld [vmem:[%s8610_s8 + $0x30] sm:$0xff]  ;;  %v3306_v9 = vld [vmem:[%s8610_s8 + $0x38] sm:$0xff]  ;;  %v3307_v26 = vld [vmem:[%s8610_s8 + $0x40] sm:$0xff] }
 0x5a2   : > { %v3067_v3 = vmax.f32 %v3051_v6, 0.0 }
 0x5a3   : > { %v2990_v53 = vpop.f32.mrb[70].mxu1  ;;  %5599 = vmatprep.subr.bf16.mxu0 %v5598_v38  ;;  %v3068_v16 = vmax.f32 %v3052_v40, 0.0  ;;  %v3309_v40 = vld [vmem:[%s8610_s8 + $0x50] sm:$0xff] }
 0x5a4   : > { %v3053_v5 = vadd.f32 %v3040_v60, %v2990_v53  ;;  %v2992_v8 = vpop.f32.mrb[71].mxu1  ;;  %5601 = vmatpush1.bf16.msra.mxu0 %v5600_v25  ;;  %v3310_v53 = vld [vmem:[%s8610_s8 + $0x58] sm:$0xff] }
 0x5a5   : > { %v3054_v55 = vadd.f32 %v3044_v62, %v2992_v8  ;;  %v3311_v8 = vld [vmem:[%s8610_s8 + $0x60] sm:$0xff] }
 0x5a6   : > { %v3069_v7 = vmax.f32 %v3053_v5, 0.0  ;;  %v5646_v5 = vpack.c.bf16 %v3310_v53, %v3309_v40  ;;  %v3543_v53 = vld [vmem:[%s8611_s9 + $0x30] sm:$0xff] }
 0x5a7   : > { %v3070_v18 = vmax.f32 %v3054_v55, 0.0  ;;  %v2996_v21 = vpop.f32.mrb[72].mxu1  ;;  %v3312_v55 = vld [vmem:[%s8610_s8 + $0x68] sm:$0xff] }
 0x5a8   : > { %v5604_v19 = vpack.c.bf16 %v3069_v7, %v3067_v3  ;;  %v2998_v20 = vpop.f32.mrb[73].mxu1  ;;  %v3055_v23 = vadd.f32 %v3040_v60, %v2996_v21  ;;  %v5649_v3 = vpack.c.bf16 %v3312_v55, %v3311_v8  ;;  %v3313_v7 = vld [vmem:[%s8610_s8 + $0x70] sm:$0xff] }
 0x5a9   : > { %v5602_v22 = vpack.c.bf16 %v3070_v18, %v3068_v16  ;;  %v3056_v27 = vadd.f32 %v3044_v62, %v2998_v20  ;;  %v3314_v16 = vld [vmem:[%s8610_s8 + $0x78] sm:$0xff]  ;;  %v4688_v18 = vld [vmem:[%s8610_s8 + $0x110] sm:$0xff] }
 0x5aa   : > { %v3071_v32 = vmax.f32 %v3055_v23, 0.0  ;;  %v5652_v21 = vpack.c.bf16 %v3314_v16, %v3313_v7  ;;  %v3316_v23 = vld [vmem:[%s8610_s8 + $0x88] sm:$0xff]  ;;  %v4702_v55 = vld [vmem:[%s8611_s9 + $0x70] sm:$0xff]  ;;  %v3545_v7 = vld [vmem:[%s8611_s9 + $0x40] sm:$0xff] }
 0x5ab   : > { %v3002_v28 = vpop.f32.mrb[74].mxu1  ;;  %5603 = vmatprep.subr.bf16.mxu0 %v5602_v22  ;;  %v3072_v36 = vmax.f32 %v3056_v27, 0.0  ;;  %v4690_v27 = vld [vmem:[%s8610_s8 + $0x120] sm:$0xff]  ;;  %v3546_v16 = vld [vmem:[%s8611_s9 + $0x48] sm:$0xff] }
 0x5ac   : > { %v3057_v29 = vadd.f32 %v3040_v60, %v3002_v28  ;;  %v3004_v30 = vpop.f32.mrb[75].mxu1  ;;  %5605 = vmatpush1.bf16.msra.mxu0 %v5604_v19 }
 0x5ad   : > { %v3058_v31 = vadd.f32 %v3044_v62, %v3004_v30 }
 0x5ae   : > { %v3073_v34 = vmax.f32 %v3057_v29, 0.0  ;;  %v4691_v29 = vld [vmem:[%s8610_s8 + $0x128] sm:$0xff] }
 0x5af   : > { %v3074_v37 = vmax.f32 %v3058_v31, 0.0  ;;  %v3008_v39 = vpop.f32.mrb[76].mxu1  ;;  %v5685_v30 = vpack.c.bf16 %v4691_v29, %v4690_v27  ;;  %v3317_v31 = vld [vmem:[%s8610_s8 + $0x90] sm:$0xff] }
 0x5b0   : > { %v5608_v41 = vpack.c.bf16 %v3073_v34, %v3071_v32  ;;  %v3010_v43 = vpop.f32.mrb[77].mxu1  ;;  %v3059_v35 = vadd.f32 %v3040_v60, %v3008_v39  ;;  %v3318_v32 = vld [vmem:[%s8610_s8 + $0x98] sm:$0xff]  ;;  %v4692_v34 = vld [vmem:[%s8610_s8 + $0x130] sm:$0xff] }
 0x5b1   : > { %v5606_v33 = vpack.c.bf16 %v3074_v37, %v3072_v36  ;;  %v3060_v42 = vadd.f32 %v3044_v62, %v3010_v43  ;;  %v5658_v36 = vpack.c.bf16 %v3318_v32, %v3317_v31  ;;  %v4693_v37 = vld [vmem:[%s8610_s8 + $0x138] sm:$0xff]  ;;  %v3538_v43 = vld [vmem:[%s8611_s9 + $0x8] sm:$0xff]  ;;  %v4706_v29 = vld [vmem:[%s8611_s9 + $0x90] sm:$0xff] }
 0x5b2   : > { %v3075_v48 = vmax.f32 %v3059_v35, 0.0  ;;  %v5688_v39 = vpack.c.bf16 %v4693_v37, %v4692_v34 }
 0x5b3   : > { %v3014_v44 = vpop.f32.mrb[78].mxu1  ;;  %5607 = vmatprep.subr.bf16.mxu0 %v5606_v33  ;;  %v3076_v50 = vmax.f32 %v3060_v42, 0.0 }
 0x5b4   : > { %v3061_v45 = vadd.f32 %v3040_v60, %v3014_v44  ;;  %v3016_v24 = vpop.f32.mrb[79].mxu1  ;;  %5609 = vmatpush1.bf16.msra.mxu0 %v5608_v41  ;;  %v3299_v60 = vld [vmem:[%s8610_s8] sm:$0xff] }
 0x5b5   : > { %v3062_v47 = vadd.f32 %v3044_v62, %v3016_v24  ;;  %v4662_v62 = vld [vmem:[%s8609_s7 + $0x20] sm:$0xff]  ;;  %v5631_v63 = vpack.c.bf16 %v3300_v61, %v3299_v60 }
 0x5b6   : > { %v3077_v49 = vmax.f32 %v3061_v45, 0.0 }
 0x5b7   : > { %v3078_v51 = vmax.f32 %v3062_v47, 0.0 }
 0x5b8   : > { %v5612_v52 = vpack.c.bf16 %v3077_v49, %v3075_v48 }
 0x5b9   : > { %v5610_v54 = vpack.c.bf16 %v3078_v51, %v3076_v50  ;;  %v3539_v51 = vld [vmem:[%s8611_s9 + $0x10] sm:$0xff] }
 0x5bb   : > { %5611 = vmatprep.subr.bf16.mxu0 %v5610_v54 }
 0x5bc   : > { %5613 = vmatpush1.bf16.msra.mxu0 %v5612_v52 }
 0x5bd   : > { %5615 = vmatprep.subr.bf16.mxu0 %v5598_v38  ;;  %v3308_v38 = vld [vmem:[%s8610_s8 + $0x48] sm:$0xff] }
 0x5be   : > { %v5643_v6 = vpack.c.bf16 %v3308_v38, %v3307_v26  ;;  %v4700_v38 = vld [vmem:[%s8611_s9 + $0x60] sm:$0xff] }
 0x5bf   : > { %4658 = vmatmul.mubr.msk.f32.vlgmr.msra.gmra.mrb[32].mxu0 %vm3083_vm2, %v3079_v56 }
 0x5c0   : > { %5617 = vmatpush1.bf16.msra.mxu0 %v5600_v25  ;;  %3166 = vmatprep.mubr.f32.mxu0 %v6159_v46  ;;  %v5640_v25 = vpack.c.bf16 %v3306_v9, %v3305_v15  ;;  %v4699_v15 = vld [vmem:[%s8611_s9 + $0x58] sm:$0xff] }
 0x5c1   : > { %5619 = vmatprep.subr.bf16.mxu0 %v5602_v22  ;;  %v3315_v22 = vld [vmem:[%s8610_s8 + $0x80] sm:$0xff] }
 0x5c2   : > { %v5655_v28 = vpack.c.bf16 %v3316_v23, %v3315_v22  ;;  %v4716_v22 = vld [vmem:[%s8611_s9 + $0xa0] sm:$0xff]  ;;  %v4717_v23 = vld [vmem:[%s8611_s9 + $0xa8] sm:$0xff] }
 0x5c3   : > { %4659 = vmatmul.mubr.msk.f32.gmra.mrb[34].mxu0 %vm3083_vm2, %v3080_v57 }
 0x5c4   : > { %5621 = vmatpush1.bf16.msra.mxu0 %v5604_v19  ;;  %3172 = vmatprep.mubr.f32.mxu0 %v6159_v46  ;;  %v4689_v19 = vld [vmem:[%s8610_s8 + $0x118] sm:$0xff] }
 0x5c5   : > { %5623 = vmatprep.subr.bf16.mxu0 %v5606_v33  ;;  %v5682_v20 = vpack.c.bf16 %v4689_v19, %v4688_v18  ;;  %v4704_v19 = vld [vmem:[%s8611_s9 + $0x80] sm:$0xff] }
 0x5c7   : > { %4660 = vmatmul.mubr.msk.f32.gmra.mrb[36].mxu0 %vm3083_vm2, %v3081_v58  ;;  %5683 = vmatpush1.bf16.msra.mxu1 %v5682_v20  ;;  %v4705_v20 = vld [vmem:[%s8611_s9 + $0x88] sm:$0xff] }
 0x5c8   : > { %5625 = vmatpush1.bf16.msra.mxu0 %v5608_v41  ;;  %3178 = vmatprep.mubr.f32.mxu0 %v6159_v46  ;;  %v3537_v41 = vld [vmem:[%s8611_s9] sm:$0xff]  ;;  %v5702_v27 = vpack.c.bf16 %v4705_v20, %v4704_v19  ;;  %v4737_v20 = vld [vmem:[%s8611_s9 + $0x128] sm:$0xff] }
 0x5c9   : > { %5627 = vmatprep.subr.bf16.mxu0 %v5610_v54  ;;  %5684 = vmatprep.subr.bf16.mxu1 %v6160_v17  ;;  %v5710_v33 = vpack.c.bf16 %v3538_v43, %v3537_v41  ;;  %v4736_v19 = vld [vmem:[%s8611_s9 + $0x120] sm:$0xff] }
 0x5cb   : > { %4661 = vmatmul.mubr.msk.f32.gmra.mrb[38].mxu0 %vm3083_vm2, %v3082_v59  ;;  %5686 = vmatpush1.bf16.msra.mxu1 %v5685_v30  ;;  %v4707_v30 = vld [vmem:[%s8611_s9 + $0x98] sm:$0xff] }
 0x5cc   : > { %5629 = vmatpush1.bf16.msra.mxu0 %v5612_v52  ;;  %3266 = vmatprep.mubr.f32.mxu0 %v6159_v46  ;;  %v3540_v52 = vld [vmem:[%s8611_s9 + $0x18] sm:$0xff]  ;;  %v5706_v31 = vpack.c.bf16 %v4707_v30, %v4706_v29  ;;  %v4744_v30 = vld [vmem:[%s8611_s9 + $0x140] sm:$0xff] }
 0x5cd   : > { %5630 = vmatprep.subr.bf16.mxu0 %v6160_v17  ;;  %5687 = vmatprep.subr.bf16.mxu1 %v6160_v17  ;;  %v5714_v58 = vpack.c.bf16 %v3540_v52, %v3539_v51  ;;  %v4719_v51 = vld [vmem:[%s8611_s9 + $0xb8] sm:$0xff] }
 0x5cf   : > { %4666 = vmatmul.mubr.msk.f32.vlgmr.msra.gmra.mrb[40].mxu0 %vm3083_vm2, %v4662_v62  ;;  %5689 = vmatpush1.bf16.msra.mxu1 %v5688_v39 }
 0x5d0   : > { %3272 = vmatprep.mubr.f32.mxu0 %v6159_v46  ;;  %5632 = vmatpush1.bf16.msra.mxu0 %v5631_v63 }
 0x5d1   : > { %5633 = vmatprep.subr.bf16.mxu0 %v6160_v17 }
 0x5d3   : > { %4667 = vmatmul.mubr.msk.f32.gmra.mrb[42].mxu0 %vm3083_vm2, %v4663_v2 }
 0x5d4   : > { %3278 = vmatprep.mubr.f32.mxu0 %v6159_v46  ;;  %5635 = vmatpush1.bf16.msra.mxu0 %v5634_v4 }
 0x5d5   : > { %5636 = vmatprep.subr.bf16.mxu0 %v6160_v17 }
 0x5d7   : > { %4668 = vmatmul.mubr.msk.f32.gmra.mrb[44].mxu0 %vm3083_vm2, %v4664_v13 }
 0x5d8   : > { %3284 = vmatprep.mubr.f32.mxu0 %v6159_v46  ;;  %5638 = vmatpush1.bf16.msra.mxu0 %v5637_v14  ;;  %v4698_v14 = vld [vmem:[%s8611_s9 + $0x50] sm:$0xff] }
 0x5d9   : > { %5639 = vmatprep.subr.bf16.mxu0 %v6160_v17  ;;  %v5690_v9 = vpack.c.bf16 %v4699_v15, %v4698_v14  ;;  %v4725_v15 = vld [vmem:[%s8611_s9 + $0xe8] sm:$0xff] }
 0x5db   : > { %4669 = vmatmul.mubr.msk.f32.gmra.mrb[46].mxu0 %vm3083_vm2, %v4665_v11  ;;  %v3541_v11 = vld [vmem:[%s8611_s9 + $0x20] sm:$0xff]  ;;  %5691 = vmatprep.subr.bf16.mxu1 %v5690_v9 }
 0x5dc   : > { %5641 = vmatpush1.bf16.msra.mxu0 %v5640_v25  ;;  %v3542_v25 = vld [vmem:[%s8611_s9 + $0x28] sm:$0xff] }
 0x5dd   : > { %5642 = vmatprep.subr.bf16.mxu0 %v6160_v17  ;;  %v5718_v26 = vpack.c.bf16 %v3542_v25, %v3541_v11 }
 0x5e0   : > { %5644 = vmatpush1.bf16.msra.mxu0 %v5643_v6  ;;  %v4701_v6 = vld [vmem:[%s8611_s9 + $0x68] sm:$0xff] }
 0x5e1   : > { %5645 = vmatprep.subr.bf16.mxu0 %v6160_v17  ;;  %v5694_v40 = vpack.c.bf16 %v4701_v6, %v4700_v38  ;;  %v4730_v38 = vld [vmem:[%s8611_s9 + $0xf0] sm:$0xff]  ;;  %v4731_v6 = vld [vmem:[%s8611_s9 + $0xf8] sm:$0xff] }
 0x5e4   : > { %5647 = vmatpush1.bf16.msra.mxu0 %v5646_v5  ;;  %v3544_v5 = vld [vmem:[%s8611_s9 + $0x38] sm:$0xff] }
 0x5e5   : > { %5648 = vmatprep.subr.bf16.mxu0 %v6160_v17  ;;  %v5722_v8 = vpack.c.bf16 %v3544_v5, %v3543_v53  ;;  %v4732_v53 = vld [vmem:[%s8611_s9 + $0x100] sm:$0xff]  ;;  %v4733_v5 = vld [vmem:[%s8611_s9 + $0x108] sm:$0xff] }
 0x5e8   : > { %5650 = vmatpush1.bf16.msra.mxu0 %v5649_v3  ;;  %v4703_v3 = vld [vmem:[%s8611_s9 + $0x78] sm:$0xff] }
 0x5e9   : > { %5651 = vmatprep.subr.bf16.mxu0 %v6160_v17  ;;  %v5698_v18 = vpack.c.bf16 %v4703_v3, %v4702_v55  ;;  %v4734_v3 = vld [vmem:[%s8611_s9 + $0x110] sm:$0xff] }
 0x5ec   : > { %5653 = vmatpush1.bf16.msra.mxu0 %v5652_v21  ;;  %v5726_v21 = vpack.c.bf16 %v3546_v16, %v3545_v7  ;;  %v4735_v7 = vld [vmem:[%s8611_s9 + $0x118] sm:$0xff] }
 0x5ed   : > { %5654 = vmatprep.subr.bf16.mxu0 %v6160_v17 }
 0x5f0   : > { %5656 = vmatpush1.bf16.msra.mxu0 %v5655_v28  ;;  %v5730_v28 = vpack.c.bf16 %v4717_v23, %v4716_v22  ;;  %v5762_v23 = vpack.c.bf16 %v4737_v20, %v4736_v19 }
 0x5f1   : > { %5657 = vmatprep.subr.bf16.mxu0 %v6160_v17 }
 0x5f4   : > { %5659 = vmatpush1.bf16.msra.mxu0 %v5658_v36 }
 0x5f5   : > { %5711 = vmatprep.subr.bf16.mxu0 %v5710_v33 }
 0x692   : > { %v3162_v35 = vpop.f32.mrb[32].mxu0 }
 0x693   : > { %v3164_v42 = vpop.f32.mrb[33].mxu0 }
 0x696   : > { %v3168_v44 = vpop.f32.mrb[34].mxu0 }
 0x697   : > { %v3170_v45 = vpop.f32.mrb[35].mxu0 }
 0x69a   : > { %v3174_v24 = vpop.f32.mrb[36].mxu0 }
 0x69b   : > { %v3176_v47 = vpop.f32.mrb[37].mxu0 }
 0x69e   : > { %v3180_v48 = vpop.f32.mrb[38].mxu0 }
 0x69f   : > { %v3182_v49 = vpop.f32.mrb[39].mxu0 }
 0x6a2   : > { %v3268_v50 = vpop.f32.mrb[40].mxu0 }
 0x6a3   : > { %v3291_v54 = vmax.f32 %v3162_v35, %v3268_v50  ;;  %v3270_v56 = vpop.f32.mrb[41].mxu0  ;;  %v4718_v50 = vld [vmem:[%s8611_s9 + $0xb0] sm:$0xff] }
 0x6a4   : > { %v3292_v57 = vmax.f32 %v3164_v42, %v3270_v56 }
 0x6a6   : > { %v3274_v59 = vpop.f32.mrb[42].mxu0  ;;  %4670 = vmatprep.mubr.msk.f32.mxu0 %vm3319_vm3, %v3292_v57  ;;  %4694 = vmatprep.mubr.msk.f32.mxu1 %vm3319_vm3, %v3292_v57  ;;  %v5734_v57 = vpack.c.bf16 %v4719_v51, %v4718_v50 }
 0x6a7   : > { %v3293_v60 = vmax.f32 %v3168_v44, %v3274_v59  ;;  %v3276_v61 = vpop.f32.mrb[43].mxu0  ;;  %3397 = vmatmul.mubr.f32.vlgmr.msra.gmra.mrb[48].mxu0 %v3291_v54  ;;  %3503 = vmatmul.mubr.f32.vlgmr.msra.gmra.mrb[80].mxu1 %v3291_v54 }
 0x6a8   : > { %v3294_v62 = vmax.f32 %v3170_v45, %v3276_v61  ;;  %5713 = vmatpush3.bf16.msra.mxu0 %v5710_v33  ;;  %5693 = vmatpush3.bf16.msra.mxu1 %v5690_v9 }
 0x6a9   : > { %5715 = vmatprep.subr.bf16.mxu0 %v5714_v58  ;;  %5695 = vmatprep.subr.bf16.mxu1 %v5694_v40 }
 0x6aa   : > { %4671 = vmatprep.mubr.msk.f32.mxu0 %vm3319_vm3, %v3294_v62  ;;  %4695 = vmatprep.mubr.msk.f32.mxu1 %vm3319_vm3, %v3294_v62  ;;  %v3280_v63 = vpop.f32.mrb[44].mxu0  ;;  %v4721_v62 = vld [vmem:[%s8611_s9 + $0xc8] sm:$0xff] }
 0x6ab   : > { %3402 = vmatmul.mubr.f32.gmra.mrb[50].mxu0 %v3293_v60  ;;  %3508 = vmatmul.mubr.f32.gmra.mrb[82].mxu1 %v3293_v60  ;;  %v3295_v0 = vmax.f32 %v3174_v24, %v3280_v63  ;;  %v3282_v1 = vpop.f32.mrb[45].mxu0 }
 0x6ac   : > { %v3296_v2 = vmax.f32 %v3176_v47, %v3282_v1  ;;  %5717 = vmatpush3.bf16.msra.mxu0 %v5714_v58  ;;  %5697 = vmatpush3.bf16.msra.mxu1 %v5694_v40  ;;  %v4720_v58 = vld [vmem:[%s8611_s9 + $0xc0] sm:$0xff]  ;;  %v4722_v1 = vld [vmem:[%s8611_s9 + $0xd0] sm:$0xff]  ;;  %v5750_v40 = vpack.c.bf16 %v4731_v6, %v4730_v38 }
 0x6ad   : > { %5719 = vmatprep.subr.bf16.mxu0 %v5718_v26  ;;  %5699 = vmatprep.subr.bf16.mxu1 %v5698_v18 }
 0x6ae   : > { %v3286_v4 = vpop.f32.mrb[46].mxu0  ;;  %4672 = vmatprep.mubr.msk.f32.mxu0 %vm3319_vm3, %v3296_v2  ;;  %4696 = vmatprep.mubr.msk.f32.mxu1 %vm3319_vm3, %v3296_v2  ;;  %v4723_v2 = vld [vmem:[%s8611_s9 + $0xd8] sm:$0xff] }
 0x6af   : > { %v3297_v10 = vmax.f32 %v3180_v48, %v3286_v4  ;;  %v3288_v12 = vpop.f32.mrb[47].mxu0  ;;  %3407 = vmatmul.mubr.f32.gmra.mrb[52].mxu0 %v3295_v0  ;;  %3513 = vmatmul.mubr.f32.gmra.mrb[84].mxu1 %v3295_v0  ;;  %v5738_v0 = vpack.c.bf16 %v4721_v62, %v4720_v58  ;;  %v4188_v58 = vld [vmem:[%s8614_s12 + $0x10] sm:$0xff]  ;;  %v4190_v62 = vld [vmem:[%s8614_s12 + $0x20] sm:$0xff] }
 0x6b0   : > { %v3298_v13 = vmax.f32 %v3182_v49, %v3288_v12  ;;  %5721 = vmatpush3.bf16.msra.mxu0 %v5718_v26  ;;  %5701 = vmatpush3.bf16.msra.mxu1 %v5698_v18  ;;  %v5742_v12 = vpack.c.bf16 %v4723_v2, %v4722_v1  ;;  %v5758_v18 = vpack.c.bf16 %v4735_v7, %v4734_v3  ;;  %v4192_v1 = vld [vmem:[%s8614_s12 + $0x30] sm:$0xff]  ;;  %v4193_v2 = vld [vmem:[%s8614_s12 + $0x38] sm:$0xff] }
 0x6b1   : > { %5723 = vmatprep.subr.bf16.mxu0 %v5722_v8  ;;  %5703 = vmatprep.subr.bf16.mxu1 %v5702_v27 }
 0x6b2   : > { %4673 = vmatprep.mubr.msk.f32.mxu0 %vm3319_vm3, %v3298_v13  ;;  %4697 = vmatprep.mubr.msk.f32.mxu1 %vm3319_vm3, %v3298_v13  ;;  %v4724_v13 = vld [vmem:[%s8611_s9 + $0xe0] sm:$0xff] }
 0x6b3   : > { %3412 = vmatmul.mubr.f32.gmra.mrb[54].mxu0 %v3297_v10  ;;  %3518 = vmatmul.mubr.f32.gmra.mrb[86].mxu1 %v3297_v10  ;;  %v5746_v26 = vpack.c.bf16 %v4725_v15, %v4724_v13  ;;  %v4197_v15 = vld [vmem:[%s8614_s12 + $0x58] sm:$0xff] }
 0x6b4   : > { %5725 = vmatpush3.bf16.msra.mxu0 %v5722_v8  ;;  %5705 = vmatpush3.bf16.msra.mxu1 %v5702_v27  ;;  %v5754_v8 = vpack.c.bf16 %v4733_v5, %v4732_v53  ;;  %v4738_v27 = vld [vmem:[%s8611_s9 + $0x130] sm:$0xff] }
 0x6b5   : > { %5727 = vmatprep.subr.bf16.mxu0 %v5726_v21  ;;  %5707 = vmatprep.subr.bf16.mxu1 %v5706_v31 }
 0x6b8   : > { %5729 = vmatpush3.bf16.msra.mxu0 %v5726_v21  ;;  %5709 = vmatpush3.bf16.msra.mxu1 %v5706_v31  ;;  %v4745_v31 = vld [vmem:[%s8611_s9 + $0x148] sm:$0xff] }
 0x6b9   : > { %5731 = vmatprep.subr.bf16.mxu0 %v5730_v28  ;;  %5796 = vmatprep.subr.bf16.mxu1 %v6160_v17 }
 0x77a   : > { %v3398_v32 = vpop.f32.mrb[48].mxu0  ;;  %v3504_v34 = vpop.f32.mrb[80].mxu1 }
 0x77b   : > { %v3523_v36 = vmax.f32 %v3398_v32, %v3504_v34  ;;  %v3400_v37 = vpop.f32.mrb[49].mxu0  ;;  %v3506_v39 = vpop.f32.mrb[81].mxu1  ;;  %v5770_v32 = vpack.c.bf16 %v4745_v31, %v4744_v30  ;;  %v4746_v34 = vld [vmem:[%s8611_s9 + $0x150] sm:$0xff]  ;;  %v4280_v30 = vld [vmem:[%s8616_s14] sm:$0xff]  ;;  %v4281_v31 = vld [vmem:[%s8616_s14 + $0x8] sm:$0xff] }
 0x77d   : > { %3528 = vst.msk [vmem:[#allocation3] sm:$0xff] %vm3527_vm4, %v3523_v36  ;;  %v4747_v36 = vld [vmem:[%s8611_s9 + $0x158] sm:$0xff] }
 0x77e   : > { %v3403_v41 = vpop.f32.mrb[50].mxu0  ;;  %v3509_v43 = vpop.f32.mrb[82].mxu1  ;;  %v5774_v37 = vpack.c.bf16 %v4747_v36, %v4746_v34 }
 0x77f   : > { %v3524_v33 = vmax.f32 %v3403_v41, %v3509_v43  ;;  %v3405_v35 = vpop.f32.mrb[51].mxu0  ;;  %v3511_v42 = vpop.f32.mrb[83].mxu1  ;;  %v4748_v41 = vld [vmem:[%s8611_s9 + $0x160] sm:$0xff]  ;;  %v4749_v43 = vld [vmem:[%s8611_s9 + $0x168] sm:$0xff] }
 0x780   : > { %v5778_v35 = vpack.c.bf16 %v4749_v43, %v4748_v41  ;;  %v4282_v41 = vld [vmem:[%s8616_s14 + $0x10] sm:$0xff]  ;;  %v4283_v43 = vld [vmem:[%s8616_s14 + $0x18] sm:$0xff] }
 0x781   : > { %3529 = vst.msk [vmem:[#allocation3 + $0x8] sm:$0xff] %vm3527_vm4, %v3524_v33 }
 0x782   : > { %v3408_v44 = vpop.f32.mrb[52].mxu0  ;;  %v3514_v45 = vpop.f32.mrb[84].mxu1 }
 0x783   : > { %v3525_v24 = vmax.f32 %v3408_v44, %v3514_v45  ;;  %v3410_v47 = vpop.f32.mrb[53].mxu0  ;;  %v3516_v48 = vpop.f32.mrb[85].mxu1  ;;  %v4750_v44 = vld [vmem:[%s8611_s9 + $0x170] sm:$0xff]  ;;  %v4751_v45 = vld [vmem:[%s8611_s9 + $0x178] sm:$0xff] }
 0x784   : > { %v3533_v49 = vld [vmem:[#allocation3] sm:$0xff]  ;;  %v5782_v47 = vpack.c.bf16 %v4751_v45, %v4750_v44  ;;  %v4752_v48 = vld [vmem:[%s8611_s9 + $0x180] sm:$0xff]  ;;  %v4286_v45 = vld [vmem:[%s8616_s14 + $0x30] sm:$0xff] }
 0x785   : > { %4921 = vmatprep.mubr.msk.f32.mxu0 %vm3527_vm4, %v3533_v49  ;;  %3530 = vst.msk [vmem:[#allocation3 + $0x10] sm:$0xff] %vm3527_vm4, %v3525_v24  ;;  %v4753_v49 = vld [vmem:[%s8611_s9 + $0x188] sm:$0xff] }
 0x786   : > { %v3413_v52 = vpop.f32.mrb[54].mxu0  ;;  %v3519_v54 = vpop.f32.mrb[86].mxu1  ;;  %v5786_v50 = vpack.c.bf16 %v4753_v49, %v4752_v48  ;;  %v4289_v48 = vld [vmem:[%s8616_s14 + $0x48] sm:$0xff] }
 0x787   : > { %v3526_v56 = vmax.f32 %v3413_v52, %v3519_v54  ;;  %v3415_v59 = vpop.f32.mrb[55].mxu0  ;;  %v3521_v60 = vpop.f32.mrb[87].mxu1 }
 0x788   : > { %v3534_v61 = vld [vmem:[#allocation3 + $0x8] sm:$0xff]  ;;  %v4189_v60 = vld [vmem:[%s8614_s12 + $0x18] sm:$0xff] }
 0x789   : > { %v3547_v63 = vld [vmem:[#allocation3 + $0x1] sm:$0xff]  ;;  %4922 = vmatmul.mubr.msk.f32.vlgmr.msra.gmra.mrb[56].mxu0 %vm3527_vm4, %v3534_v61  ;;  %3531 = vst.msk [vmem:[#allocation3 + $0x18] sm:$0xff] %vm3527_vm4, %v3526_v56  ;;  %v4186_v56 = vld [vmem:[%s8614_s12] sm:$0xff]  ;;  %v5800_v61 = vpack.c.bf16 %v4189_v60, %v4188_v58 }
 0x78a   : > { %4895 = vmatprep.mubr.msk.f32.mxu1 %vm3527_vm4, %v3547_v63  ;;  %5733 = vmatpush3.bf16.msra.mxu0 %v5730_v28  ;;  %v3756_v11 = vld [vmem:[#allocation3 + $0x2] sm:$0xff]  ;;  %v4739_v28 = vld [vmem:[%s8611_s9 + $0x138] sm:$0xff] }
 0x78b   : > { %5735 = vmatprep.subr.bf16.mxu0 %v5734_v57  ;;  %v3872_v22 = vld [vmem:[#allocation3 + $0x3] sm:$0xff]  ;;  %v5766_v29 = vpack.c.bf16 %v4739_v28, %v4738_v27  ;;  %v4201_v27 = vld [vmem:[%s8614_s12 + $0x78] sm:$0xff] }
 0x78c   : > { %v3535_v4 = vld [vmem:[#allocation3 + $0x10] sm:$0xff]  ;;  %v3988_v24 = vld [vmem:[#allocation3 + $0x4] sm:$0xff] }
 0x78d   : > { %v3548_v10 = vld [vmem:[#allocation3 + $0x9] sm:$0xff]  ;;  %4924 = vmatprep.mubr.msk.f32.mxu0 %vm3527_vm4, %v3535_v4  ;;  %v4191_v63 = vld [vmem:[%s8614_s12 + $0x28] sm:$0xff]  ;;  %v5806_v4 = vpack.c.bf16 %v4193_v2, %v4192_v1 }
 0x78e   : > { %4896 = vmatmul.mubr.msk.f32.vlgmr.msra.gmra.mrb[88].mxu1 %vm3527_vm4, %v3548_v10  ;;  %5737 = vmatpush3.bf16.msra.mxu0 %v5734_v57  ;;  %v3757_v55 = vld [vmem:[#allocation3 + $0xa] sm:$0xff]  ;;  %v4187_v57 = vld [vmem:[%s8614_s12 + $0x8] sm:$0xff]  ;;  %v4194_v10 = vld [vmem:[%s8614_s12 + $0x40] sm:$0xff] }
 0x78f   : > { %5739 = vmatprep.subr.bf16.mxu0 %v5738_v0  ;;  %v3873_v39 = vld [vmem:[#allocation3 + $0xb] sm:$0xff]  ;;  %v5797_v59 = vpack.c.bf16 %v4187_v57, %v4186_v56  ;;  %v4293_v56 = vld [vmem:[%s8616_s14 + $0x68] sm:$0xff] }
 0x790   : > { %v3536_v14 = vld [vmem:[#allocation3 + $0x18] sm:$0xff]  ;;  %v3989_v51 = vld [vmem:[#allocation3 + $0xc] sm:$0xff] }
 0x791   : > { %v3549_v9 = vld [vmem:[#allocation3 + $0x11] sm:$0xff]  ;;  %4925 = vmatmul.mubr.msk.f32.gmra.mrb[58].mxu0 %vm3527_vm4, %v3536_v14  ;;  %v3550_v25 = vld [vmem:[#allocation3 + $0x19] sm:$0xff]  ;;  %5798 = vmatpush3.bf16.msra.mxu1 %v5797_v59  ;;  %v4196_v14 = vld [vmem:[%s8614_s12 + $0x50] sm:$0xff] }
 0x792   : > { %4898 = vmatprep.mubr.msk.f32.mxu1 %vm3527_vm4, %v3549_v9  ;;  %5741 = vmatpush3.bf16.msra.mxu0 %v5738_v0  ;;  %v3758_v16 = vld [vmem:[#allocation3 + $0x12] sm:$0xff]  ;;  %v3759_v21 = vld [vmem:[#allocation3 + $0x1a] sm:$0xff]  ;;  %v5803_v0 = vpack.c.bf16 %v4191_v63, %v4190_v62  ;;  %v5812_v9 = vpack.c.bf16 %v4197_v15, %v4196_v14  ;;  %v4294_v58 = vld [vmem:[%s8616_s14 + $0x70] sm:$0xff] }
 0x793   : > { %4947 = vmatprep.mubr.msk.f32.mxu0 %vm3527_vm4, %v3756_v11  ;;  %5743 = vmatprep.subr.bf16.mxu0 %v5742_v12  ;;  %v3874_v33 = vld [vmem:[#allocation3 + $0x13] sm:$0xff]  ;;  %v3875_v42 = vld [vmem:[#allocation3 + $0x1b] sm:$0xff] }
 0x794   : > { %4899 = vmatmul.mubr.msk.f32.gmra.mrb[90].mxu1 %vm3527_vm4, %v3550_v25  ;;  %v3990_v52 = vld [vmem:[#allocation3 + $0x14] sm:$0xff]  ;;  %v3991_v54 = vld [vmem:[#allocation3 + $0x1c] sm:$0xff]  ;;  %5799 = vmatprep.subr.bf16.mxu1 %v6160_v17 }
 0x795   : > { %5048 = vmatprep.mubr.msk.f32.mxu1 %vm6161_vm5, %v6159_v46  ;;  %5801 = vmatpush3.bf16.msra.mxu1 %v5800_v61  ;;  %v4198_v11 = vld [vmem:[%s8614_s12 + $0x60] sm:$0xff]  ;;  %v4199_v25 = vld [vmem:[%s8614_s12 + $0x68] sm:$0xff]  ;;  %v4295_v59 = vld [vmem:[%s8616_s14 + $0x78] sm:$0xff] }
 0x796   : > { %5745 = vmatpush3.bf16.msra.mxu0 %v5742_v12  ;;  %5802 = vmatprep.subr.bf16.mxu1 %v6160_v17  ;;  %v4195_v12 = vld [vmem:[%s8614_s12 + $0x48] sm:$0xff]  ;;  %v5842_v60 = vpack.c.bf16 %v4295_v59, %v4294_v58  ;;  %v4760_v61 = vld [vmem:[%s8615_s13] ss:$0 sm:$0xff] }
 0x797   : > { %5747 = vmatprep.subr.bf16.mxu0 %v5746_v26  ;;  %v5809_v13 = vpack.c.bf16 %v4195_v12, %v4194_v10 }
 0x799   : > { %5804 = vmatpush3.bf16.msra.mxu1 %v5803_v0 }
 0x79a   : > { %5749 = vmatpush3.bf16.msra.mxu0 %v5746_v26  ;;  %5805 = vmatprep.subr.bf16.mxu1 %v6160_v17  ;;  %v5815_v26 = vpack.c.bf16 %v4199_v25, %v4198_v11 }
 0x79b   : > { %5751 = vmatprep.subr.bf16.mxu0 %v5750_v40 }
 0x79d   : > { %4948 = vmatmul.mubr.msk.f32.vlgmr.msra.gmra.mrb[56].mxu0 %vm3527_vm4, %v3757_v55  ;;  %5807 = vmatpush3.bf16.msra.mxu1 %v5806_v4 }
 0x79e   : > { %5753 = vmatpush3.bf16.msra.mxu0 %v5750_v40  ;;  %4950 = vmatprep.mubr.msk.f32.mxu0 %vm3527_vm4, %v3758_v16 }
 0x79f   : > { %5755 = vmatprep.subr.bf16.mxu0 %v5754_v8  ;;  %5808 = vmatprep.subr.bf16.mxu1 %v6160_v17 }
 0x7a1   : > { %4951 = vmatmul.mubr.msk.f32.gmra.mrb[58].mxu0 %vm3527_vm4, %v3759_v21  ;;  %5810 = vmatpush3.bf16.msra.mxu1 %v5809_v13 }
 0x7a2   : > { %5757 = vmatpush3.bf16.msra.mxu0 %v5754_v8  ;;  %4973 = vmatprep.mubr.msk.f32.mxu0 %vm3527_vm4, %v3872_v22  ;;  %v4104_v22 = vld [vmem:[%s8613_s11] sm:$0xf] }
 0x7a3   : > { %5759 = vmatprep.subr.bf16.mxu0 %v5758_v18  ;;  %5811 = vmatprep.subr.bf16.mxu1 %v6160_v17 }
 0x7a5   : > { %5813 = vmatpush3.bf16.msra.mxu1 %v5812_v9 }
 0x7a6   : > { %5761 = vmatpush3.bf16.msra.mxu0 %v5758_v18  ;;  %5814 = vmatprep.subr.bf16.mxu1 %v6160_v17 }
 0x7a7   : > { %5763 = vmatprep.subr.bf16.mxu0 %v5762_v23 }
 0x7a9   : > { %5816 = vmatpush3.bf16.msra.mxu1 %v5815_v26 }
 0x7aa   : > { %5765 = vmatpush3.bf16.msra.mxu0 %v5762_v23  ;;  %5817 = vmatprep.subr.bf16.mxu1 %v6160_v17  ;;  %v4200_v23 = vld [vmem:[%s8614_s12 + $0x70] sm:$0xff] }
 0x7ab   : > { %5767 = vmatprep.subr.bf16.mxu0 %v5766_v29  ;;  %v5818_v28 = vpack.c.bf16 %v4201_v27, %v4200_v23 }
 0x7ad   : > { %5819 = vmatpush3.bf16.msra.mxu1 %v5818_v28 }
 0x7ae   : > { %5769 = vmatpush3.bf16.msra.mxu0 %v5766_v29  ;;  %5820 = vmatprep.subr.bf16.mxu1 %v6160_v17  ;;  %v4758_v29 = vld [vmem:[%s8612_s10] ss:$0 sm:$0xff] }
 0x7af   : > { %5771 = vmatprep.subr.bf16.mxu0 %v5770_v32 }
 0x7b1   : > { %4974 = vmatmul.mubr.msk.f32.vlgmr.msra.gmra.mrb[56].mxu0 %vm3527_vm4, %v3873_v39 }
 0x7b2   : > { %4976 = vmatprep.mubr.msk.f32.mxu0 %vm3527_vm4, %v3874_v33  ;;  %5773 = vmatpush3.bf16.msra.mxu0 %v5770_v32  ;;  %v5824_v33 = vpack.c.bf16 %v4283_v43, %v4282_v41 }
 0x7b3   : > { %5775 = vmatprep.subr.bf16.mxu0 %v5774_v37 }
 0x7b5   : > { %4977 = vmatmul.mubr.msk.f32.gmra.mrb[58].mxu0 %vm3527_vm4, %v3875_v42  ;;  %v4285_v42 = vld [vmem:[%s8616_s14 + $0x28] sm:$0xff] }
 0x7b6   : > { %5777 = vmatpush3.bf16.msra.mxu0 %v5774_v37  ;;  %4999 = vmatprep.mubr.msk.f32.mxu0 %vm3527_vm4, %v3988_v24  ;;  %v5821_v37 = vpack.c.bf16 %v4281_v31, %v4280_v30 }
 0x7b7   : > { %5779 = vmatprep.subr.bf16.mxu0 %v5778_v35 }
 0x7ba   : > { %5781 = vmatpush3.bf16.msra.mxu0 %v5778_v35  ;;  %v4284_v35 = vld [vmem:[%s8616_s14 + $0x20] sm:$0xff] }
 0x7bb   : > { %5783 = vmatprep.subr.bf16.mxu0 %v5782_v47  ;;  %v5827_v44 = vpack.c.bf16 %v4285_v42, %v4284_v35 }
 0x7be   : > { %5785 = vmatpush3.bf16.msra.mxu0 %v5782_v47  ;;  %v4288_v47 = vld [vmem:[%s8616_s14 + $0x40] sm:$0xff] }
 0x7bf   : > { %5787 = vmatprep.subr.bf16.mxu0 %v5786_v50  ;;  %v5833_v49 = vpack.c.bf16 %v4289_v48, %v4288_v47 }
 0x7c2   : > { %5789 = vmatpush3.bf16.msra.mxu0 %v5786_v50  ;;  %v4290_v50 = vld [vmem:[%s8616_s14 + $0x50] sm:$0xff] }
 0x7c3   : > { %5790 = vmatprep.subr.bf16.mxu0 %v6160_v17 }
 0x7c5   : > { %5000 = vmatmul.mubr.msk.f32.vlgmr.msra.gmra.mrb[56].mxu0 %vm3527_vm4, %v3989_v51  ;;  %v4291_v51 = vld [vmem:[%s8616_s14 + $0x58] sm:$0xff] }
 0x7c6   : > { %5002 = vmatprep.mubr.msk.f32.mxu0 %vm3527_vm4, %v3990_v52  ;;  %v5836_v52 = vpack.c.bf16 %v4291_v51, %v4290_v50 }
 0x7c9   : > { %5003 = vmatmul.mubr.msk.f32.gmra.mrb[58].mxu0 %vm3527_vm4, %v3991_v54  ;;  %v4292_v54 = vld [vmem:[%s8616_s14 + $0x60] sm:$0xff] }
 0x7ca   : > { %5013 = vmatprep.mubr.msk.f32.mxu0 %vm6161_vm5, %v6159_v46  ;;  %v5839_v57 = vpack.c.bf16 %v4293_v56, %v4292_v54 }
 0x861   : > { %v4897_v38 = vpop.f32.mrb[88].mxu1 }
 0x862   : > { %v3640_v6 = vpop.f32.mrb[89].mxu1 }
 0x867   : > { %v4900_v40 = vpop.f32.mrb[90].mxu1 }
 0x868   : > { %v3650_v53 = vpop.f32.mrb[91].mxu1 }
 0x898   : > { %v5001_v5 = vpop.f32.mrb[56].mxu0 }
 0x899   : > { %v5876_v8 = vadd.f32 %v5001_v5, %v4897_v38  ;;  %v4081_v55 = vpop.f32.mrb[57].mxu0 }
 0x89a   : > { %v5877_v3 = vadd.f32 %v4081_v55, %v3640_v6 }
 0x89c   : > { %v5791_v7 = vpack.c.bf16 %v5876_v8, %v5877_v3  ;;  %v5004_v16 = vpop.f32.mrb[58].mxu0 }
 0x89d   : > { %v5878_v18 = vadd.f32 %v5004_v16, %v4900_v40  ;;  %v4091_v21 = vpop.f32.mrb[59].mxu0 }
 0x89e   : > { %v5879_v19 = vadd.f32 %v4091_v21, %v3650_v53  ;;  %5792 = vmatpush3.bf16.msra.mxu0 %v5791_v7 }
 0x89f   : > { %5793 = vmatprep.subr.bf16.mxu0 %v6160_v17 }
 0x8a0   : > { %v5794_v20 = vpack.c.bf16 %v5878_v18, %v5879_v19 }
 0x8a2   : > { %5795 = vmatpush3.bf16.msra.mxu0 %v5794_v20 }
 0x8a5   : > { %5014 = vmatmul.mubr.msk.f32.vlgmr.msra.gmra.mrb[60].mxu0 %vm3319_vm3, %v4104_v22 }
 0x978   : > { %v4181_v32 = vpop.f32.mrb[60].mxu0 }
 0x979   : > { %v4182_v34 = vadd.f32 %v4758_v29, %v4181_v32  ;;  %v5015_v36 = vpop.f32.mrb[61].mxu0 }
 0x97b   : > { %v4185_v39 = vmax.f32 %v4182_v34, 0.0 }
 0x97d   : > { %5049 = vmatmul.mubr.f32.vlgmr.msra.gmra.mrb[92].mxu1 %v4185_v39 }
 0x97e   : > { %5822 = vmatpush3.bf16.msra.mxu1 %v5821_v37  ;;  %5083 = vmatprep.mubr.msk.f32.mxu1 %vm6161_vm5, %v6159_v46  ;;  %v4287_v46 = vld [vmem:[%s8616_s14 + $0x38] sm:$0xff] }
 0x97f   : > { %5823 = vmatprep.subr.bf16.mxu1 %v6160_v17  ;;  %v5830_v24 = vpack.c.bf16 %v4287_v46, %v4286_v45 }
 0x982   : > { %5825 = vmatpush3.bf16.msra.mxu1 %v5824_v33 }
 0x983   : > { %5826 = vmatprep.subr.bf16.mxu1 %v6160_v17 }
 0x986   : > { %5828 = vmatpush3.bf16.msra.mxu1 %v5827_v44 }
 0x987   : > { %5829 = vmatprep.subr.bf16.mxu1 %v6160_v17 }
 0x98a   : > { %5831 = vmatpush3.bf16.msra.mxu1 %v5830_v24 }
 0x98b   : > { %5832 = vmatprep.subr.bf16.mxu1 %v6160_v17 }
 0x98e   : > { %5834 = vmatpush3.bf16.msra.mxu1 %v5833_v49 }
 0x98f   : > { %5835 = vmatprep.subr.bf16.mxu1 %v6160_v17 }
 0x992   : > { %5837 = vmatpush3.bf16.msra.mxu1 %v5836_v52 }
 0x993   : > { %5838 = vmatprep.subr.bf16.mxu1 %v6160_v17 }
 0x996   : > { %5840 = vmatpush3.bf16.msra.mxu1 %v5839_v57 }
 0x997   : > { %5841 = vmatprep.subr.bf16.mxu1 %v6160_v17  ;;  %v4761_v17 = vld [vmem:[%s8617_s15] ss:$0 sm:$0xff] }
 0x99a   : > { %5843 = vmatpush3.bf16.msra.mxu1 %v5842_v60 }
 0xa50   : > { %v4275_v62 = vpop.f32.mrb[92].mxu1 }
 0xa51   : > { %v4276_v63 = vadd.f32 %v4760_v61, %v4275_v62  ;;  %v5050_v0 = vpop.f32.mrb[93].mxu1 }
 0xa53   : > { %v4279_v1 = vmax.f32 %v4276_v63, 0.0 }
 0xa55   : > { %5084 = vmatmul.mubr.f32.vlgmr.msra.gmra.mrb[94].mxu1 %v4279_v1 }
 0xb28   : > { %v4369_v2 = vpop.f32.mrb[94].mxu1 }
 0xb29   : > { %v4370_v4 = vadd.f32 %v4761_v17, %v4369_v2  ;;  %v5085_v10 = vpop.f32.mrb[95].mxu1 }
 0xb2b   : > { %4373 = vst [vmem:[%s517_s29] sm:$0xf] %v4370_v4 }
 0xb2c   : > { %6108 = shalt.err (!%p6105_p3)
}
 0xb2d   : > { %s6109_s20 = scalar_lea.hbm %s8560_s16, 64  ;;  %s6113_s29 = scalar_lea.hbm %s8637_s27, 128 }
 0xb2e   : > { %p6110_p4 = scmp.ne.s32.totalorder %s8560_s16, %s6109_s20  ;;  %p6114_p9 = scmp.lt.u32.totalorder %s8560_s16, %s8637_s27 }
 0xb2f   : > { %p6115_p10 = scmp.lt.u32.totalorder %s6113_s29, %s6109_s20  ;;  %p6117_p12 = scmp.lt.u32.totalorder %s6109_s20, %s8560_s16 }
 0xb30   : > { %p6111_p7 = pnand %p6110_p4, %p6286_p5 }
 0xb31   : > { %p6116_p11 = por %p6115_p10, %p6114_p9 }
 0xb32   : > { %p6112_p8 = pneg %p6111_p7 }
 0xb33   : > { %p6118_p13 = por %p6117_p12, %p6116_p11 }
 0xb35   : > { %p6119_p0 = pnand %p6118_p13, %p6112_p8 }
 0xb37   : > { %6122 = shalt.err (!%p6119_p0)
}
 0xb38   : > { %6053 = dma.vmem_to_hbm [thread:$0]  (%p6286_p5), %s8562_s18, 64, %s8560_s16, %s4375_s17  }
 0xb39 PF: > { %s8638_s19 = sld [smem:[#allocation9_spill]]  ;;  %s8639_s25 = sld [smem:[#allocation7_spill]] }
 0xb3f   : > { %p6059_p1 = scmp.ge.s32.totalorder %s8638_s19, 2  ;;  %s4400_s24 = sand.u32 1, %s8639_s25  }
 0xb40   : > { %s4401_s30 = scalar_lea.sflag [#allocation5], %s4400_s24 }
 0xb41   : > { %p6056_p2 = pnand %p6059_p1, %p6290_p6 }
 0xb43   : > { %6140 = dma.done.wait (!%p6056_p2), %s4401_s30, 64  }
 0xb44   : > { %6142 = vsyncadd (!%p6056_p2), %s4401_s30, 4294967232  ;;  %s8641_s24 = sld [smem:[#allocation10_spill]]  ;;  %s8642_s20 = sld [smem:[#allocation8_spill]] }
 0xb45   : > { %s8643_s23 = sld [smem:[#allocation11_spill]]  ;;  %s8644_s21 = smov %s6149_s22 }
 0xb4a   : > { %p26_p3 = scmp.ge.s32.totalorder %s8641_s24, 4   ;;  %s8645_s22 = smov %s8642_s20 }
 0xb4c   :  { %28 = sbr.rel (!%p26_p3) target bundleno = 6 (0x6), region = 131 }
 0xb53   :  { %4406 = vsyncpa [#allocation5], 1 }
 0xb54   :  { %4408 = vsyncpa [#allocation5 + $0x1], 1 }

</bundles_post_ra>
